<compile_context>
chip_gen: v7x
topology: tpu7x:2x2x1
jax: 0.10.0
libtpu: 0.0.40
codegen_flags: <defaults>
</compile_context>

<pallas_src>
import functools

import jax
import jax.numpy as jnp
from jax.experimental import pallas as pl
from jax.experimental.pallas import tpu as pltpu


# ----------------------------------------------------------------------------
# Fused pre/post encoder GRU: grid = (branch,), time scan is an in-kernel loop
# ----------------------------------------------------------------------------
def _encoder_kernel(tok_ref, emb_ref, wih_ref, whh_ref, b_ref, seq_out, hlast_out):
    T, B, _ = tok_ref.shape                           # (T, B, 1) int32 token ids
    V, E = emb_ref.shape
    H = whh_ref.shape[0]
    G = 3 * H
    dot = functools.partial(jnp.dot, preferred_element_type=jnp.float32)

    emb = emb_ref[...]                                # (V, E)   resident
    wih = wih_ref[...]                                # (E, 3H)  packed gates [r|z|n]
    whh = whh_ref[...]                                # (H, 3H)
    bih = b_ref[:, :G]                                # (1, 3H)
    bhh = b_ref[:, G:]                                # (1, 3H)
    lane_v = jax.lax.broadcasted_iota(jnp.int32, (B, V), 1)   # hoisted out of the loop

    def step(t, h):
        # In-kernel embedding gather (one-hot matmul; V is small here).
        oh = (tok_ref[t] == lane_v).astype(jnp.float32)       # (B, V)
        x = dot(oh, emb)                                      # (B, E)
        gi = dot(x, wih) + bih                                # (B, 3H)
        gh = dot(h, whh) + bhh                                # (B, 3H)
        r = jax.nn.sigmoid(gi[:, :H] + gh[:, :H])
        z = jax.nn.sigmoid(gi[:, H:2 * H] + gh[:, H:2 * H])
        n = jnp.tanh(gi[:, 2 * H:] + r * gh[:, 2 * H:])
        h_new = (1.0 - z) * n + z * h
        seq_out[t] = h_new            # VMEM store; the (T,B,H) block hits HBM once
        return h_new

    h0 = jnp.zeros((B, H), jnp.float32)
    h_last = jax.lax.fori_loop(0, T, step, h0, unroll=T <= 32)
    hlast_out[...] = h_last


def encoder_forward(tok, emb, wih, whh, b):
    """tok: (2,T,B,1) int32; emb: (V,E); wih: (2,E,3H); whh: (2,H,3H); b: (2,1,6H)."""
    _, T, B, _ = tok.shape
    V, E = emb.shape
    H = whh.shape[1]
    G = 3 * H
    return pl.pallas_call(
        _encoder_kernel,
        out_shape=(jax.ShapeDtypeStruct((2, T, B, H), jnp.float32),
                   jax.ShapeDtypeStruct((2, B, H), jnp.float32)),
        grid_spec=pltpu.PrefetchScalarGridSpec(
            num_scalar_prefetch=0,
            grid=(2,),
            in_specs=[
                pl.BlockSpec((None, T, B, 1), lambda d: (d, 0, 0, 0)),
                pl.BlockSpec((V, E), lambda d: (0, 0)),
                pl.BlockSpec((None, E, G), lambda d: (d, 0, 0)),
                pl.BlockSpec((None, H, G), lambda d: (d, 0, 0)),
                pl.BlockSpec((None, 1, 2 * G), lambda d: (d, 0, 0)),
            ],
            out_specs=[
                pl.BlockSpec((None, T, B, H), lambda d: (d, 0, 0, 0)),
                pl.BlockSpec((None, B, H), lambda d: (d, 0, 0)),
            ],
        ),
        compiler_params=pltpu.CompilerParams(
            dimension_semantics=("parallel",)),
    )(tok, emb, wih, whh, b)


# ----------------------------------------------------------------------------
# Fused decoder loop: grid = (1,), everything resident, unrolled in-kernel scan
# ----------------------------------------------------------------------------
def _decoder_kernel(tf_ref,                               # (Lt,) int32 scalar-prefetch (SMEM)
                    hcat_ref, fcw_ref, penc_ref, wih_ref, whh_ref,
                    wt_ref, wpd_ref, bias_ref, emb_ref, tok_ref,
                    type_out, point_out):
    H = whh_ref.shape[0]
    V, E = emb_ref.shape
    B = tok_ref.shape[1]
    Lt = type_out.shape[0]
    dot = functools.partial(jnp.dot, preferred_element_type=jnp.float32)

    # Statically sliced concatenated biases: [fc_b (H) | bih (3H) | bhh (3H) | bt (V) | bp (1)]
    fcb = bias_ref[:, :H]
    bih = bias_ref[:, H:4 * H]
    bhh = bias_ref[:, 4 * H:7 * H]
    bt = bias_ref[:, 7 * H:7 * H + V]
    bp = bias_ref[:, 7 * H + V:]

    emb = emb_ref[...]                                    # (V, E)
    wih = wih_ref[...]                                    # (E, 3H) packed [r|z|n]
    whh = whh_ref[...]                                    # (H, 3H)
    wt = wt_ref[...]                                      # (H, V)
    wpd = wpd_ref[...]                                    # (1, H)  fc_point, decoder half
    penc = penc_ref[...]                                  # (B, S)  hoisted encoder half
    lane_v = jax.lax.broadcasted_iota(jnp.int32, (B, V), 1)

    # Prologue: folded encoder fc (h0) + first input embedding (pre_seq[:, -1]).
    h0 = jnp.tanh(dot(hcat_ref[...], fcw_ref[...]) + fcb)               # (B, H)
    x0 = dot((tok_ref[0] == lane_v).astype(jnp.float32), emb)           # (B, E)

    def step(t, carry):
        x, h = carry
        # Packed GRU cell (2 MXU pushes).
        gi = dot(x, wih) + bih
        gh = dot(h, whh) + bhh
        r = jax.nn.sigmoid(gi[:, :H] + gh[:, :H])
        z = jax.nn.sigmoid(gi[:, H:2 * H] + gh[:, H:2 * H])
        n = jnp.tanh(gi[:, 2 * H:] + r * gh[:, 2 * H:])
        h_new = (1.0 - z) * n + z * h

        # out_type = fc_type(h)
        logits = dot(h_new, wt) + bt                                    # (B, V)
        type_out[t] = logits

        # out_point = sigmoid(relu(enc)@W_pe + relu(h)@W_pd + b); the decoder half is a
        # VPU multiply + XLU lane reduce (no 1-lane-wide MXU push / MRF pop).
        p_dec = jnp.sum(jax.nn.relu(h_new) * wpd, axis=-1, keepdims=True)   # (B, 1)
        point_out[t] = jax.nn.sigmoid(penc + p_dec + bp)                    # (B, S)

        # Greedy argmax (first maximal index) / teacher forcing -> next input embedding.
        m = jnp.max(logits, axis=-1, keepdims=True)
        first = jnp.min(jnp.where(logits == m, lane_v, V), axis=-1, keepdims=True)
        pred_oh = (lane_v == first).astype(jnp.float32)                 # (B, V)
        teach_oh = (tok_ref[t + 1] == lane_v).astype(jnp.float32)       # (B, V)
        w_tf = (tf_ref[t] > 0).astype(jnp.float32)
        next_oh = w_tf * teach_oh + (1.0 - w_tf) * pred_oh
        # TODO(synk): at production vocab sizes replace this one-hot matmul gather with a
        #             scalar-index embedding-row fetch (argmax -> scalar -> emb row slice).
        x_next = dot(next_oh, emb)                                      # (B, E)
        return (x_next, h_new)

    jax.lax.fori_loop(0, Lt, step, (x0, h0), unroll=Lt <= 32)


def decoder_forward(tf_i32, h_cat, fc_w, penc, wih, whh, wt, wpd, bias_all, emb, dec_tok):
    Ltp1, B, _ = dec_tok.shape
    Lt = Ltp1 - 1
    V = wt.shape[1]
    S = penc.shape[1]
    args = (h_cat, fc_w, penc, wih, whh, wt, wpd, bias_all, emb, dec_tok)
    # Every input is loop-invariant w.r.t. the (trivial) grid: full-extent blocks with
    # constant index_maps -> DMA'd once and VMEM-resident for the whole decode loop.
    resident = [pl.BlockSpec(a.shape, lambda i, tf, _nd=a.ndim: (0,) * _nd) for a in args]
    # TODO(synk): on v7x a leading size-2 "parallel" grid axis splitting B (or the V dim of
    #             the type head) across the two TensorCores would help once B/V are non-trivial.
    return pl.pallas_call(
        _decoder_kernel,
        out_shape=(jax.ShapeDtypeStruct((Lt, B, V), jnp.float32),
                   jax.ShapeDtypeStruct((Lt, B, S), jnp.float32)),
        grid_spec=pltpu.PrefetchScalarGridSpec(
            num_scalar_prefetch=1,
            grid=(1,),
            in_specs=resident,
            out_specs=[pl.BlockSpec((Lt, B, V), lambda i, tf: (0, 0, 0)),
                       pl.BlockSpec((Lt, B, S), lambda i, tf: (0, 0, 0))],
        ),
        compiler_params=pltpu.CompilerParams(
            dimension_semantics=("arbitrary",),
            vmem_limit_bytes=32 * 1024 * 1024),
    )(tf_i32, *args)


# ----------------------------------------------------------------------------
# Parameter init (deterministic, synthetic; gates packed [r|z|n])
# ----------------------------------------------------------------------------
def init_params(key, vocab, emb_dim, hid):
    keys = jax.random.split(key, 16)
    kg = 1.0 / (hid ** 0.5)
    kp = 1.0 / ((2 * hid) ** 0.5)

    def u(kk, shape, s):
        return jax.random.uniform(kk, shape, jnp.float32, -s, s)

    return {
        "embedding": jax.random.normal(keys[0], (vocab, emb_dim), jnp.float32),
        # pre/post encoder GRUs stacked on a leading axis, packed gates
        "enc_wih": u(keys[1], (2, emb_dim, 3 * hid), kg),
        "enc_whh": u(keys[2], (2, hid, 3 * hid), kg),
        "enc_bih": u(keys[3], (2, 1, 3 * hid), kg),
        "enc_bhh": u(keys[4], (2, 1, 3 * hid), kg),
        "enc_fc_w": u(keys[5], (2 * hid, hid), kg),
        "enc_fc_b": u(keys[6], (1, hid), kg),
        # decoder GRU (packed gates) + output heads
        "dec_wih": u(keys[7], (emb_dim, 3 * hid), kg),
        "dec_whh": u(keys[8], (hid, 3 * hid), kg),
        "dec_bih": u(keys[9], (1, 3 * hid), kg),
        "dec_bhh": u(keys[10], (1, 3 * hid), kg),
        "wt": u(keys[11], (hid, vocab), kg),
        "bt": u(keys[12], (1, vocab), kg),
        "wpe": u(keys[13], (1, hid), kp),   # fc_point weight, encoder half
        "wpd": u(keys[14], (1, hid), kp),   # fc_point weight, decoder half
        "bp": u(keys[15], (1, 1), kp),
    }


# ----------------------------------------------------------------------------
# Full forward
# ----------------------------------------------------------------------------
def seq2seq_all_forward(params, pre_seq, post_seq, trg, tf_mask):
    B, Lp = pre_seq.shape
    emb = params["embedding"]                             # (V, E)

    # --- encoder: one fused kernel for both branches; embedding gather happens in-kernel ---
    tok = jnp.stack([pre_seq.T, post_seq.T], axis=0)[..., None].astype(jnp.int32)  # (2,Lp,B,1)
    enc_b = jnp.concatenate([params["enc_bih"], params["enc_bhh"]], axis=-1)       # (2,1,6H)
    enc_seq, enc_hlast = encoder_forward(
        tok, emb, params["enc_wih"], params["enc_whh"], enc_b)        # (2,Lp,B,H), (2,B,H)

    # cat(pre_h_T, post_h_T); the tanh(Linear(.)) is folded into the decoder prologue.
    h_cat = jnp.concatenate([enc_hlast[0], enc_hlast[1]], axis=-1)    # (B, 2H)

    # Hoisted loop-invariant pointer-encoder term:
    #   penc[b, s] = relu(enc_out[b, s, :]) @ W_pe with s = branch*Lp + t  (cat(pre,post) order)
    penc = jnp.transpose(
        (jax.nn.relu(enc_seq) * params["wpe"][0]).sum(-1), (2, 0, 1)).reshape(B, 2 * Lp)

    # --- fused decoder loop (single grid step) ---
    # Feedback token ids: row 0 = pre_seq[:, -1] (first input), row t+1 = trg[:, t] (teacher).
    dec_tok = jnp.concatenate([pre_seq[:, -1:], trg], axis=1).T[:, :, None].astype(jnp.int32)
    # Concatenated bias row: [fc_b | dec_bih | dec_bhh | bt | bp] -> (1, 7H + V + 1)
    bias_all = jnp.concatenate(
        [params["enc_fc_b"], params["dec_bih"], params["dec_bhh"],
         params["bt"], params["bp"]], axis=-1)
    tf_i32 = tf_mask.astype(jnp.int32)                    # (Lt,) teacher-forcing decisions

    type_tbv, point_tbs = decoder_forward(
        tf_i32, h_cat, params["enc_fc_w"], penc,
        params["dec_wih"], params["dec_whh"], params["wt"], params["wpd"],
        bias_all, emb, dec_tok)

    outputs_type = jnp.transpose(type_tbv, (1, 0, 2))     # (B, Lt, V)
    point = jnp.transpose(point_tbs, (1, 0, 2))           # (B, Lt, 2*Lp)
    outputs_pre = point[:, :, :Lp, None]                  # (B, Lt, Lp, 1)
    outputs_post = point[:, :, Lp:, None]                 # (B, Lt, Lp, 1)
    return outputs_type, outputs_pre, outputs_post


if __name__ == "__main__":
    vocab, emb_dim, hid = 64, 16, 32
    B, Lp, Lt = 2, 8, 4

    key = jax.random.PRNGKey(0)
    k_params, k_data = jax.random.split(key)
    params = init_params(k_params, vocab, emb_dim, hid)

    k1, k2, k3, k4 = jax.random.split(k_data, 4)
    pre_seq = jax.random.randint(k1, (B, Lp), 0, vocab, dtype=jnp.int32)
    post_seq = jax.random.randint(k2, (B, Lp), 0, vocab, dtype=jnp.int32)
    trg = jax.random.randint(k3, (B, Lt), 0, vocab, dtype=jnp.int32)
    tf_mask = jax.random.uniform(k4, (Lt,)) < 0.5   # deterministic teacher-forcing decisions

    fwd = jax.jit(seq2seq_all_forward)
    out_type, out_pre, out_post = fwd(params, pre_seq, post_seq, trg, tf_mask)
    jax.block_until_ready((out_type, out_pre, out_post))

    assert out_type.shape == (B, Lt, vocab)
    assert out_pre.shape == (B, Lt, Lp, 1)
    assert out_post.shape == (B, Lt, Lp, 1)
    print("KERNEL_OK")
</pallas_src>

<mosaic_0001>
module attributes {stable_mosaic.version = 11 : i64} {
  func.func @_decoder_kernel(%arg0: i32, %arg1: memref<4xi32, #tpu.memory_space<smem>>, %arg2: memref<2x64xf32, #tpu.memory_space<vmem>>, %arg3: memref<64x32xf32, #tpu.memory_space<vmem>>, %arg4: memref<2x16xf32, #tpu.memory_space<vmem>>, %arg5: memref<16x96xf32, #tpu.memory_space<vmem>>, %arg6: memref<32x96xf32, #tpu.memory_space<vmem>>, %arg7: memref<32x64xf32, #tpu.memory_space<vmem>>, %arg8: memref<1x32xf32, #tpu.memory_space<vmem>>, %arg9: memref<1x289xf32, #tpu.memory_space<vmem>>, %arg10: memref<64x16xf32, #tpu.memory_space<vmem>>, %arg11: memref<5x2x1xi32, #tpu.memory_space<vmem>>, %arg12: memref<4x2x64xf32, #tpu.memory_space<vmem>>, %arg13: memref<4x2x16xf32, #tpu.memory_space<vmem>>) attributes {dimension_semantics = [#tpu.dimension_semantics<arbitrary>], iteration_bounds = array<i64: 1>, scalar_prefetch = 1 : i64, scratch_operands = 0 : i64, tpu.core_type = #tpu.core_type<tc>, window_params = [{pipeline_mode = #tpu.pipeline_mode<synchronous>, transform_indices = @transform_0, window_bounds = array<i64: 2, 64>}, {pipeline_mode = #tpu.pipeline_mode<synchronous>, transform_indices = @transform_1, window_bounds = array<i64: 64, 32>}, {pipeline_mode = #tpu.pipeline_mode<synchronous>, transform_indices = @transform_2, window_bounds = array<i64: 2, 16>}, {pipeline_mode = #tpu.pipeline_mode<synchronous>, transform_indices = @transform_3, window_bounds = array<i64: 16, 96>}, {pipeline_mode = #tpu.pipeline_mode<synchronous>, transform_indices = @transform_4, window_bounds = array<i64: 32, 96>}, {pipeline_mode = #tpu.pipeline_mode<synchronous>, transform_indices = @transform_5, window_bounds = array<i64: 32, 64>}, {pipeline_mode = #tpu.pipeline_mode<synchronous>, transform_indices = @transform_6, window_bounds = array<i64: 1, 32>}, {pipeline_mode = #tpu.pipeline_mode<synchronous>, transform_indices = @transform_7, window_bounds = array<i64: 1, 289>}, {pipeline_mode = #tpu.pipeline_mode<synchronous>, transform_indices = @transform_8, window_bounds = array<i64: 64, 16>}, {pipeline_mode = #tpu.pipeline_mode<synchronous>, transform_indices = @transform_9, window_bounds = array<i64: 5, 2, 1>}, {pipeline_mode = #tpu.pipeline_mode<synchronous>, transform_indices = @transform_10, window_bounds = array<i64: 4, 2, 64>}, {pipeline_mode = #tpu.pipeline_mode<synchronous>, transform_indices = @transform_11, window_bounds = array<i64: 4, 2, 16>}]} {
    %c0 = arith.constant 0 : index
    %c0_0 = arith.constant 0 : index
    %0 = vector.load %arg9[%c0, %c0_0] : memref<1x289xf32, #tpu.memory_space<vmem>>, vector<1x32xf32>
    %c0_1 = arith.constant 0 : index
    %c32 = arith.constant 32 : index
    %1 = vector.load %arg9[%c0_1, %c32] : memref<1x289xf32, #tpu.memory_space<vmem>>, vector<1x96xf32>
    %c0_2 = arith.constant 0 : index
    %c128 = arith.constant 128 : index
    %2 = vector.load %arg9[%c0_2, %c128] : memref<1x289xf32, #tpu.memory_space<vmem>>, vector<1x96xf32>
    %c0_3 = arith.constant 0 : index
    %c224 = arith.constant 224 : index
    %3 = vector.load %arg9[%c0_3, %c224] : memref<1x289xf32, #tpu.memory_space<vmem>>, vector<1x64xf32>
    %c0_4 = arith.constant 0 : index
    %c288 = arith.constant 288 : index
    %4 = vector.load %arg9[%c0_4, %c288] : memref<1x289xf32, #tpu.memory_space<vmem>>, vector<1x1xf32>
    %c0_5 = arith.constant 0 : index
    %c0_6 = arith.constant 0 : index
    %5 = vector.load %arg10[%c0_5, %c0_6] : memref<64x16xf32, #tpu.memory_space<vmem>>, vector<64x16xf32>
    %c0_7 = arith.constant 0 : index
    %c0_8 = arith.constant 0 : index
    %6 = vector.load %arg5[%c0_7, %c0_8] : memref<16x96xf32, #tpu.memory_space<vmem>>, vector<16x96xf32>
    %c0_9 = arith.constant 0 : index
    %c0_10 = arith.constant 0 : index
    %7 = vector.load %arg6[%c0_9, %c0_10] : memref<32x96xf32, #tpu.memory_space<vmem>>, vector<32x96xf32>
    %c0_11 = arith.constant 0 : index
    %c0_12 = arith.constant 0 : index
    %8 = vector.load %arg7[%c0_11, %c0_12] : memref<32x64xf32, #tpu.memory_space<vmem>>, vector<32x64xf32>
    %c0_13 = arith.constant 0 : index
    %c0_14 = arith.constant 0 : index
    %9 = vector.load %arg8[%c0_13, %c0_14] : memref<1x32xf32, #tpu.memory_space<vmem>>, vector<1x32xf32>
    %c0_15 = arith.constant 0 : index
    %c0_16 = arith.constant 0 : index
    %10 = vector.load %arg4[%c0_15, %c0_16] : memref<2x16xf32, #tpu.memory_space<vmem>>, vector<2x16xf32>
    %11 = tpu.iota {dimensions = array<i32: 1>} : vector<2x64xi32>
    %c0_17 = arith.constant 0 : index
    %c0_18 = arith.constant 0 : index
    %12 = vector.load %arg2[%c0_17, %c0_18] : memref<2x64xf32, #tpu.memory_space<vmem>>, vector<2x64xf32>
    %c0_19 = arith.constant 0 : index
    %c0_20 = arith.constant 0 : index
    %13 = vector.load %arg3[%c0_19, %c0_20] : memref<64x32xf32, #tpu.memory_space<vmem>>, vector<64x32xf32>
    %cst = arith.constant dense<0.000000e+00> : vector<2x32xf32>
    %14 = tpu.matmul %12, %13, %cst {dimension_numbers = #tpu.dot_dimension_numbers<[1], [0], [0], [1], [0, 0, 1, 1], [], []>} : vector<2x64xf32>, vector<64x32xf32>, vector<2x32xf32> -> vector<2x32xf32>
    %15 = vector.broadcast %0 : vector<1x32xf32> to vector<2x32xf32>
    %16 = arith.addf %14, %15 : vector<2x32xf32>
    %17 = math.tanh %16 : vector<2x32xf32>
    %c0_21 = arith.constant 0 : index
    %c0_22 = arith.constant 0 : index
    %c0_23 = arith.constant 0 : index
    %18 = vector.load %arg11[%c0_21, %c0_22, %c0_23] : memref<5x2x1xi32, #tpu.memory_space<vmem>>, vector<1x2x1xi32>
    %19 = vector.shape_cast %18 : vector<1x2x1xi32> to vector<2x1xi32>
    %20 = vector.broadcast %19 : vector<2x1xi32> to vector<2x64xi32>
    %21 = arith.cmpi eq, %20, %11 : vector<2x64xi32>
    %22 = arith.extui %21 : vector<2x64xi1> to vector<2x64xi32>
    %23 = arith.sitofp %22 : vector<2x64xi32> to vector<2x64xf32>
    %cst_24 = arith.constant dense<0.000000e+00> : vector<2x16xf32>
    %24 = tpu.matmul %23, %5, %cst_24 {dimension_numbers = #tpu.dot_dimension_numbers<[1], [0], [0], [1], [0, 0, 1, 1], [], []>} : vector<2x64xf32>, vector<64x16xf32>, vector<2x16xf32> -> vector<2x16xf32>
    %c0_i32 = arith.constant 0 : i32
    %cst_25 = arith.constant dense<0.000000e+00> : vector<2x96xf32>
    %25 = tpu.matmul %24, %6, %cst_25 {dimension_numbers = #tpu.dot_dimension_numbers<[1], [0], [0], [1], [0, 0, 1, 1], [], []>} : vector<2x16xf32>, vector<16x96xf32>, vector<2x96xf32> -> vector<2x96xf32>
    %26 = vector.broadcast %1 : vector<1x96xf32> to vector<2x96xf32>
    %27 = arith.addf %25, %26 : vector<2x96xf32>
    %cst_26 = arith.constant dense<0.000000e+00> : vector<2x96xf32>
    %28 = tpu.matmul %17, %7, %cst_26 {dimension_numbers = #tpu.dot_dimension_numbers<[1], [0], [0], [1], [0, 0, 1, 1], [], []>} : vector<2x32xf32>, vector<32x96xf32>, vector<2x96xf32> -> vector<2x96xf32>
    %29 = vector.broadcast %2 : vector<1x96xf32> to vector<2x96xf32>
    %30 = arith.addf %28, %29 : vector<2x96xf32>
    %31 = vector.extract_strided_slice %27 {offsets = [0, 0], sizes = [2, 32], strides = [1, 1]} : vector<2x96xf32> to vector<2x32xf32>
    %32 = vector.extract_strided_slice %30 {offsets = [0, 0], sizes = [2, 32], strides = [1, 1]} : vector<2x96xf32> to vector<2x32xf32>
    %33 = arith.addf %31, %32 : vector<2x32xf32>
    %34 = arith.negf %33 : vector<2x32xf32>
    %35 = math.exp %34 : vector<2x32xf32>
    %cst_27 = arith.constant 1.000000e+00 : f32
    %36 = vector.broadcast %cst_27 : f32 to vector<2x32xf32>
    %37 = arith.addf %36, %35 : vector<2x32xf32>
    %38 = arith.divf %36, %37 : vector<2x32xf32>
    %39 = vector.extract_strided_slice %27 {offsets = [0, 32], sizes = [2, 32], strides = [1, 1]} : vector<2x96xf32> to vector<2x32xf32>
    %40 = vector.extract_strided_slice %30 {offsets = [0, 32], sizes = [2, 32], strides = [1, 1]} : vector<2x96xf32> to vector<2x32xf32>
    %41 = arith.addf %39, %40 : vector<2x32xf32>
    %42 = arith.negf %41 : vector<2x32xf32>
    %43 = math.exp %42 : vector<2x32xf32>
    %cst_28 = arith.constant 1.000000e+00 : f32
    %44 = vector.broadcast %cst_28 : f32 to vector<2x32xf32>
    %45 = arith.addf %44, %43 : vector<2x32xf32>
    %46 = arith.divf %44, %45 : vector<2x32xf32>
    %47 = vector.extract_strided_slice %27 {offsets = [0, 64], sizes = [2, 32], strides = [1, 1]} : vector<2x96xf32> to vector<2x32xf32>
    %48 = vector.extract_strided_slice %30 {offsets = [0, 64], sizes = [2, 32], strides = [1, 1]} : vector<2x96xf32> to vector<2x32xf32>
    %49 = arith.mulf %38, %48 : vector<2x32xf32>
    %50 = arith.addf %47, %49 : vector<2x32xf32>
    %51 = math.tanh %50 : vector<2x32xf32>
    %cst_29 = arith.constant 1.000000e+00 : f32
    %52 = vector.broadcast %cst_29 : f32 to vector<2x32xf32>
    %53 = arith.subf %52, %46 : vector<2x32xf32>
    %54 = arith.mulf %53, %51 : vector<2x32xf32>
    %55 = arith.mulf %46, %17 : vector<2x32xf32>
    %56 = arith.addf %54, %55 : vector<2x32xf32>
    %cst_30 = arith.constant dense<0.000000e+00> : vector<2x64xf32>
    %57 = tpu.matmul %56, %8, %cst_30 {dimension_numbers = #tpu.dot_dimension_numbers<[1], [0], [0], [1], [0, 0, 1, 1], [], []>} : vector<2x32xf32>, vector<32x64xf32>, vector<2x64xf32> -> vector<2x64xf32>
    %58 = vector.broadcast %3 : vector<1x64xf32> to vector<2x64xf32>
    %59 = arith.addf %57, %58 : vector<2x64xf32>
    %60 = arith.index_cast %c0_i32 : i32 to index
    %c0_31 = arith.constant 0 : index
    %c0_32 = arith.constant 0 : index
    %61 = vector.load %arg12[%60, %c0_31, %c0_32] : memref<4x2x64xf32, #tpu.memory_space<vmem>>, vector<1x2x64xf32>
    %62 = vector.shape_cast %61 : vector<1x2x64xf32> to vector<2x64xf32>
    %63 = vector.shape_cast %59 : vector<2x64xf32> to vector<1x2x64xf32>
    tpu.vector_store %arg12[%60, %c0_31, %c0_32], %63 {strides = array<i32>} : memref<4x2x64xf32, #tpu.memory_space<vmem>>, vector<1x2x64xf32>,
    %cst_33 = arith.constant 0.000000e+00 : f32
    %64 = vector.broadcast %cst_33 : f32 to vector<2x32xf32>
    %65 = arith.maximumf %56, %64 : vector<2x32xf32>
    %66 = vector.broadcast %9 : vector<1x32xf32> to vector<2x32xf32>
    %67 = arith.mulf %65, %66 : vector<2x32xf32>
    %cst_34 = arith.constant dense<0.000000e+00> : vector<2xf32>
    %68 = vector.multi_reduction <add>, %67, %cst_34 [1] : vector<2x32xf32> to vector<2xf32>
    %69 = vector.shape_cast %68 : vector<2xf32> to vector<2x1xf32>
    %70 = vector.broadcast %69 : vector<2x1xf32> to vector<2x16xf32>
    %71 = arith.addf %10, %70 : vector<2x16xf32>
    %72 = vector.broadcast %4 : vector<1x1xf32> to vector<2x16xf32>
    %73 = arith.addf %71, %72 : vector<2x16xf32>
    %74 = arith.negf %73 : vector<2x16xf32>
    %75 = math.exp %74 : vector<2x16xf32>
    %cst_35 = arith.constant 1.000000e+00 : f32
    %76 = vector.broadcast %cst_35 : f32 to vector<2x16xf32>
    %77 = arith.addf %76, %75 : vector<2x16xf32>
    %78 = arith.divf %76, %77 : vector<2x16xf32>
    %79 = arith.index_cast %c0_i32 : i32 to index
    %c0_36 = arith.constant 0 : index
    %c0_37 = arith.constant 0 : index
    %80 = vector.load %arg13[%79, %c0_36, %c0_37] : memref<4x2x16xf32, #tpu.memory_space<vmem>>, vector<1x2x16xf32>
    %81 = vector.shape_cast %80 : vector<1x2x16xf32> to vector<2x16xf32>
    %82 = vector.shape_cast %78 : vector<2x16xf32> to vector<1x2x16xf32>
    tpu.vector_store %arg13[%79, %c0_36, %c0_37], %82 {strides = array<i32>} : memref<4x2x16xf32, #tpu.memory_space<vmem>>, vector<1x2x16xf32>,
    %cst_38 = arith.constant dense<0xFF800000> : vector<2xf32>
    %83 = vector.multi_reduction <maximumf>, %59, %cst_38 [1] : vector<2x64xf32> to vector<2xf32>
    %84 = vector.shape_cast %83 : vector<2xf32> to vector<2x1xf32>
    %85 = vector.broadcast %84 : vector<2x1xf32> to vector<2x64xf32>
    %86 = arith.cmpf oeq, %59, %85 : vector<2x64xf32>
    %c64_i32 = arith.constant 64 : i32
    %87 = vector.broadcast %c64_i32 : i32 to vector<2x64xi32>
    %88 = arith.select %86, %11, %87 : vector<2x64xi1>, vector<2x64xi32>
    %cst_39 = arith.constant dense<2147483647> : vector<2xi32>
    %89 = vector.multi_reduction <minsi>, %88, %cst_39 [1] : vector<2x64xi32> to vector<2xi32>
    %90 = vector.shape_cast %89 : vector<2xi32> to vector<2x1xi32>
    %91 = vector.broadcast %90 : vector<2x1xi32> to vector<2x64xi32>
    %92 = arith.cmpi eq, %11, %91 : vector<2x64xi32>
    %93 = arith.extui %92 : vector<2x64xi1> to vector<2x64xi32>
    %94 = arith.sitofp %93 : vector<2x64xi32> to vector<2x64xf32>
    %c1_i32 = arith.constant 1 : i32
    %95 = arith.addi %c0_i32, %c1_i32 : i32
    %96 = arith.index_cast %95 : i32 to index
    %c0_40 = arith.constant 0 : index
    %c0_41 = arith.constant 0 : index
    %97 = vector.load %arg11[%96, %c0_40, %c0_41] : memref<5x2x1xi32, #tpu.memory_space<vmem>>, vector<1x2x1xi32>
    %98 = vector.shape_cast %97 : vector<1x2x1xi32> to vector<2x1xi32>
    %99 = vector.broadcast %98 : vector<2x1xi32> to vector<2x64xi32>
    %100 = arith.cmpi eq, %99, %11 : vector<2x64xi32>
    %101 = arith.extui %100 : vector<2x64xi1> to vector<2x64xi32>
    %102 = arith.sitofp %101 : vector<2x64xi32> to vector<2x64xf32>
    %103 = arith.index_cast %c0_i32 : i32 to index
    %104 = memref.load %arg1[%103] : memref<4xi32, #tpu.memory_space<smem>>
    %c0_i32_42 = arith.constant 0 : i32
    %105 = arith.cmpi sgt, %104, %c0_i32_42 : i32
    %106 = arith.extui %105 : i1 to i32
    %107 = arith.sitofp %106 : i32 to f32
    %108 = vector.broadcast %107 : f32 to vector<2x64xf32>
    %109 = arith.mulf %108, %102 : vector<2x64xf32>
    %cst_43 = arith.constant 1.000000e+00 : f32
    %110 = arith.subf %cst_43, %107 : f32
    %111 = vector.broadcast %110 : f32 to vector<2x64xf32>
    %112 = arith.mulf %111, %94 : vector<2x64xf32>
    %113 = arith.addf %109, %112 : vector<2x64xf32>
    %cst_44 = arith.constant dense<0.000000e+00> : vector<2x16xf32>
    %114 = tpu.matmul %113, %5, %cst_44 {dimension_numbers = #tpu.dot_dimension_numbers<[1], [0], [0], [1], [0, 0, 1, 1], [], []>} : vector<2x64xf32>, vector<64x16xf32>, vector<2x16xf32> -> vector<2x16xf32>
    %c1_i32_45 = arith.constant 1 : i32
    %cst_46 = arith.constant dense<0.000000e+00> : vector<2x96xf32>
    %115 = tpu.matmul %114, %6, %cst_46 {dimension_numbers = #tpu.dot_dimension_numbers<[1], [0], [0], [1], [0, 0, 1, 1], [], []>} : vector<2x16xf32>, vector<16x96xf32>, vector<2x96xf32> -> vector<2x96xf32>
    %116 = vector.broadcast %1 : vector<1x96xf32> to vector<2x96xf32>
    %117 = arith.addf %115, %116 : vector<2x96xf32>
    %cst_47 = arith.constant dense<0.000000e+00> : vector<2x96xf32>
    %118 = tpu.matmul %56, %7, %cst_47 {dimension_numbers = #tpu.dot_dimension_numbers<[1], [0], [0], [1], [0, 0, 1, 1], [], []>} : vector<2x32xf32>, vector<32x96xf32>, vector<2x96xf32> -> vector<2x96xf32>
    %119 = vector.broadcast %2 : vector<1x96xf32> to vector<2x96xf32>
    %120 = arith.addf %118, %119 : vector<2x96xf32>
    %121 = vector.extract_strided_slice %117 {offsets = [0, 0], sizes = [2, 32], strides = [1, 1]} : vector<2x96xf32> to vector<2x32xf32>
    %122 = vector.extract_strided_slice %120 {offsets = [0, 0], sizes = [2, 32], strides = [1, 1]} : vector<2x96xf32> to vector<2x32xf32>
    %123 = arith.addf %121, %122 : vector<2x32xf32>
    %124 = arith.negf %123 : vector<2x32xf32>
    %125 = math.exp %124 : vector<2x32xf32>
    %cst_48 = arith.constant 1.000000e+00 : f32
    %126 = vector.broadcast %cst_48 : f32 to vector<2x32xf32>
    %127 = arith.addf %126, %125 : vector<2x32xf32>
    %128 = arith.divf %126, %127 : vector<2x32xf32>
    %129 = vector.extract_strided_slice %117 {offsets = [0, 32], sizes = [2, 32], strides = [1, 1]} : vector<2x96xf32> to vector<2x32xf32>
    %130 = vector.extract_strided_slice %120 {offsets = [0, 32], sizes = [2, 32], strides = [1, 1]} : vector<2x96xf32> to vector<2x32xf32>
    %131 = arith.addf %129, %130 : vector<2x32xf32>
    %132 = arith.negf %131 : vector<2x32xf32>
    %133 = math.exp %132 : vector<2x32xf32>
    %cst_49 = arith.constant 1.000000e+00 : f32
    %134 = vector.broadcast %cst_49 : f32 to vector<2x32xf32>
    %135 = arith.addf %134, %133 : vector<2x32xf32>
    %136 = arith.divf %134, %135 : vector<2x32xf32>
    %137 = vector.extract_strided_slice %117 {offsets = [0, 64], sizes = [2, 32], strides = [1, 1]} : vector<2x96xf32> to vector<2x32xf32>
    %138 = vector.extract_strided_slice %120 {offsets = [0, 64], sizes = [2, 32], strides = [1, 1]} : vector<2x96xf32> to vector<2x32xf32>
    %139 = arith.mulf %128, %138 : vector<2x32xf32>
    %140 = arith.addf %137, %139 : vector<2x32xf32>
    %141 = math.tanh %140 : vector<2x32xf32>
    %cst_50 = arith.constant 1.000000e+00 : f32
    %142 = vector.broadcast %cst_50 : f32 to vector<2x32xf32>
    %143 = arith.subf %142, %136 : vector<2x32xf32>
    %144 = arith.mulf %143, %141 : vector<2x32xf32>
    %145 = arith.mulf %136, %56 : vector<2x32xf32>
    %146 = arith.addf %144, %145 : vector<2x32xf32>
    %cst_51 = arith.constant dense<0.000000e+00> : vector<2x64xf32>
    %147 = tpu.matmul %146, %8, %cst_51 {dimension_numbers = #tpu.dot_dimension_numbers<[1], [0], [0], [1], [0, 0, 1, 1], [], []>} : vector<2x32xf32>, vector<32x64xf32>, vector<2x64xf32> -> vector<2x64xf32>
    %148 = vector.broadcast %3 : vector<1x64xf32> to vector<2x64xf32>
    %149 = arith.addf %147, %148 : vector<2x64xf32>
    %150 = arith.index_cast %c1_i32_45 : i32 to index
    %c0_52 = arith.constant 0 : index
    %c0_53 = arith.constant 0 : index
    %151 = vector.load %arg12[%150, %c0_52, %c0_53] : memref<4x2x64xf32, #tpu.memory_space<vmem>>, vector<1x2x64xf32>
    %152 = vector.shape_cast %151 : vector<1x2x64xf32> to vector<2x64xf32>
    %153 = vector.shape_cast %149 : vector<2x64xf32> to vector<1x2x64xf32>
    tpu.vector_store %arg12[%150, %c0_52, %c0_53], %153 {strides = array<i32>} : memref<4x2x64xf32, #tpu.memory_space<vmem>>, vector<1x2x64xf32>,
    %cst_54 = arith.constant 0.000000e+00 : f32
    %154 = vector.broadcast %cst_54 : f32 to vector<2x32xf32>
    %155 = arith.maximumf %146, %154 : vector<2x32xf32>
    %156 = vector.broadcast %9 : vector<1x32xf32> to vector<2x32xf32>
    %157 = arith.mulf %155, %156 : vector<2x32xf32>
    %cst_55 = arith.constant dense<0.000000e+00> : vector<2xf32>
    %158 = vector.multi_reduction <add>, %157, %cst_55 [1] : vector<2x32xf32> to vector<2xf32>
    %159 = vector.shape_cast %158 : vector<2xf32> to vector<2x1xf32>
    %160 = vector.broadcast %159 : vector<2x1xf32> to vector<2x16xf32>
    %161 = arith.addf %10, %160 : vector<2x16xf32>
    %162 = vector.broadcast %4 : vector<1x1xf32> to vector<2x16xf32>
    %163 = arith.addf %161, %162 : vector<2x16xf32>
    %164 = arith.negf %163 : vector<2x16xf32>
    %165 = math.exp %164 : vector<2x16xf32>
    %cst_56 = arith.constant 1.000000e+00 : f32
    %166 = vector.broadcast %cst_56 : f32 to vector<2x16xf32>
    %167 = arith.addf %166, %165 : vector<2x16xf32>
    %168 = arith.divf %166, %167 : vector<2x16xf32>
    %169 = arith.index_cast %c1_i32_45 : i32 to index
    %c0_57 = arith.constant 0 : index
    %c0_58 = arith.constant 0 : index
    %170 = vector.load %arg13[%169, %c0_57, %c0_58] : memref<4x2x16xf32, #tpu.memory_space<vmem>>, vector<1x2x16xf32>
    %171 = vector.shape_cast %170 : vector<1x2x16xf32> to vector<2x16xf32>
    %172 = vector.shape_cast %168 : vector<2x16xf32> to vector<1x2x16xf32>
    tpu.vector_store %arg13[%169, %c0_57, %c0_58], %172 {strides = array<i32>} : memref<4x2x16xf32, #tpu.memory_space<vmem>>, vector<1x2x16xf32>,
    %cst_59 = arith.constant dense<0xFF800000> : vector<2xf32>
    %173 = vector.multi_reduction <maximumf>, %149, %cst_59 [1] : vector<2x64xf32> to vector<2xf32>
    %174 = vector.shape_cast %173 : vector<2xf32> to vector<2x1xf32>
    %175 = vector.broadcast %174 : vector<2x1xf32> to vector<2x64xf32>
    %176 = arith.cmpf oeq, %149, %175 : vector<2x64xf32>
    %c64_i32_60 = arith.constant 64 : i32
    %177 = vector.broadcast %c64_i32_60 : i32 to vector<2x64xi32>
    %178 = arith.select %176, %11, %177 : vector<2x64xi1>, vector<2x64xi32>
    %cst_61 = arith.constant dense<2147483647> : vector<2xi32>
    %179 = vector.multi_reduction <minsi>, %178, %cst_61 [1] : vector<2x64xi32> to vector<2xi32>
    %180 = vector.shape_cast %179 : vector<2xi32> to vector<2x1xi32>
    %181 = vector.broadcast %180 : vector<2x1xi32> to vector<2x64xi32>
    %182 = arith.cmpi eq, %11, %181 : vector<2x64xi32>
    %183 = arith.extui %182 : vector<2x64xi1> to vector<2x64xi32>
    %184 = arith.sitofp %183 : vector<2x64xi32> to vector<2x64xf32>
    %c1_i32_62 = arith.constant 1 : i32
    %185 = arith.addi %c1_i32_45, %c1_i32_62 : i32
    %186 = arith.index_cast %185 : i32 to index
    %c0_63 = arith.constant 0 : index
    %c0_64 = arith.constant 0 : index
    %187 = vector.load %arg11[%186, %c0_63, %c0_64] : memref<5x2x1xi32, #tpu.memory_space<vmem>>, vector<1x2x1xi32>
    %188 = vector.shape_cast %187 : vector<1x2x1xi32> to vector<2x1xi32>
    %189 = vector.broadcast %188 : vector<2x1xi32> to vector<2x64xi32>
    %190 = arith.cmpi eq, %189, %11 : vector<2x64xi32>
    %191 = arith.extui %190 : vector<2x64xi1> to vector<2x64xi32>
    %192 = arith.sitofp %191 : vector<2x64xi32> to vector<2x64xf32>
    %193 = arith.index_cast %c1_i32_45 : i32 to index
    %194 = memref.load %arg1[%193] : memref<4xi32, #tpu.memory_space<smem>>
    %c0_i32_65 = arith.constant 0 : i32
    %195 = arith.cmpi sgt, %194, %c0_i32_65 : i32
    %196 = arith.extui %195 : i1 to i32
    %197 = arith.sitofp %196 : i32 to f32
    %198 = vector.broadcast %197 : f32 to vector<2x64xf32>
    %199 = arith.mulf %198, %192 : vector<2x64xf32>
    %cst_66 = arith.constant 1.000000e+00 : f32
    %200 = arith.subf %cst_66, %197 : f32
    %201 = vector.broadcast %200 : f32 to vector<2x64xf32>
    %202 = arith.mulf %201, %184 : vector<2x64xf32>
    %203 = arith.addf %199, %202 : vector<2x64xf32>
    %cst_67 = arith.constant dense<0.000000e+00> : vector<2x16xf32>
    %204 = tpu.matmul %203, %5, %cst_67 {dimension_numbers = #tpu.dot_dimension_numbers<[1], [0], [0], [1], [0, 0, 1, 1], [], []>} : vector<2x64xf32>, vector<64x16xf32>, vector<2x16xf32> -> vector<2x16xf32>
    %c2_i32 = arith.constant 2 : i32
    %cst_68 = arith.constant dense<0.000000e+00> : vector<2x96xf32>
    %205 = tpu.matmul %204, %6, %cst_68 {dimension_numbers = #tpu.dot_dimension_numbers<[1], [0], [0], [1], [0, 0, 1, 1], [], []>} : vector<2x16xf32>, vector<16x96xf32>, vector<2x96xf32> -> vector<2x96xf32>
    %206 = vector.broadcast %1 : vector<1x96xf32> to vector<2x96xf32>
    %207 = arith.addf %205, %206 : vector<2x96xf32>
    %cst_69 = arith.constant dense<0.000000e+00> : vector<2x96xf32>
    %208 = tpu.matmul %146, %7, %cst_69 {dimension_numbers = #tpu.dot_dimension_numbers<[1], [0], [0], [1], [0, 0, 1, 1], [], []>} : vector<2x32xf32>, vector<32x96xf32>, vector<2x96xf32> -> vector<2x96xf32>
    %209 = vector.broadcast %2 : vector<1x96xf32> to vector<2x96xf32>
    %210 = arith.addf %208, %209 : vector<2x96xf32>
    %211 = vector.extract_strided_slice %207 {offsets = [0, 0], sizes = [2, 32], strides = [1, 1]} : vector<2x96xf32> to vector<2x32xf32>
    %212 = vector.extract_strided_slice %210 {offsets = [0, 0], sizes = [2, 32], strides = [1, 1]} : vector<2x96xf32> to vector<2x32xf32>
    %213 = arith.addf %211, %212 : vector<2x32xf32>
    %214 = arith.negf %213 : vector<2x32xf32>
    %215 = math.exp %214 : vector<2x32xf32>
    %cst_70 = arith.constant 1.000000e+00 : f32
    %216 = vector.broadcast %cst_70 : f32 to vector<2x32xf32>
    %217 = arith.addf %216, %215 : vector<2x32xf32>
    %218 = arith.divf %216, %217 : vector<2x32xf32>
    %219 = vector.extract_strided_slice %207 {offsets = [0, 32], sizes = [2, 32], strides = [1, 1]} : vector<2x96xf32> to vector<2x32xf32>
    %220 = vector.extract_strided_slice %210 {offsets = [0, 32], sizes = [2, 32], strides = [1, 1]} : vector<2x96xf32> to vector<2x32xf32>
    %221 = arith.addf %219, %220 : vector<2x32xf32>
    %222 = arith.negf %221 : vector<2x32xf32>
    %223 = math.exp %222 : vector<2x32xf32>
    %cst_71 = arith.constant 1.000000e+00 : f32
    %224 = vector.broadcast %cst_71 : f32 to vector<2x32xf32>
    %225 = arith.addf %224, %223 : vector<2x32xf32>
    %226 = arith.divf %224, %225 : vector<2x32xf32>
    %227 = vector.extract_strided_slice %207 {offsets = [0, 64], sizes = [2, 32], strides = [1, 1]} : vector<2x96xf32> to vector<2x32xf32>
    %228 = vector.extract_strided_slice %210 {offsets = [0, 64], sizes = [2, 32], strides = [1, 1]} : vector<2x96xf32> to vector<2x32xf32>
    %229 = arith.mulf %218, %228 : vector<2x32xf32>
    %230 = arith.addf %227, %229 : vector<2x32xf32>
    %231 = math.tanh %230 : vector<2x32xf32>
    %cst_72 = arith.constant 1.000000e+00 : f32
    %232 = vector.broadcast %cst_72 : f32 to vector<2x32xf32>
    %233 = arith.subf %232, %226 : vector<2x32xf32>
    %234 = arith.mulf %233, %231 : vector<2x32xf32>
    %235 = arith.mulf %226, %146 : vector<2x32xf32>
    %236 = arith.addf %234, %235 : vector<2x32xf32>
    %cst_73 = arith.constant dense<0.000000e+00> : vector<2x64xf32>
    %237 = tpu.matmul %236, %8, %cst_73 {dimension_numbers = #tpu.dot_dimension_numbers<[1], [0], [0], [1], [0, 0, 1, 1], [], []>} : vector<2x32xf32>, vector<32x64xf32>, vector<2x64xf32> -> vector<2x64xf32>
    %238 = vector.broadcast %3 : vector<1x64xf32> to vector<2x64xf32>
    %239 = arith.addf %237, %238 : vector<2x64xf32>
    %240 = arith.index_cast %c2_i32 : i32 to index
    %c0_74 = arith.constant 0 : index
    %c0_75 = arith.constant 0 : index
    %241 = vector.load %arg12[%240, %c0_74, %c0_75] : memref<4x2x64xf32, #tpu.memory_space<vmem>>, vector<1x2x64xf32>
    %242 = vector.shape_cast %241 : vector<1x2x64xf32> to vector<2x64xf32>
    %243 = vector.shape_cast %239 : vector<2x64xf32> to vector<1x2x64xf32>
    tpu.vector_store %arg12[%240, %c0_74, %c0_75], %243 {strides = array<i32>} : memref<4x2x64xf32, #tpu.memory_space<vmem>>, vector<1x2x64xf32>,
    %cst_76 = arith.constant 0.000000e+00 : f32
    %244 = vector.broadcast %cst_76 : f32 to vector<2x32xf32>
    %245 = arith.maximumf %236, %244 : vector<2x32xf32>
    %246 = vector.broadcast %9 : vector<1x32xf32> to vector<2x32xf32>
    %247 = arith.mulf %245, %246 : vector<2x32xf32>
    %cst_77 = arith.constant dense<0.000000e+00> : vector<2xf32>
    %248 = vector.multi_reduction <add>, %247, %cst_77 [1] : vector<2x32xf32> to vector<2xf32>
    %249 = vector.shape_cast %248 : vector<2xf32> to vector<2x1xf32>
    %250 = vector.broadcast %249 : vector<2x1xf32> to vector<2x16xf32>
    %251 = arith.addf %10, %250 : vector<2x16xf32>
    %252 = vector.broadcast %4 : vector<1x1xf32> to vector<2x16xf32>
    %253 = arith.addf %251, %252 : vector<2x16xf32>
    %254 = arith.negf %253 : vector<2x16xf32>
    %255 = math.exp %254 : vector<2x16xf32>
    %cst_78 = arith.constant 1.000000e+00 : f32
    %256 = vector.broadcast %cst_78 : f32 to vector<2x16xf32>
    %257 = arith.addf %256, %255 : vector<2x16xf32>
    %258 = arith.divf %256, %257 : vector<2x16xf32>
    %259 = arith.index_cast %c2_i32 : i32 to index
    %c0_79 = arith.constant 0 : index
    %c0_80 = arith.constant 0 : index
    %260 = vector.load %arg13[%259, %c0_79, %c0_80] : memref<4x2x16xf32, #tpu.memory_space<vmem>>, vector<1x2x16xf32>
    %261 = vector.shape_cast %260 : vector<1x2x16xf32> to vector<2x16xf32>
    %262 = vector.shape_cast %258 : vector<2x16xf32> to vector<1x2x16xf32>
    tpu.vector_store %arg13[%259, %c0_79, %c0_80], %262 {strides = array<i32>} : memref<4x2x16xf32, #tpu.memory_space<vmem>>, vector<1x2x16xf32>,
    %cst_81 = arith.constant dense<0xFF800000> : vector<2xf32>
    %263 = vector.multi_reduction <maximumf>, %239, %cst_81 [1] : vector<2x64xf32> to vector<2xf32>
    %264 = vector.shape_cast %263 : vector<2xf32> to vector<2x1xf32>
    %265 = vector.broadcast %264 : vector<2x1xf32> to vector<2x64xf32>
    %266 = arith.cmpf oeq, %239, %265 : vector<2x64xf32>
    %c64_i32_82 = arith.constant 64 : i32
    %267 = vector.broadcast %c64_i32_82 : i32 to vector<2x64xi32>
    %268 = arith.select %266, %11, %267 : vector<2x64xi1>, vector<2x64xi32>
    %cst_83 = arith.constant dense<2147483647> : vector<2xi32>
    %269 = vector.multi_reduction <minsi>, %268, %cst_83 [1] : vector<2x64xi32> to vector<2xi32>
    %270 = vector.shape_cast %269 : vector<2xi32> to vector<2x1xi32>
    %271 = vector.broadcast %270 : vector<2x1xi32> to vector<2x64xi32>
    %272 = arith.cmpi eq, %11, %271 : vector<2x64xi32>
    %273 = arith.extui %272 : vector<2x64xi1> to vector<2x64xi32>
    %274 = arith.sitofp %273 : vector<2x64xi32> to vector<2x64xf32>
    %c1_i32_84 = arith.constant 1 : i32
    %275 = arith.addi %c2_i32, %c1_i32_84 : i32
    %276 = arith.index_cast %275 : i32 to index
    %c0_85 = arith.constant 0 : index
    %c0_86 = arith.constant 0 : index
    %277 = vector.load %arg11[%276, %c0_85, %c0_86] : memref<5x2x1xi32, #tpu.memory_space<vmem>>, vector<1x2x1xi32>
    %278 = vector.shape_cast %277 : vector<1x2x1xi32> to vector<2x1xi32>
    %279 = vector.broadcast %278 : vector<2x1xi32> to vector<2x64xi32>
    %280 = arith.cmpi eq, %279, %11 : vector<2x64xi32>
    %281 = arith.extui %280 : vector<2x64xi1> to vector<2x64xi32>
    %282 = arith.sitofp %281 : vector<2x64xi32> to vector<2x64xf32>
    %283 = arith.index_cast %c2_i32 : i32 to index
    %284 = memref.load %arg1[%283] : memref<4xi32, #tpu.memory_space<smem>>
    %c0_i32_87 = arith.constant 0 : i32
    %285 = arith.cmpi sgt, %284, %c0_i32_87 : i32
    %286 = arith.extui %285 : i1 to i32
    %287 = arith.sitofp %286 : i32 to f32
    %288 = vector.broadcast %287 : f32 to vector<2x64xf32>
    %289 = arith.mulf %288, %282 : vector<2x64xf32>
    %cst_88 = arith.constant 1.000000e+00 : f32
    %290 = arith.subf %cst_88, %287 : f32
    %291 = vector.broadcast %290 : f32 to vector<2x64xf32>
    %292 = arith.mulf %291, %274 : vector<2x64xf32>
    %293 = arith.addf %289, %292 : vector<2x64xf32>
    %cst_89 = arith.constant dense<0.000000e+00> : vector<2x16xf32>
    %294 = tpu.matmul %293, %5, %cst_89 {dimension_numbers = #tpu.dot_dimension_numbers<[1], [0], [0], [1], [0, 0, 1, 1], [], []>} : vector<2x64xf32>, vector<64x16xf32>, vector<2x16xf32> -> vector<2x16xf32>
    %c3_i32 = arith.constant 3 : i32
    %cst_90 = arith.constant dense<0.000000e+00> : vector<2x96xf32>
    %295 = tpu.matmul %294, %6, %cst_90 {dimension_numbers = #tpu.dot_dimension_numbers<[1], [0], [0], [1], [0, 0, 1, 1], [], []>} : vector<2x16xf32>, vector<16x96xf32>, vector<2x96xf32> -> vector<2x96xf32>
    %296 = vector.broadcast %1 : vector<1x96xf32> to vector<2x96xf32>
    %297 = arith.addf %295, %296 : vector<2x96xf32>
    %cst_91 = arith.constant dense<0.000000e+00> : vector<2x96xf32>
    %298 = tpu.matmul %236, %7, %cst_91 {dimension_numbers = #tpu.dot_dimension_numbers<[1], [0], [0], [1], [0, 0, 1, 1], [], []>} : vector<2x32xf32>, vector<32x96xf32>, vector<2x96xf32> -> vector<2x96xf32>
    %299 = vector.broadcast %2 : vector<1x96xf32> to vector<2x96xf32>
    %300 = arith.addf %298, %299 : vector<2x96xf32>
    %301 = vector.extract_strided_slice %297 {offsets = [0, 0], sizes = [2, 32], strides = [1, 1]} : vector<2x96xf32> to vector<2x32xf32>
    %302 = vector.extract_strided_slice %300 {offsets = [0, 0], sizes = [2, 32], strides = [1, 1]} : vector<2x96xf32> to vector<2x32xf32>
    %303 = arith.addf %301, %302 : vector<2x32xf32>
    %304 = arith.negf %303 : vector<2x32xf32>
    %305 = math.exp %304 : vector<2x32xf32>
    %cst_92 = arith.constant 1.000000e+00 : f32
    %306 = vector.broadcast %cst_92 : f32 to vector<2x32xf32>
    %307 = arith.addf %306, %305 : vector<2x32xf32>
    %308 = arith.divf %306, %307 : vector<2x32xf32>
    %309 = vector.extract_strided_slice %297 {offsets = [0, 32], sizes = [2, 32], strides = [1, 1]} : vector<2x96xf32> to vector<2x32xf32>
    %310 = vector.extract_strided_slice %300 {offsets = [0, 32], sizes = [2, 32], strides = [1, 1]} : vector<2x96xf32> to vector<2x32xf32>
    %311 = arith.addf %309, %310 : vector<2x32xf32>
    %312 = arith.negf %311 : vector<2x32xf32>
    %313 = math.exp %312 : vector<2x32xf32>
    %cst_93 = arith.constant 1.000000e+00 : f32
    %314 = vector.broadcast %cst_93 : f32 to vector<2x32xf32>
    %315 = arith.addf %314, %313 : vector<2x32xf32>
    %316 = arith.divf %314, %315 : vector<2x32xf32>
    %317 = vector.extract_strided_slice %297 {offsets = [0, 64], sizes = [2, 32], strides = [1, 1]} : vector<2x96xf32> to vector<2x32xf32>
    %318 = vector.extract_strided_slice %300 {offsets = [0, 64], sizes = [2, 32], strides = [1, 1]} : vector<2x96xf32> to vector<2x32xf32>
    %319 = arith.mulf %308, %318 : vector<2x32xf32>
    %320 = arith.addf %317, %319 : vector<2x32xf32>
    %321 = math.tanh %320 : vector<2x32xf32>
    %cst_94 = arith.constant 1.000000e+00 : f32
    %322 = vector.broadcast %cst_94 : f32 to vector<2x32xf32>
    %323 = arith.subf %322, %316 : vector<2x32xf32>
    %324 = arith.mulf %323, %321 : vector<2x32xf32>
    %325 = arith.mulf %316, %236 : vector<2x32xf32>
    %326 = arith.addf %324, %325 : vector<2x32xf32>
    %cst_95 = arith.constant dense<0.000000e+00> : vector<2x64xf32>
    %327 = tpu.matmul %326, %8, %cst_95 {dimension_numbers = #tpu.dot_dimension_numbers<[1], [0], [0], [1], [0, 0, 1, 1], [], []>} : vector<2x32xf32>, vector<32x64xf32>, vector<2x64xf32> -> vector<2x64xf32>
    %328 = vector.broadcast %3 : vector<1x64xf32> to vector<2x64xf32>
    %329 = arith.addf %327, %328 : vector<2x64xf32>
    %330 = arith.index_cast %c3_i32 : i32 to index
    %c0_96 = arith.constant 0 : index
    %c0_97 = arith.constant 0 : index
    %331 = vector.load %arg12[%330, %c0_96, %c0_97] : memref<4x2x64xf32, #tpu.memory_space<vmem>>, vector<1x2x64xf32>
    %332 = vector.shape_cast %331 : vector<1x2x64xf32> to vector<2x64xf32>
    %333 = vector.shape_cast %329 : vector<2x64xf32> to vector<1x2x64xf32>
    tpu.vector_store %arg12[%330, %c0_96, %c0_97], %333 {strides = array<i32>} : memref<4x2x64xf32, #tpu.memory_space<vmem>>, vector<1x2x64xf32>,
    %cst_98 = arith.constant 0.000000e+00 : f32
    %334 = vector.broadcast %cst_98 : f32 to vector<2x32xf32>
    %335 = arith.maximumf %326, %334 : vector<2x32xf32>
    %336 = vector.broadcast %9 : vector<1x32xf32> to vector<2x32xf32>
    %337 = arith.mulf %335, %336 : vector<2x32xf32>
    %cst_99 = arith.constant dense<0.000000e+00> : vector<2xf32>
    %338 = vector.multi_reduction <add>, %337, %cst_99 [1] : vector<2x32xf32> to vector<2xf32>
    %339 = vector.shape_cast %338 : vector<2xf32> to vector<2x1xf32>
    %340 = vector.broadcast %339 : vector<2x1xf32> to vector<2x16xf32>
    %341 = arith.addf %10, %340 : vector<2x16xf32>
    %342 = vector.broadcast %4 : vector<1x1xf32> to vector<2x16xf32>
    %343 = arith.addf %341, %342 : vector<2x16xf32>
    %344 = arith.negf %343 : vector<2x16xf32>
    %345 = math.exp %344 : vector<2x16xf32>
    %cst_100 = arith.constant 1.000000e+00 : f32
    %346 = vector.broadcast %cst_100 : f32 to vector<2x16xf32>
    %347 = arith.addf %346, %345 : vector<2x16xf32>
    %348 = arith.divf %346, %347 : vector<2x16xf32>
    %349 = arith.index_cast %c3_i32 : i32 to index
    %c0_101 = arith.constant 0 : index
    %c0_102 = arith.constant 0 : index
    %350 = vector.load %arg13[%349, %c0_101, %c0_102] : memref<4x2x16xf32, #tpu.memory_space<vmem>>, vector<1x2x16xf32>
    %351 = vector.shape_cast %350 : vector<1x2x16xf32> to vector<2x16xf32>
    %352 = vector.shape_cast %348 : vector<2x16xf32> to vector<1x2x16xf32>
    tpu.vector_store %arg13[%349, %c0_101, %c0_102], %352 {strides = array<i32>} : memref<4x2x16xf32, #tpu.memory_space<vmem>>, vector<1x2x16xf32>,
    %cst_103 = arith.constant dense<0xFF800000> : vector<2xf32>
    %353 = vector.multi_reduction <maximumf>, %329, %cst_103 [1] : vector<2x64xf32> to vector<2xf32>
    %354 = vector.shape_cast %353 : vector<2xf32> to vector<2x1xf32>
    %355 = vector.broadcast %354 : vector<2x1xf32> to vector<2x64xf32>
    %356 = arith.cmpf oeq, %329, %355 : vector<2x64xf32>
    %c64_i32_104 = arith.constant 64 : i32
    %357 = vector.broadcast %c64_i32_104 : i32 to vector<2x64xi32>
    %358 = arith.select %356, %11, %357 : vector<2x64xi1>, vector<2x64xi32>
    %cst_105 = arith.constant dense<2147483647> : vector<2xi32>
    %359 = vector.multi_reduction <minsi>, %358, %cst_105 [1] : vector<2x64xi32> to vector<2xi32>
    %360 = vector.shape_cast %359 : vector<2xi32> to vector<2x1xi32>
    %361 = vector.broadcast %360 : vector<2x1xi32> to vector<2x64xi32>
    %362 = arith.cmpi eq, %11, %361 : vector<2x64xi32>
    %363 = arith.extui %362 : vector<2x64xi1> to vector<2x64xi32>
    %364 = arith.sitofp %363 : vector<2x64xi32> to vector<2x64xf32>
    %c1_i32_106 = arith.constant 1 : i32
    %365 = arith.addi %c3_i32, %c1_i32_106 : i32
    %366 = arith.index_cast %365 : i32 to index
    %c0_107 = arith.constant 0 : index
    %c0_108 = arith.constant 0 : index
    %367 = vector.load %arg11[%366, %c0_107, %c0_108] : memref<5x2x1xi32, #tpu.memory_space<vmem>>, vector<1x2x1xi32>
    %368 = vector.shape_cast %367 : vector<1x2x1xi32> to vector<2x1xi32>
    %369 = vector.broadcast %368 : vector<2x1xi32> to vector<2x64xi32>
    %370 = arith.cmpi eq, %369, %11 : vector<2x64xi32>
    %371 = arith.extui %370 : vector<2x64xi1> to vector<2x64xi32>
    %372 = arith.sitofp %371 : vector<2x64xi32> to vector<2x64xf32>
    %373 = arith.index_cast %c3_i32 : i32 to index
    %374 = memref.load %arg1[%373] : memref<4xi32, #tpu.memory_space<smem>>
    %c0_i32_109 = arith.constant 0 : i32
    %375 = arith.cmpi sgt, %374, %c0_i32_109 : i32
    %376 = arith.extui %375 : i1 to i32
    %377 = arith.sitofp %376 : i32 to f32
    %378 = vector.broadcast %377 : f32 to vector<2x64xf32>
    %379 = arith.mulf %378, %372 : vector<2x64xf32>
    %cst_110 = arith.constant 1.000000e+00 : f32
    %380 = arith.subf %cst_110, %377 : f32
    %381 = vector.broadcast %380 : f32 to vector<2x64xf32>
    %382 = arith.mulf %381, %364 : vector<2x64xf32>
    %383 = arith.addf %379, %382 : vector<2x64xf32>
    %cst_111 = arith.constant dense<0.000000e+00> : vector<2x16xf32>
    %384 = tpu.matmul %383, %5, %cst_111 {dimension_numbers = #tpu.dot_dimension_numbers<[1], [0], [0], [1], [0, 0, 1, 1], [], []>} : vector<2x64xf32>, vector<64x16xf32>, vector<2x16xf32> -> vector<2x16xf32>
    %c4_i32 = arith.constant 4 : i32
    return
  }
  func.func @transform_0(%arg0: i32, %arg1: memref<4xi32, #tpu.memory_space<smem>>) -> (i32, i32) {
    %c0_i32 = arith.constant 0 : i32
    %c0_i32_0 = arith.constant 0 : i32
    %c0_i32_1 = arith.constant 0 : i32
    return %c0_i32, %c0_i32_0 : i32, i32
  }
  func.func @transform_1(%arg0: i32, %arg1: memref<4xi32, #tpu.memory_space<smem>>) -> (i32, i32) {
    %c0_i32 = arith.constant 0 : i32
    %c0_i32_0 = arith.constant 0 : i32
    %c0_i32_1 = arith.constant 0 : i32
    return %c0_i32, %c0_i32_0 : i32, i32
  }
  func.func @transform_2(%arg0: i32, %arg1: memref<4xi32, #tpu.memory_space<smem>>) -> (i32, i32) {
    %c0_i32 = arith.constant 0 : i32
    %c0_i32_0 = arith.constant 0 : i32
    %c0_i32_1 = arith.constant 0 : i32
    return %c0_i32, %c0_i32_0 : i32, i32
  }
  func.func @transform_3(%arg0: i32, %arg1: memref<4xi32, #tpu.memory_space<smem>>) -> (i32, i32) {
    %c0_i32 = arith.constant 0 : i32
    %c0_i32_0 = arith.constant 0 : i32
    %c0_i32_1 = arith.constant 0 : i32
    return %c0_i32, %c0_i32_0 : i32, i32
  }
  func.func @transform_4(%arg0: i32, %arg1: memref<4xi32, #tpu.memory_space<smem>>) -> (i32, i32) {
    %c0_i32 = arith.constant 0 : i32
    %c0_i32_0 = arith.constant 0 : i32
    %c0_i32_1 = arith.constant 0 : i32
    return %c0_i32, %c0_i32_0 : i32, i32
  }
  func.func @transform_5(%arg0: i32, %arg1: memref<4xi32, #tpu.memory_space<smem>>) -> (i32, i32) {
    %c0_i32 = arith.constant 0 : i32
    %c0_i32_0 = arith.constant 0 : i32
    %c0_i32_1 = arith.constant 0 : i32
    return %c0_i32, %c0_i32_0 : i32, i32
  }
  func.func @transform_6(%arg0: i32, %arg1: memref<4xi32, #tpu.memory_space<smem>>) -> (i32, i32) {
    %c0_i32 = arith.constant 0 : i32
    %c0_i32_0 = arith.constant 0 : i32
    %c0_i32_1 = arith.constant 0 : i32
    return %c0_i32, %c0_i32_0 : i32, i32
  }
  func.func @transform_7(%arg0: i32, %arg1: memref<4xi32, #tpu.memory_space<smem>>) -> (i32, i32) {
    %c0_i32 = arith.constant 0 : i32
    %c0_i32_0 = arith.constant 0 : i32
    %c0_i32_1 = arith.constant 0 : i32
    return %c0_i32, %c0_i32_0 : i32, i32
  }
  func.func @transform_8(%arg0: i32, %arg1: memref<4xi32, #tpu.memory_space<smem>>) -> (i32, i32) {
    %c0_i32 = arith.constant 0 : i32
    %c0_i32_0 = arith.constant 0 : i32
    %c0_i32_1 = arith.constant 0 : i32
    return %c0_i32, %c0_i32_0 : i32, i32
  }
  func.func @transform_9(%arg0: i32, %arg1: memref<4xi32, #tpu.memory_space<smem>>) -> (i32, i32, i32) {
    %c0_i32 = arith.constant 0 : i32
    %c0_i32_0 = arith.constant 0 : i32
    %c0_i32_1 = arith.constant 0 : i32
    %c0_i32_2 = arith.constant 0 : i32
    return %c0_i32, %c0_i32_0, %c0_i32_1 : i32, i32, i32
  }
  func.func @transform_10(%arg0: i32, %arg1: memref<4xi32, #tpu.memory_space<smem>>) -> (i32, i32, i32) {
    %c0_i32 = arith.constant 0 : i32
    %c0_i32_0 = arith.constant 0 : i32
    %c0_i32_1 = arith.constant 0 : i32
    %c0_i32_2 = arith.constant 0 : i32
    return %c0_i32, %c0_i32_0, %c0_i32_1 : i32, i32, i32
  }
  func.func @transform_11(%arg0: i32, %arg1: memref<4xi32, #tpu.memory_space<smem>>) -> (i32, i32, i32) {
    %c0_i32 = arith.constant 0 : i32
    %c0_i32_0 = arith.constant 0 : i32
    %c0_i32_1 = arith.constant 0 : i32
    %c0_i32_2 = arith.constant 0 : i32
    return %c0_i32, %c0_i32_0, %c0_i32_1 : i32, i32, i32
  }
}

module attributes {stable_mosaic.version = 11 : i64} {
  func.func @_encoder_kernel(%arg0: i32, %arg1: memref<1x8x2x1xi32, #tpu.memory_space<vmem>>, %arg2: memref<64x16xf32, #tpu.memory_space<vmem>>, %arg3: memref<1x16x96xf32, #tpu.memory_space<vmem>>, %arg4: memref<1x32x96xf32, #tpu.memory_space<vmem>>, %arg5: memref<1x1x192xf32, #tpu.memory_space<vmem>>, %arg6: memref<1x8x2x32xf32, #tpu.memory_space<vmem>>, %arg7: memref<1x2x32xf32, #tpu.memory_space<vmem>>) attributes {dimension_semantics = [#tpu.dimension_semantics<parallel>], iteration_bounds = array<i64: 2>, scalar_prefetch = 0 : i64, scratch_operands = 0 : i64, tpu.core_type = #tpu.core_type<tc>, window_params = [{transform_indices = @transform_0, window_bounds = array<i64: 1, 8, 2, 1>}, {pipeline_mode = #tpu.pipeline_mode<synchronous>, transform_indices = @transform_1, window_bounds = array<i64: 64, 16>}, {transform_indices = @transform_2, window_bounds = array<i64: 1, 16, 96>}, {transform_indices = @transform_3, window_bounds = array<i64: 1, 32, 96>}, {transform_indices = @transform_4, window_bounds = array<i64: 1, 1, 192>}, {transform_indices = @transform_5, window_bounds = array<i64: 1, 8, 2, 32>}, {transform_indices = @transform_6, window_bounds = array<i64: 1, 2, 32>}]} {
    %c0 = arith.constant 0 : index
    %c0_0 = arith.constant 0 : index
    %0 = vector.load %arg2[%c0, %c0_0] : memref<64x16xf32, #tpu.memory_space<vmem>>, vector<64x16xf32>
    %c0_1 = arith.constant 0 : index
    %c0_2 = arith.constant 0 : index
    %c0_3 = arith.constant 0 : index
    %1 = vector.load %arg3[%c0_1, %c0_2, %c0_3] : memref<1x16x96xf32, #tpu.memory_space<vmem>>, vector<1x16x96xf32>
    %2 = vector.shape_cast %1 : vector<1x16x96xf32> to vector<16x96xf32>
    %c0_4 = arith.constant 0 : index
    %c0_5 = arith.constant 0 : index
    %c0_6 = arith.constant 0 : index
    %3 = vector.load %arg4[%c0_4, %c0_5, %c0_6] : memref<1x32x96xf32, #tpu.memory_space<vmem>>, vector<1x32x96xf32>
    %4 = vector.shape_cast %3 : vector<1x32x96xf32> to vector<32x96xf32>
    %c0_7 = arith.constant 0 : index
    %c0_8 = arith.constant 0 : index
    %c0_9 = arith.constant 0 : index
    %5 = vector.load %arg5[%c0_7, %c0_8, %c0_9] : memref<1x1x192xf32, #tpu.memory_space<vmem>>, vector<1x1x96xf32>
    %6 = vector.shape_cast %5 : vector<1x1x96xf32> to vector<1x96xf32>
    %c0_10 = arith.constant 0 : index
    %c0_11 = arith.constant 0 : index
    %c96 = arith.constant 96 : index
    %7 = vector.load %arg5[%c0_10, %c0_11, %c96] : memref<1x1x192xf32, #tpu.memory_space<vmem>>, vector<1x1x96xf32>
    %8 = vector.shape_cast %7 : vector<1x1x96xf32> to vector<1x96xf32>
    %9 = tpu.iota {dimensions = array<i32: 1>} : vector<2x64xi32>
    %cst = arith.constant 0.000000e+00 : f32
    %10 = vector.broadcast %cst : f32 to vector<2x32xf32>
    %c0_i32 = arith.constant 0 : i32
    %c0_12 = arith.constant 0 : index
    %11 = arith.index_cast %c0_i32 : i32 to index
    %c0_13 = arith.constant 0 : index
    %c0_14 = arith.constant 0 : index
    %12 = vector.load %arg1[%c0_12, %11, %c0_13, %c0_14] : memref<1x8x2x1xi32, #tpu.memory_space<vmem>>, vector<1x1x2x1xi32>
    %13 = vector.shape_cast %12 : vector<1x1x2x1xi32> to vector<2x1xi32>
    %14 = vector.broadcast %13 : vector<2x1xi32> to vector<2x64xi32>
    %15 = arith.cmpi eq, %14, %9 : vector<2x64xi32>
    %16 = arith.extui %15 : vector<2x64xi1> to vector<2x64xi32>
    %17 = arith.sitofp %16 : vector<2x64xi32> to vector<2x64xf32>
    %cst_15 = arith.constant dense<0.000000e+00> : vector<2x16xf32>
    %18 = tpu.matmul %17, %0, %cst_15 {dimension_numbers = #tpu.dot_dimension_numbers<[1], [0], [0], [1], [0, 0, 1, 1], [], []>} : vector<2x64xf32>, vector<64x16xf32>, vector<2x16xf32> -> vector<2x16xf32>
    %cst_16 = arith.constant dense<0.000000e+00> : vector<2x96xf32>
    %19 = tpu.matmul %18, %2, %cst_16 {dimension_numbers = #tpu.dot_dimension_numbers<[1], [0], [0], [1], [0, 0, 1, 1], [], []>} : vector<2x16xf32>, vector<16x96xf32>, vector<2x96xf32> -> vector<2x96xf32>
    %20 = vector.broadcast %6 : vector<1x96xf32> to vector<2x96xf32>
    %21 = arith.addf %19, %20 : vector<2x96xf32>
    %cst_17 = arith.constant dense<0.000000e+00> : vector<2x96xf32>
    %22 = tpu.matmul %10, %4, %cst_17 {dimension_numbers = #tpu.dot_dimension_numbers<[1], [0], [0], [1], [0, 0, 1, 1], [], []>} : vector<2x32xf32>, vector<32x96xf32>, vector<2x96xf32> -> vector<2x96xf32>
    %23 = vector.broadcast %8 : vector<1x96xf32> to vector<2x96xf32>
    %24 = arith.addf %22, %23 : vector<2x96xf32>
    %25 = vector.extract_strided_slice %21 {offsets = [0, 0], sizes = [2, 32], strides = [1, 1]} : vector<2x96xf32> to vector<2x32xf32>
    %26 = vector.extract_strided_slice %24 {offsets = [0, 0], sizes = [2, 32], strides = [1, 1]} : vector<2x96xf32> to vector<2x32xf32>
    %27 = arith.addf %25, %26 : vector<2x32xf32>
    %28 = arith.negf %27 : vector<2x32xf32>
    %29 = math.exp %28 : vector<2x32xf32>
    %cst_18 = arith.constant 1.000000e+00 : f32
    %30 = vector.broadcast %cst_18 : f32 to vector<2x32xf32>
    %31 = arith.addf %30, %29 : vector<2x32xf32>
    %32 = arith.divf %30, %31 : vector<2x32xf32>
    %33 = vector.extract_strided_slice %21 {offsets = [0, 32], sizes = [2, 32], strides = [1, 1]} : vector<2x96xf32> to vector<2x32xf32>
    %34 = vector.extract_strided_slice %24 {offsets = [0, 32], sizes = [2, 32], strides = [1, 1]} : vector<2x96xf32> to vector<2x32xf32>
    %35 = arith.addf %33, %34 : vector<2x32xf32>
    %36 = arith.negf %35 : vector<2x32xf32>
    %37 = math.exp %36 : vector<2x32xf32>
    %cst_19 = arith.constant 1.000000e+00 : f32
    %38 = vector.broadcast %cst_19 : f32 to vector<2x32xf32>
    %39 = arith.addf %38, %37 : vector<2x32xf32>
    %40 = arith.divf %38, %39 : vector<2x32xf32>
    %41 = vector.extract_strided_slice %21 {offsets = [0, 64], sizes = [2, 32], strides = [1, 1]} : vector<2x96xf32> to vector<2x32xf32>
    %42 = vector.extract_strided_slice %24 {offsets = [0, 64], sizes = [2, 32], strides = [1, 1]} : vector<2x96xf32> to vector<2x32xf32>
    %43 = arith.mulf %32, %42 : vector<2x32xf32>
    %44 = arith.addf %41, %43 : vector<2x32xf32>
    %45 = math.tanh %44 : vector<2x32xf32>
    %cst_20 = arith.constant 1.000000e+00 : f32
    %46 = vector.broadcast %cst_20 : f32 to vector<2x32xf32>
    %47 = arith.subf %46, %40 : vector<2x32xf32>
    %48 = arith.mulf %47, %45 : vector<2x32xf32>
    %49 = arith.mulf %40, %10 : vector<2x32xf32>
    %50 = arith.addf %48, %49 : vector<2x32xf32>
    %c0_21 = arith.constant 0 : index
    %51 = arith.index_cast %c0_i32 : i32 to index
    %c0_22 = arith.constant 0 : index
    %c0_23 = arith.constant 0 : index
    %52 = vector.load %arg6[%c0_21, %51, %c0_22, %c0_23] : memref<1x8x2x32xf32, #tpu.memory_space<vmem>>, vector<1x1x2x32xf32>
    %53 = vector.shape_cast %52 : vector<1x1x2x32xf32> to vector<2x32xf32>
    %54 = vector.shape_cast %50 : vector<2x32xf32> to vector<1x1x2x32xf32>
    tpu.vector_store %arg6[%c0_21, %51, %c0_22, %c0_23], %54 {strides = array<i32>} : memref<1x8x2x32xf32, #tpu.memory_space<vmem>>, vector<1x1x2x32xf32>,
    %c1_i32 = arith.constant 1 : i32
    %c0_24 = arith.constant 0 : index
    %55 = arith.index_cast %c1_i32 : i32 to index
    %c0_25 = arith.constant 0 : index
    %c0_26 = arith.constant 0 : index
    %56 = vector.load %arg1[%c0_24, %55, %c0_25, %c0_26] : memref<1x8x2x1xi32, #tpu.memory_space<vmem>>, vector<1x1x2x1xi32>
    %57 = vector.shape_cast %56 : vector<1x1x2x1xi32> to vector<2x1xi32>
    %58 = vector.broadcast %57 : vector<2x1xi32> to vector<2x64xi32>
    %59 = arith.cmpi eq, %58, %9 : vector<2x64xi32>
    %60 = arith.extui %59 : vector<2x64xi1> to vector<2x64xi32>
    %61 = arith.sitofp %60 : vector<2x64xi32> to vector<2x64xf32>
    %cst_27 = arith.constant dense<0.000000e+00> : vector<2x16xf32>
    %62 = tpu.matmul %61, %0, %cst_27 {dimension_numbers = #tpu.dot_dimension_numbers<[1], [0], [0], [1], [0, 0, 1, 1], [], []>} : vector<2x64xf32>, vector<64x16xf32>, vector<2x16xf32> -> vector<2x16xf32>
    %cst_28 = arith.constant dense<0.000000e+00> : vector<2x96xf32>
    %63 = tpu.matmul %62, %2, %cst_28 {dimension_numbers = #tpu.dot_dimension_numbers<[1], [0], [0], [1], [0, 0, 1, 1], [], []>} : vector<2x16xf32>, vector<16x96xf32>, vector<2x96xf32> -> vector<2x96xf32>
    %64 = vector.broadcast %6 : vector<1x96xf32> to vector<2x96xf32>
    %65 = arith.addf %63, %64 : vector<2x96xf32>
    %cst_29 = arith.constant dense<0.000000e+00> : vector<2x96xf32>
    %66 = tpu.matmul %50, %4, %cst_29 {dimension_numbers = #tpu.dot_dimension_numbers<[1], [0], [0], [1], [0, 0, 1, 1], [], []>} : vector<2x32xf32>, vector<32x96xf32>, vector<2x96xf32> -> vector<2x96xf32>
    %67 = vector.broadcast %8 : vector<1x96xf32> to vector<2x96xf32>
    %68 = arith.addf %66, %67 : vector<2x96xf32>
    %69 = vector.extract_strided_slice %65 {offsets = [0, 0], sizes = [2, 32], strides = [1, 1]} : vector<2x96xf32> to vector<2x32xf32>
    %70 = vector.extract_strided_slice %68 {offsets = [0, 0], sizes = [2, 32], strides = [1, 1]} : vector<2x96xf32> to vector<2x32xf32>
    %71 = arith.addf %69, %70 : vector<2x32xf32>
    %72 = arith.negf %71 : vector<2x32xf32>
    %73 = math.exp %72 : vector<2x32xf32>
    %cst_30 = arith.constant 1.000000e+00 : f32
    %74 = vector.broadcast %cst_30 : f32 to vector<2x32xf32>
    %75 = arith.addf %74, %73 : vector<2x32xf32>
    %76 = arith.divf %74, %75 : vector<2x32xf32>
    %77 = vector.extract_strided_slice %65 {offsets = [0, 32], sizes = [2, 32], strides = [1, 1]} : vector<2x96xf32> to vector<2x32xf32>
    %78 = vector.extract_strided_slice %68 {offsets = [0, 32], sizes = [2, 32], strides = [1, 1]} : vector<2x96xf32> to vector<2x32xf32>
    %79 = arith.addf %77, %78 : vector<2x32xf32>
    %80 = arith.negf %79 : vector<2x32xf32>
    %81 = math.exp %80 : vector<2x32xf32>
    %cst_31 = arith.constant 1.000000e+00 : f32
    %82 = vector.broadcast %cst_31 : f32 to vector<2x32xf32>
    %83 = arith.addf %82, %81 : vector<2x32xf32>
    %84 = arith.divf %82, %83 : vector<2x32xf32>
    %85 = vector.extract_strided_slice %65 {offsets = [0, 64], sizes = [2, 32], strides = [1, 1]} : vector<2x96xf32> to vector<2x32xf32>
    %86 = vector.extract_strided_slice %68 {offsets = [0, 64], sizes = [2, 32], strides = [1, 1]} : vector<2x96xf32> to vector<2x32xf32>
    %87 = arith.mulf %76, %86 : vector<2x32xf32>
    %88 = arith.addf %85, %87 : vector<2x32xf32>
    %89 = math.tanh %88 : vector<2x32xf32>
    %cst_32 = arith.constant 1.000000e+00 : f32
    %90 = vector.broadcast %cst_32 : f32 to vector<2x32xf32>
    %91 = arith.subf %90, %84 : vector<2x32xf32>
    %92 = arith.mulf %91, %89 : vector<2x32xf32>
    %93 = arith.mulf %84, %50 : vector<2x32xf32>
    %94 = arith.addf %92, %93 : vector<2x32xf32>
    %c0_33 = arith.constant 0 : index
    %95 = arith.index_cast %c1_i32 : i32 to index
    %c0_34 = arith.constant 0 : index
    %c0_35 = arith.constant 0 : index
    %96 = vector.load %arg6[%c0_33, %95, %c0_34, %c0_35] : memref<1x8x2x32xf32, #tpu.memory_space<vmem>>, vector<1x1x2x32xf32>
    %97 = vector.shape_cast %96 : vector<1x1x2x32xf32> to vector<2x32xf32>
    %98 = vector.shape_cast %94 : vector<2x32xf32> to vector<1x1x2x32xf32>
    tpu.vector_store %arg6[%c0_33, %95, %c0_34, %c0_35], %98 {strides = array<i32>} : memref<1x8x2x32xf32, #tpu.memory_space<vmem>>, vector<1x1x2x32xf32>,
    %c2_i32 = arith.constant 2 : i32
    %c0_36 = arith.constant 0 : index
    %99 = arith.index_cast %c2_i32 : i32 to index
    %c0_37 = arith.constant 0 : index
    %c0_38 = arith.constant 0 : index
    %100 = vector.load %arg1[%c0_36, %99, %c0_37, %c0_38] : memref<1x8x2x1xi32, #tpu.memory_space<vmem>>, vector<1x1x2x1xi32>
    %101 = vector.shape_cast %100 : vector<1x1x2x1xi32> to vector<2x1xi32>
    %102 = vector.broadcast %101 : vector<2x1xi32> to vector<2x64xi32>
    %103 = arith.cmpi eq, %102, %9 : vector<2x64xi32>
    %104 = arith.extui %103 : vector<2x64xi1> to vector<2x64xi32>
    %105 = arith.sitofp %104 : vector<2x64xi32> to vector<2x64xf32>
    %cst_39 = arith.constant dense<0.000000e+00> : vector<2x16xf32>
    %106 = tpu.matmul %105, %0, %cst_39 {dimension_numbers = #tpu.dot_dimension_numbers<[1], [0], [0], [1], [0, 0, 1, 1], [], []>} : vector<2x64xf32>, vector<64x16xf32>, vector<2x16xf32> -> vector<2x16xf32>
    %cst_40 = arith.constant dense<0.000000e+00> : vector<2x96xf32>
    %107 = tpu.matmul %106, %2, %cst_40 {dimension_numbers = #tpu.dot_dimension_numbers<[1], [0], [0], [1], [0, 0, 1, 1], [], []>} : vector<2x16xf32>, vector<16x96xf32>, vector<2x96xf32> -> vector<2x96xf32>
    %108 = vector.broadcast %6 : vector<1x96xf32> to vector<2x96xf32>
    %109 = arith.addf %107, %108 : vector<2x96xf32>
    %cst_41 = arith.constant dense<0.000000e+00> : vector<2x96xf32>
    %110 = tpu.matmul %94, %4, %cst_41 {dimension_numbers = #tpu.dot_dimension_numbers<[1], [0], [0], [1], [0, 0, 1, 1], [], []>} : vector<2x32xf32>, vector<32x96xf32>, vector<2x96xf32> -> vector<2x96xf32>
    %111 = vector.broadcast %8 : vector<1x96xf32> to vector<2x96xf32>
    %112 = arith.addf %110, %111 : vector<2x96xf32>
    %113 = vector.extract_strided_slice %109 {offsets = [0, 0], sizes = [2, 32], strides = [1, 1]} : vector<2x96xf32> to vector<2x32xf32>
    %114 = vector.extract_strided_slice %112 {offsets = [0, 0], sizes = [2, 32], strides = [1, 1]} : vector<2x96xf32> to vector<2x32xf32>
    %115 = arith.addf %113, %114 : vector<2x32xf32>
    %116 = arith.negf %115 : vector<2x32xf32>
    %117 = math.exp %116 : vector<2x32xf32>
    %cst_42 = arith.constant 1.000000e+00 : f32
    %118 = vector.broadcast %cst_42 : f32 to vector<2x32xf32>
    %119 = arith.addf %118, %117 : vector<2x32xf32>
    %120 = arith.divf %118, %119 : vector<2x32xf32>
    %121 = vector.extract_strided_slice %109 {offsets = [0, 32], sizes = [2, 32], strides = [1, 1]} : vector<2x96xf32> to vector<2x32xf32>
    %122 = vector.extract_strided_slice %112 {offsets = [0, 32], sizes = [2, 32], strides = [1, 1]} : vector<2x96xf32> to vector<2x32xf32>
    %123 = arith.addf %121, %122 : vector<2x32xf32>
    %124 = arith.negf %123 : vector<2x32xf32>
    %125 = math.exp %124 : vector<2x32xf32>
    %cst_43 = arith.constant 1.000000e+00 : f32
    %126 = vector.broadcast %cst_43 : f32 to vector<2x32xf32>
    %127 = arith.addf %126, %125 : vector<2x32xf32>
    %128 = arith.divf %126, %127 : vector<2x32xf32>
    %129 = vector.extract_strided_slice %109 {offsets = [0, 64], sizes = [2, 32], strides = [1, 1]} : vector<2x96xf32> to vector<2x32xf32>
    %130 = vector.extract_strided_slice %112 {offsets = [0, 64], sizes = [2, 32], strides = [1, 1]} : vector<2x96xf32> to vector<2x32xf32>
    %131 = arith.mulf %120, %130 : vector<2x32xf32>
    %132 = arith.addf %129, %131 : vector<2x32xf32>
    %133 = math.tanh %132 : vector<2x32xf32>
    %cst_44 = arith.constant 1.000000e+00 : f32
    %134 = vector.broadcast %cst_44 : f32 to vector<2x32xf32>
    %135 = arith.subf %134, %128 : vector<2x32xf32>
    %136 = arith.mulf %135, %133 : vector<2x32xf32>
    %137 = arith.mulf %128, %94 : vector<2x32xf32>
    %138 = arith.addf %136, %137 : vector<2x32xf32>
    %c0_45 = arith.constant 0 : index
    %139 = arith.index_cast %c2_i32 : i32 to index
    %c0_46 = arith.constant 0 : index
    %c0_47 = arith.constant 0 : index
    %140 = vector.load %arg6[%c0_45, %139, %c0_46, %c0_47] : memref<1x8x2x32xf32, #tpu.memory_space<vmem>>, vector<1x1x2x32xf32>
    %141 = vector.shape_cast %140 : vector<1x1x2x32xf32> to vector<2x32xf32>
    %142 = vector.shape_cast %138 : vector<2x32xf32> to vector<1x1x2x32xf32>
    tpu.vector_store %arg6[%c0_45, %139, %c0_46, %c0_47], %142 {strides = array<i32>} : memref<1x8x2x32xf32, #tpu.memory_space<vmem>>, vector<1x1x2x32xf32>,
    %c3_i32 = arith.constant 3 : i32
    %c0_48 = arith.constant 0 : index
    %143 = arith.index_cast %c3_i32 : i32 to index
    %c0_49 = arith.constant 0 : index
    %c0_50 = arith.constant 0 : index
    %144 = vector.load %arg1[%c0_48, %143, %c0_49, %c0_50] : memref<1x8x2x1xi32, #tpu.memory_space<vmem>>, vector<1x1x2x1xi32>
    %145 = vector.shape_cast %144 : vector<1x1x2x1xi32> to vector<2x1xi32>
    %146 = vector.broadcast %145 : vector<2x1xi32> to vector<2x64xi32>
    %147 = arith.cmpi eq, %146, %9 : vector<2x64xi32>
    %148 = arith.extui %147 : vector<2x64xi1> to vector<2x64xi32>
    %149 = arith.sitofp %148 : vector<2x64xi32> to vector<2x64xf32>
    %cst_51 = arith.constant dense<0.000000e+00> : vector<2x16xf32>
    %150 = tpu.matmul %149, %0, %cst_51 {dimension_numbers = #tpu.dot_dimension_numbers<[1], [0], [0], [1], [0, 0, 1, 1], [], []>} : vector<2x64xf32>, vector<64x16xf32>, vector<2x16xf32> -> vector<2x16xf32>
    %cst_52 = arith.constant dense<0.000000e+00> : vector<2x96xf32>
    %151 = tpu.matmul %150, %2, %cst_52 {dimension_numbers = #tpu.dot_dimension_numbers<[1], [0], [0], [1], [0, 0, 1, 1], [], []>} : vector<2x16xf32>, vector<16x96xf32>, vector<2x96xf32> -> vector<2x96xf32>
    %152 = vector.broadcast %6 : vector<1x96xf32> to vector<2x96xf32>
    %153 = arith.addf %151, %152 : vector<2x96xf32>
    %cst_53 = arith.constant dense<0.000000e+00> : vector<2x96xf32>
    %154 = tpu.matmul %138, %4, %cst_53 {dimension_numbers = #tpu.dot_dimension_numbers<[1], [0], [0], [1], [0, 0, 1, 1], [], []>} : vector<2x32xf32>, vector<32x96xf32>, vector<2x96xf32> -> vector<2x96xf32>
    %155 = vector.broadcast %8 : vector<1x96xf32> to vector<2x96xf32>
    %156 = arith.addf %154, %155 : vector<2x96xf32>
    %157 = vector.extract_strided_slice %153 {offsets = [0, 0], sizes = [2, 32], strides = [1, 1]} : vector<2x96xf32> to vector<2x32xf32>
    %158 = vector.extract_strided_slice %156 {offsets = [0, 0], sizes = [2, 32], strides = [1, 1]} : vector<2x96xf32> to vector<2x32xf32>
    %159 = arith.addf %157, %158 : vector<2x32xf32>
    %160 = arith.negf %159 : vector<2x32xf32>
    %161 = math.exp %160 : vector<2x32xf32>
    %cst_54 = arith.constant 1.000000e+00 : f32
    %162 = vector.broadcast %cst_54 : f32 to vector<2x32xf32>
    %163 = arith.addf %162, %161 : vector<2x32xf32>
    %164 = arith.divf %162, %163 : vector<2x32xf32>
    %165 = vector.extract_strided_slice %153 {offsets = [0, 32], sizes = [2, 32], strides = [1, 1]} : vector<2x96xf32> to vector<2x32xf32>
    %166 = vector.extract_strided_slice %156 {offsets = [0, 32], sizes = [2, 32], strides = [1, 1]} : vector<2x96xf32> to vector<2x32xf32>
    %167 = arith.addf %165, %166 : vector<2x32xf32>
    %168 = arith.negf %167 : vector<2x32xf32>
    %169 = math.exp %168 : vector<2x32xf32>
    %cst_55 = arith.constant 1.000000e+00 : f32
    %170 = vector.broadcast %cst_55 : f32 to vector<2x32xf32>
    %171 = arith.addf %170, %169 : vector<2x32xf32>
    %172 = arith.divf %170, %171 : vector<2x32xf32>
    %173 = vector.extract_strided_slice %153 {offsets = [0, 64], sizes = [2, 32], strides = [1, 1]} : vector<2x96xf32> to vector<2x32xf32>
    %174 = vector.extract_strided_slice %156 {offsets = [0, 64], sizes = [2, 32], strides = [1, 1]} : vector<2x96xf32> to vector<2x32xf32>
    %175 = arith.mulf %164, %174 : vector<2x32xf32>
    %176 = arith.addf %173, %175 : vector<2x32xf32>
    %177 = math.tanh %176 : vector<2x32xf32>
    %cst_56 = arith.constant 1.000000e+00 : f32
    %178 = vector.broadcast %cst_56 : f32 to vector<2x32xf32>
    %179 = arith.subf %178, %172 : vector<2x32xf32>
    %180 = arith.mulf %179, %177 : vector<2x32xf32>
    %181 = arith.mulf %172, %138 : vector<2x32xf32>
    %182 = arith.addf %180, %181 : vector<2x32xf32>
    %c0_57 = arith.constant 0 : index
    %183 = arith.index_cast %c3_i32 : i32 to index
    %c0_58 = arith.constant 0 : index
    %c0_59 = arith.constant 0 : index
    %184 = vector.load %arg6[%c0_57, %183, %c0_58, %c0_59] : memref<1x8x2x32xf32, #tpu.memory_space<vmem>>, vector<1x1x2x32xf32>
    %185 = vector.shape_cast %184 : vector<1x1x2x32xf32> to vector<2x32xf32>
    %186 = vector.shape_cast %182 : vector<2x32xf32> to vector<1x1x2x32xf32>
    tpu.vector_store %arg6[%c0_57, %183, %c0_58, %c0_59], %186 {strides = array<i32>} : memref<1x8x2x32xf32, #tpu.memory_space<vmem>>, vector<1x1x2x32xf32>,
    %c4_i32 = arith.constant 4 : i32
    %c0_60 = arith.constant 0 : index
    %187 = arith.index_cast %c4_i32 : i32 to index
    %c0_61 = arith.constant 0 : index
    %c0_62 = arith.constant 0 : index
    %188 = vector.load %arg1[%c0_60, %187, %c0_61, %c0_62] : memref<1x8x2x1xi32, #tpu.memory_space<vmem>>, vector<1x1x2x1xi32>
    %189 = vector.shape_cast %188 : vector<1x1x2x1xi32> to vector<2x1xi32>
    %190 = vector.broadcast %189 : vector<2x1xi32> to vector<2x64xi32>
    %191 = arith.cmpi eq, %190, %9 : vector<2x64xi32>
    %192 = arith.extui %191 : vector<2x64xi1> to vector<2x64xi32>
    %193 = arith.sitofp %192 : vector<2x64xi32> to vector<2x64xf32>
    %cst_63 = arith.constant dense<0.000000e+00> : vector<2x16xf32>
    %194 = tpu.matmul %193, %0, %cst_63 {dimension_numbers = #tpu.dot_dimension_numbers<[1], [0], [0], [1], [0, 0, 1, 1], [], []>} : vector<2x64xf32>, vector<64x16xf32>, vector<2x16xf32> -> vector<2x16xf32>
    %cst_64 = arith.constant dense<0.000000e+00> : vector<2x96xf32>
    %195 = tpu.matmul %194, %2, %cst_64 {dimension_numbers = #tpu.dot_dimension_numbers<[1], [0], [0], [1], [0, 0, 1, 1], [], []>} : vector<2x16xf32>, vector<16x96xf32>, vector<2x96xf32> -> vector<2x96xf32>
    %196 = vector.broadcast %6 : vector<1x96xf32> to vector<2x96xf32>
    %197 = arith.addf %195, %196 : vector<2x96xf32>
    %cst_65 = arith.constant dense<0.000000e+00> : vector<2x96xf32>
    %198 = tpu.matmul %182, %4, %cst_65 {dimension_numbers = #tpu.dot_dimension_numbers<[1], [0], [0], [1], [0, 0, 1, 1], [], []>} : vector<2x32xf32>, vector<32x96xf32>, vector<2x96xf32> -> vector<2x96xf32>
    %199 = vector.broadcast %8 : vector<1x96xf32> to vector<2x96xf32>
    %200 = arith.addf %198, %199 : vector<2x96xf32>
    %201 = vector.extract_strided_slice %197 {offsets = [0, 0], sizes = [2, 32], strides = [1, 1]} : vector<2x96xf32> to vector<2x32xf32>
    %202 = vector.extract_strided_slice %200 {offsets = [0, 0], sizes = [2, 32], strides = [1, 1]} : vector<2x96xf32> to vector<2x32xf32>
    %203 = arith.addf %201, %202 : vector<2x32xf32>
    %204 = arith.negf %203 : vector<2x32xf32>
    %205 = math.exp %204 : vector<2x32xf32>
    %cst_66 = arith.constant 1.000000e+00 : f32
    %206 = vector.broadcast %cst_66 : f32 to vector<2x32xf32>
    %207 = arith.addf %206, %205 : vector<2x32xf32>
    %208 = arith.divf %206, %207 : vector<2x32xf32>
    %209 = vector.extract_strided_slice %197 {offsets = [0, 32], sizes = [2, 32], strides = [1, 1]} : vector<2x96xf32> to vector<2x32xf32>
    %210 = vector.extract_strided_slice %200 {offsets = [0, 32], sizes = [2, 32], strides = [1, 1]} : vector<2x96xf32> to vector<2x32xf32>
    %211 = arith.addf %209, %210 : vector<2x32xf32>
    %212 = arith.negf %211 : vector<2x32xf32>
    %213 = math.exp %212 : vector<2x32xf32>
    %cst_67 = arith.constant 1.000000e+00 : f32
    %214 = vector.broadcast %cst_67 : f32 to vector<2x32xf32>
    %215 = arith.addf %214, %213 : vector<2x32xf32>
    %216 = arith.divf %214, %215 : vector<2x32xf32>
    %217 = vector.extract_strided_slice %197 {offsets = [0, 64], sizes = [2, 32], strides = [1, 1]} : vector<2x96xf32> to vector<2x32xf32>
    %218 = vector.extract_strided_slice %200 {offsets = [0, 64], sizes = [2, 32], strides = [1, 1]} : vector<2x96xf32> to vector<2x32xf32>
    %219 = arith.mulf %208, %218 : vector<2x32xf32>
    %220 = arith.addf %217, %219 : vector<2x32xf32>
    %221 = math.tanh %220 : vector<2x32xf32>
    %cst_68 = arith.constant 1.000000e+00 : f32
    %222 = vector.broadcast %cst_68 : f32 to vector<2x32xf32>
    %223 = arith.subf %222, %216 : vector<2x32xf32>
    %224 = arith.mulf %223, %221 : vector<2x32xf32>
    %225 = arith.mulf %216, %182 : vector<2x32xf32>
    %226 = arith.addf %224, %225 : vector<2x32xf32>
    %c0_69 = arith.constant 0 : index
    %227 = arith.index_cast %c4_i32 : i32 to index
    %c0_70 = arith.constant 0 : index
    %c0_71 = arith.constant 0 : index
    %228 = vector.load %arg6[%c0_69, %227, %c0_70, %c0_71] : memref<1x8x2x32xf32, #tpu.memory_space<vmem>>, vector<1x1x2x32xf32>
    %229 = vector.shape_cast %228 : vector<1x1x2x32xf32> to vector<2x32xf32>
    %230 = vector.shape_cast %226 : vector<2x32xf32> to vector<1x1x2x32xf32>
    tpu.vector_store %arg6[%c0_69, %227, %c0_70, %c0_71], %230 {strides = array<i32>} : memref<1x8x2x32xf32, #tpu.memory_space<vmem>>, vector<1x1x2x32xf32>,
    %c5_i32 = arith.constant 5 : i32
    %c0_72 = arith.constant 0 : index
    %231 = arith.index_cast %c5_i32 : i32 to index
    %c0_73 = arith.constant 0 : index
    %c0_74 = arith.constant 0 : index
    %232 = vector.load %arg1[%c0_72, %231, %c0_73, %c0_74] : memref<1x8x2x1xi32, #tpu.memory_space<vmem>>, vector<1x1x2x1xi32>
    %233 = vector.shape_cast %232 : vector<1x1x2x1xi32> to vector<2x1xi32>
    %234 = vector.broadcast %233 : vector<2x1xi32> to vector<2x64xi32>
    %235 = arith.cmpi eq, %234, %9 : vector<2x64xi32>
    %236 = arith.extui %235 : vector<2x64xi1> to vector<2x64xi32>
    %237 = arith.sitofp %236 : vector<2x64xi32> to vector<2x64xf32>
    %cst_75 = arith.constant dense<0.000000e+00> : vector<2x16xf32>
    %238 = tpu.matmul %237, %0, %cst_75 {dimension_numbers = #tpu.dot_dimension_numbers<[1], [0], [0], [1], [0, 0, 1, 1], [], []>} : vector<2x64xf32>, vector<64x16xf32>, vector<2x16xf32> -> vector<2x16xf32>
    %cst_76 = arith.constant dense<0.000000e+00> : vector<2x96xf32>
    %239 = tpu.matmul %238, %2, %cst_76 {dimension_numbers = #tpu.dot_dimension_numbers<[1], [0], [0], [1], [0, 0, 1, 1], [], []>} : vector<2x16xf32>, vector<16x96xf32>, vector<2x96xf32> -> vector<2x96xf32>
    %240 = vector.broadcast %6 : vector<1x96xf32> to vector<2x96xf32>
    %241 = arith.addf %239, %240 : vector<2x96xf32>
    %cst_77 = arith.constant dense<0.000000e+00> : vector<2x96xf32>
    %242 = tpu.matmul %226, %4, %cst_77 {dimension_numbers = #tpu.dot_dimension_numbers<[1], [0], [0], [1], [0, 0, 1, 1], [], []>} : vector<2x32xf32>, vector<32x96xf32>, vector<2x96xf32> -> vector<2x96xf32>
    %243 = vector.broadcast %8 : vector<1x96xf32> to vector<2x96xf32>
    %244 = arith.addf %242, %243 : vector<2x96xf32>
    %245 = vector.extract_strided_slice %241 {offsets = [0, 0], sizes = [2, 32], strides = [1, 1]} : vector<2x96xf32> to vector<2x32xf32>
    %246 = vector.extract_strided_slice %244 {offsets = [0, 0], sizes = [2, 32], strides = [1, 1]} : vector<2x96xf32> to vector<2x32xf32>
    %247 = arith.addf %245, %246 : vector<2x32xf32>
    %248 = arith.negf %247 : vector<2x32xf32>
    %249 = math.exp %248 : vector<2x32xf32>
    %cst_78 = arith.constant 1.000000e+00 : f32
    %250 = vector.broadcast %cst_78 : f32 to vector<2x32xf32>
    %251 = arith.addf %250, %249 : vector<2x32xf32>
    %252 = arith.divf %250, %251 : vector<2x32xf32>
    %253 = vector.extract_strided_slice %241 {offsets = [0, 32], sizes = [2, 32], strides = [1, 1]} : vector<2x96xf32> to vector<2x32xf32>
    %254 = vector.extract_strided_slice %244 {offsets = [0, 32], sizes = [2, 32], strides = [1, 1]} : vector<2x96xf32> to vector<2x32xf32>
    %255 = arith.addf %253, %254 : vector<2x32xf32>
    %256 = arith.negf %255 : vector<2x32xf32>
    %257 = math.exp %256 : vector<2x32xf32>
    %cst_79 = arith.constant 1.000000e+00 : f32
    %258 = vector.broadcast %cst_79 : f32 to vector<2x32xf32>
    %259 = arith.addf %258, %257 : vector<2x32xf32>
    %260 = arith.divf %258, %259 : vector<2x32xf32>
    %261 = vector.extract_strided_slice %241 {offsets = [0, 64], sizes = [2, 32], strides = [1, 1]} : vector<2x96xf32> to vector<2x32xf32>
    %262 = vector.extract_strided_slice %244 {offsets = [0, 64], sizes = [2, 32], strides = [1, 1]} : vector<2x96xf32> to vector<2x32xf32>
    %263 = arith.mulf %252, %262 : vector<2x32xf32>
    %264 = arith.addf %261, %263 : vector<2x32xf32>
    %265 = math.tanh %264 : vector<2x32xf32>
    %cst_80 = arith.constant 1.000000e+00 : f32
    %266 = vector.broadcast %cst_80 : f32 to vector<2x32xf32>
    %267 = arith.subf %266, %260 : vector<2x32xf32>
    %268 = arith.mulf %267, %265 : vector<2x32xf32>
    %269 = arith.mulf %260, %226 : vector<2x32xf32>
    %270 = arith.addf %268, %269 : vector<2x32xf32>
    %c0_81 = arith.constant 0 : index
    %271 = arith.index_cast %c5_i32 : i32 to index
    %c0_82 = arith.constant 0 : index
    %c0_83 = arith.constant 0 : index
    %272 = vector.load %arg6[%c0_81, %271, %c0_82, %c0_83] : memref<1x8x2x32xf32, #tpu.memory_space<vmem>>, vector<1x1x2x32xf32>
    %273 = vector.shape_cast %272 : vector<1x1x2x32xf32> to vector<2x32xf32>
    %274 = vector.shape_cast %270 : vector<2x32xf32> to vector<1x1x2x32xf32>
    tpu.vector_store %arg6[%c0_81, %271, %c0_82, %c0_83], %274 {strides = array<i32>} : memref<1x8x2x32xf32, #tpu.memory_space<vmem>>, vector<1x1x2x32xf32>,
    %c6_i32 = arith.constant 6 : i32
    %c0_84 = arith.constant 0 : index
    %275 = arith.index_cast %c6_i32 : i32 to index
    %c0_85 = arith.constant 0 : index
    %c0_86 = arith.constant 0 : index
    %276 = vector.load %arg1[%c0_84, %275, %c0_85, %c0_86] : memref<1x8x2x1xi32, #tpu.memory_space<vmem>>, vector<1x1x2x1xi32>
    %277 = vector.shape_cast %276 : vector<1x1x2x1xi32> to vector<2x1xi32>
    %278 = vector.broadcast %277 : vector<2x1xi32> to vector<2x64xi32>
    %279 = arith.cmpi eq, %278, %9 : vector<2x64xi32>
    %280 = arith.extui %279 : vector<2x64xi1> to vector<2x64xi32>
    %281 = arith.sitofp %280 : vector<2x64xi32> to vector<2x64xf32>
    %cst_87 = arith.constant dense<0.000000e+00> : vector<2x16xf32>
    %282 = tpu.matmul %281, %0, %cst_87 {dimension_numbers = #tpu.dot_dimension_numbers<[1], [0], [0], [1], [0, 0, 1, 1], [], []>} : vector<2x64xf32>, vector<64x16xf32>, vector<2x16xf32> -> vector<2x16xf32>
    %cst_88 = arith.constant dense<0.000000e+00> : vector<2x96xf32>
    %283 = tpu.matmul %282, %2, %cst_88 {dimension_numbers = #tpu.dot_dimension_numbers<[1], [0], [0], [1], [0, 0, 1, 1], [], []>} : vector<2x16xf32>, vector<16x96xf32>, vector<2x96xf32> -> vector<2x96xf32>
    %284 = vector.broadcast %6 : vector<1x96xf32> to vector<2x96xf32>
    %285 = arith.addf %283, %284 : vector<2x96xf32>
    %cst_89 = arith.constant dense<0.000000e+00> : vector<2x96xf32>
    %286 = tpu.matmul %270, %4, %cst_89 {dimension_numbers = #tpu.dot_dimension_numbers<[1], [0], [0], [1], [0, 0, 1, 1], [], []>} : vector<2x32xf32>, vector<32x96xf32>, vector<2x96xf32> -> vector<2x96xf32>
    %287 = vector.broadcast %8 : vector<1x96xf32> to vector<2x96xf32>
    %288 = arith.addf %286, %287 : vector<2x96xf32>
    %289 = vector.extract_strided_slice %285 {offsets = [0, 0], sizes = [2, 32], strides = [1, 1]} : vector<2x96xf32> to vector<2x32xf32>
    %290 = vector.extract_strided_slice %288 {offsets = [0, 0], sizes = [2, 32], strides = [1, 1]} : vector<2x96xf32> to vector<2x32xf32>
    %291 = arith.addf %289, %290 : vector<2x32xf32>
    %292 = arith.negf %291 : vector<2x32xf32>
    %293 = math.exp %292 : vector<2x32xf32>
    %cst_90 = arith.constant 1.000000e+00 : f32
    %294 = vector.broadcast %cst_90 : f32 to vector<2x32xf32>
    %295 = arith.addf %294, %293 : vector<2x32xf32>
    %296 = arith.divf %294, %295 : vector<2x32xf32>
    %297 = vector.extract_strided_slice %285 {offsets = [0, 32], sizes = [2, 32], strides = [1, 1]} : vector<2x96xf32> to vector<2x32xf32>
    %298 = vector.extract_strided_slice %288 {offsets = [0, 32], sizes = [2, 32], strides = [1, 1]} : vector<2x96xf32> to vector<2x32xf32>
    %299 = arith.addf %297, %298 : vector<2x32xf32>
    %300 = arith.negf %299 : vector<2x32xf32>
    %301 = math.exp %300 : vector<2x32xf32>
    %cst_91 = arith.constant 1.000000e+00 : f32
    %302 = vector.broadcast %cst_91 : f32 to vector<2x32xf32>
    %303 = arith.addf %302, %301 : vector<2x32xf32>
    %304 = arith.divf %302, %303 : vector<2x32xf32>
    %305 = vector.extract_strided_slice %285 {offsets = [0, 64], sizes = [2, 32], strides = [1, 1]} : vector<2x96xf32> to vector<2x32xf32>
    %306 = vector.extract_strided_slice %288 {offsets = [0, 64], sizes = [2, 32], strides = [1, 1]} : vector<2x96xf32> to vector<2x32xf32>
    %307 = arith.mulf %296, %306 : vector<2x32xf32>
    %308 = arith.addf %305, %307 : vector<2x32xf32>
    %309 = math.tanh %308 : vector<2x32xf32>
    %cst_92 = arith.constant 1.000000e+00 : f32
    %310 = vector.broadcast %cst_92 : f32 to vector<2x32xf32>
    %311 = arith.subf %310, %304 : vector<2x32xf32>
    %312 = arith.mulf %311, %309 : vector<2x32xf32>
    %313 = arith.mulf %304, %270 : vector<2x32xf32>
    %314 = arith.addf %312, %313 : vector<2x32xf32>
    %c0_93 = arith.constant 0 : index
    %315 = arith.index_cast %c6_i32 : i32 to index
    %c0_94 = arith.constant 0 : index
    %c0_95 = arith.constant 0 : index
    %316 = vector.load %arg6[%c0_93, %315, %c0_94, %c0_95] : memref<1x8x2x32xf32, #tpu.memory_space<vmem>>, vector<1x1x2x32xf32>
    %317 = vector.shape_cast %316 : vector<1x1x2x32xf32> to vector<2x32xf32>
    %318 = vector.shape_cast %314 : vector<2x32xf32> to vector<1x1x2x32xf32>
    tpu.vector_store %arg6[%c0_93, %315, %c0_94, %c0_95], %318 {strides = array<i32>} : memref<1x8x2x32xf32, #tpu.memory_space<vmem>>, vector<1x1x2x32xf32>,
    %c7_i32 = arith.constant 7 : i32
    %c0_96 = arith.constant 0 : index
    %319 = arith.index_cast %c7_i32 : i32 to index
    %c0_97 = arith.constant 0 : index
    %c0_98 = arith.constant 0 : index
    %320 = vector.load %arg1[%c0_96, %319, %c0_97, %c0_98] : memref<1x8x2x1xi32, #tpu.memory_space<vmem>>, vector<1x1x2x1xi32>
    %321 = vector.shape_cast %320 : vector<1x1x2x1xi32> to vector<2x1xi32>
    %322 = vector.broadcast %321 : vector<2x1xi32> to vector<2x64xi32>
    %323 = arith.cmpi eq, %322, %9 : vector<2x64xi32>
    %324 = arith.extui %323 : vector<2x64xi1> to vector<2x64xi32>
    %325 = arith.sitofp %324 : vector<2x64xi32> to vector<2x64xf32>
    %cst_99 = arith.constant dense<0.000000e+00> : vector<2x16xf32>
    %326 = tpu.matmul %325, %0, %cst_99 {dimension_numbers = #tpu.dot_dimension_numbers<[1], [0], [0], [1], [0, 0, 1, 1], [], []>} : vector<2x64xf32>, vector<64x16xf32>, vector<2x16xf32> -> vector<2x16xf32>
    %cst_100 = arith.constant dense<0.000000e+00> : vector<2x96xf32>
    %327 = tpu.matmul %326, %2, %cst_100 {dimension_numbers = #tpu.dot_dimension_numbers<[1], [0], [0], [1], [0, 0, 1, 1], [], []>} : vector<2x16xf32>, vector<16x96xf32>, vector<2x96xf32> -> vector<2x96xf32>
    %328 = vector.broadcast %6 : vector<1x96xf32> to vector<2x96xf32>
    %329 = arith.addf %327, %328 : vector<2x96xf32>
    %cst_101 = arith.constant dense<0.000000e+00> : vector<2x96xf32>
    %330 = tpu.matmul %314, %4, %cst_101 {dimension_numbers = #tpu.dot_dimension_numbers<[1], [0], [0], [1], [0, 0, 1, 1], [], []>} : vector<2x32xf32>, vector<32x96xf32>, vector<2x96xf32> -> vector<2x96xf32>
    %331 = vector.broadcast %8 : vector<1x96xf32> to vector<2x96xf32>
    %332 = arith.addf %330, %331 : vector<2x96xf32>
    %333 = vector.extract_strided_slice %329 {offsets = [0, 0], sizes = [2, 32], strides = [1, 1]} : vector<2x96xf32> to vector<2x32xf32>
    %334 = vector.extract_strided_slice %332 {offsets = [0, 0], sizes = [2, 32], strides = [1, 1]} : vector<2x96xf32> to vector<2x32xf32>
    %335 = arith.addf %333, %334 : vector<2x32xf32>
    %336 = arith.negf %335 : vector<2x32xf32>
    %337 = math.exp %336 : vector<2x32xf32>
    %cst_102 = arith.constant 1.000000e+00 : f32
    %338 = vector.broadcast %cst_102 : f32 to vector<2x32xf32>
    %339 = arith.addf %338, %337 : vector<2x32xf32>
    %340 = arith.divf %338, %339 : vector<2x32xf32>
    %341 = vector.extract_strided_slice %329 {offsets = [0, 32], sizes = [2, 32], strides = [1, 1]} : vector<2x96xf32> to vector<2x32xf32>
    %342 = vector.extract_strided_slice %332 {offsets = [0, 32], sizes = [2, 32], strides = [1, 1]} : vector<2x96xf32> to vector<2x32xf32>
    %343 = arith.addf %341, %342 : vector<2x32xf32>
    %344 = arith.negf %343 : vector<2x32xf32>
    %345 = math.exp %344 : vector<2x32xf32>
    %cst_103 = arith.constant 1.000000e+00 : f32
    %346 = vector.broadcast %cst_103 : f32 to vector<2x32xf32>
    %347 = arith.addf %346, %345 : vector<2x32xf32>
    %348 = arith.divf %346, %347 : vector<2x32xf32>
    %349 = vector.extract_strided_slice %329 {offsets = [0, 64], sizes = [2, 32], strides = [1, 1]} : vector<2x96xf32> to vector<2x32xf32>
    %350 = vector.extract_strided_slice %332 {offsets = [0, 64], sizes = [2, 32], strides = [1, 1]} : vector<2x96xf32> to vector<2x32xf32>
    %351 = arith.mulf %340, %350 : vector<2x32xf32>
    %352 = arith.addf %349, %351 : vector<2x32xf32>
    %353 = math.tanh %352 : vector<2x32xf32>
    %cst_104 = arith.constant 1.000000e+00 : f32
    %354 = vector.broadcast %cst_104 : f32 to vector<2x32xf32>
    %355 = arith.subf %354, %348 : vector<2x32xf32>
    %356 = arith.mulf %355, %353 : vector<2x32xf32>
    %357 = arith.mulf %348, %314 : vector<2x32xf32>
    %358 = arith.addf %356, %357 : vector<2x32xf32>
    %c0_105 = arith.constant 0 : index
    %359 = arith.index_cast %c7_i32 : i32 to index
    %c0_106 = arith.constant 0 : index
    %c0_107 = arith.constant 0 : index
    %360 = vector.load %arg6[%c0_105, %359, %c0_106, %c0_107] : memref<1x8x2x32xf32, #tpu.memory_space<vmem>>, vector<1x1x2x32xf32>
    %361 = vector.shape_cast %360 : vector<1x1x2x32xf32> to vector<2x32xf32>
    %362 = vector.shape_cast %358 : vector<2x32xf32> to vector<1x1x2x32xf32>
    tpu.vector_store %arg6[%c0_105, %359, %c0_106, %c0_107], %362 {strides = array<i32>} : memref<1x8x2x32xf32, #tpu.memory_space<vmem>>, vector<1x1x2x32xf32>,
    %c8_i32 = arith.constant 8 : i32
    %c0_108 = arith.constant 0 : index
    %c0_109 = arith.constant 0 : index
    %c0_110 = arith.constant 0 : index
    %363 = vector.load %arg7[%c0_108, %c0_109, %c0_110] : memref<1x2x32xf32, #tpu.memory_space<vmem>>, vector<1x2x32xf32>
    %364 = vector.shape_cast %363 : vector<1x2x32xf32> to vector<2x32xf32>
    %365 = vector.shape_cast %358 : vector<2x32xf32> to vector<1x2x32xf32>
    tpu.vector_store %arg7[%c0_108, %c0_109, %c0_110], %365 {strides = array<i32>} : memref<1x2x32xf32, #tpu.memory_space<vmem>>, vector<1x2x32xf32>,
    return
  }
  func.func @transform_0(%arg0: i32) -> (i32, i32, i32, i32) {
    %c0_i32 = arith.constant 0 : i32
    %c0_i32_0 = arith.constant 0 : i32
    %c0_i32_1 = arith.constant 0 : i32
    %c0_i32_2 = arith.constant 0 : i32
    return %arg0, %c0_i32, %c0_i32_0, %c0_i32_1 : i32, i32, i32, i32
  }
  func.func @transform_1(%arg0: i32) -> (i32, i32) {
    %c0_i32 = arith.constant 0 : i32
    %c0_i32_0 = arith.constant 0 : i32
    %c0_i32_1 = arith.constant 0 : i32
    return %c0_i32, %c0_i32_0 : i32, i32
  }
  func.func @transform_2(%arg0: i32) -> (i32, i32, i32) {
    %c0_i32 = arith.constant 0 : i32
    %c0_i32_0 = arith.constant 0 : i32
    %c0_i32_1 = arith.constant 0 : i32
    return %arg0, %c0_i32, %c0_i32_0 : i32, i32, i32
  }
  func.func @transform_3(%arg0: i32) -> (i32, i32, i32) {
    %c0_i32 = arith.constant 0 : i32
    %c0_i32_0 = arith.constant 0 : i32
    %c0_i32_1 = arith.constant 0 : i32
    return %arg0, %c0_i32, %c0_i32_0 : i32, i32, i32
  }
  func.func @transform_4(%arg0: i32) -> (i32, i32, i32) {
    %c0_i32 = arith.constant 0 : i32
    %c0_i32_0 = arith.constant 0 : i32
    %c0_i32_1 = arith.constant 0 : i32
    return %arg0, %c0_i32, %c0_i32_0 : i32, i32, i32
  }
  func.func @transform_5(%arg0: i32) -> (i32, i32, i32, i32) {
    %c0_i32 = arith.constant 0 : i32
    %c0_i32_0 = arith.constant 0 : i32
    %c0_i32_1 = arith.constant 0 : i32
    %c0_i32_2 = arith.constant 0 : i32
    return %arg0, %c0_i32, %c0_i32_0, %c0_i32_1 : i32, i32, i32, i32
  }
  func.func @transform_6(%arg0: i32) -> (i32, i32, i32) {
    %c0_i32 = arith.constant 0 : i32
    %c0_i32_0 = arith.constant 0 : i32
    %c0_i32_1 = arith.constant 0 : i32
    return %arg0, %c0_i32, %c0_i32_0 : i32, i32, i32
  }
}

</mosaic_0001>

<bundles_post_ra>
// kernel: seq2seq_all_forward.3
= control target key start
LH: loop header
LB: loop body
LE: loop exit
PB: predicated region body
PF: predicated region fallthrough
CT: control target
= control target key end

     0   :  { %s2694_s0 = inlined_call_operand.vmem [shape: s32[4], index: 0, kind: input, shape index: {}]   ;;  %s2695_s1 = inlined_call_operand.vmem [shape: f32[2,64], index: 1, kind: input, shape index: {}]   ;;  %s2696_s2 = inlined_call_operand.vmem [shape: f32[64,32], index: 2, kind: input, shape index: {}]   ;;  %s2697_s3 = inlined_call_operand.vmem [shape: f32[2,16], index: 3, kind: input, shape index: {}]   ;;  %s2698_s4 = inlined_call_operand.vmem [shape: f32[16,96], index: 4, kind: input, shape index: {}]   ;;  %s2699_s5 = inlined_call_operand.vmem [shape: f32[32,96], index: 5, kind: input, shape index: {}]   ;;  %s2700_s6 = inlined_call_operand.vmem [shape: f32[32,64], index: 6, kind: input, shape index: {}]   ;;  %s2701_s7 = inlined_call_operand.vmem [shape: f32[1,32], index: 7, kind: input, shape index: {}]   ;;  %s2702_s8 = inlined_call_operand.vmem [shape: f32[1,289], index: 8, kind: input, shape index: {}]   ;;  %s2703_s9 = inlined_call_operand.vmem [shape: f32[64,16], index: 9, kind: input, shape index: {}]   ;;  %s2704_s10 = inlined_call_operand.vmem [shape: s32[5,2,1], index: 10, kind: input, shape index: {}]   ;;  %s2705_s11 = inlined_call_operand.vmem [shape: f32[4,2,64], index: 11, kind: output, shape index: {0}]   ;;  %s2706_s12 = inlined_call_operand.vmem [shape: f32[4,2,16], index: 12, kind: output, shape index: {1}]  }
   0x1   :  { %s18_s23 = sshll.u32 %s2694_s0, 4  ;;  %s19_s23 = int_to_ptr.vmem [resolvable:$true] %s18_s23 }
   0x2   :  { %s2229_s24 = scalar_lea.vmem %s19_s23, 16  ;;  %p2234_p1 = scmp.lt.s32.totalorder %s19_s23, %s19_s23 }
   0x3   :  { %p2230_p0 = scmp.ne.s32.totalorder %s19_s23, %s2229_s24  ;;  %p2235_p2 = scmp.lt.s32.totalorder %s2229_s24, %s2229_s24 }
   0x5   :  { %p2236_p3 = por %p2235_p2, %p2234_p1 }
   0x7   :  { %p2237_p4 = pnand %p2236_p3, %p2230_p0 }
   0x9   :  { %2240 = shalt.err (!%p2237_p4)  }
   0xa   :  { %s2243_s25 = smov [#allocation3]  }
   0xb   :  { %21 = dma.vmem_to_smem %s19_s23, 16, %s2243_s25, [#allocation2] }
   0xc   :  { %2241 = dma.done.wait [#allocation2], 16 }
   0xd   :  { %2242 = vsyncadd [#allocation2], 4294967280 }
   0xe   :  { %23 = sfence }
   0xf   :  { %v160_v0 = vld [vmem:[%s2704_s10] sm:$0x3]  ;;  %v72_v2 = vld [vmem:[%s2696_s2 + $0x8] sm:$0xff]  ;;  %v2244_v3 = vmov 0   ;;  %v2245_v4 = vmov 0.0|0.0   ;;  %v73_v6 = vld [vmem:[%s2696_s2 + $0x10] sm:$0xff]  ;;  %v68_v29 = vlaneseq }
  0x10   :  { %v71_v1 = vld [vmem:[%s2696_s2] sm:$0xff]  ;;  %2184 = vset.pattern.permute.xlu0 %v2244_v3  ;;  %2055 = vmatprep.subr.bf16.mxu0 %v2245_v4  ;;  %v74_v7 = vld [vmem:[%s2696_s2 + $0x18] sm:$0xff]  ;;  %v49_v9 = vld [vmem:[%s2703_s9 + $0x8] sm:$0xff]  ;;  %vm2246_vm0 = vmmov 0   ;;  %v2247_v14 = vmov 0.0   ;;  %vm85_vm1 = vcmask 523264  }
  0x11   :  { %v2056_v5 = vpack.c.bf16 %v72_v2, %v71_v1  ;;  %v48_v8 = vld [vmem:[%s2703_s9] sm:$0xff]  ;;  %162 = vperm.xlu0 %2184, %v160_v0   ;;  %2067 = vmatprep.subr.bf16.mxu1 %v2245_v4  ;;  %v2059_v10 = vpack.c.bf16 %v74_v7, %v73_v6  ;;  %v50_v12 = vld [vmem:[%s2703_s9 + $0x10] sm:$0xff]  ;;  %v51_v13 = vld [vmem:[%s2703_s9 + $0x18] sm:$0xff]  ;;  %v2404_v30 = vand.u32 127, %v68_v29  ;;  %vm243_vm3 = vcmask 130048   ;;  %s2249_s17 = smov 64  }
  0x12   :  { %v2343_v11 = vpack.c.bf16 %v49_v9, %v48_v8  ;;  %1860 = vmatprep.mubr.msk.f32.mxu0 %vm2246_vm0, %v2247_v14  ;;  %v75_v15 = vld [vmem:[%s2696_s2 + $0x20] sm:$0xff]  ;;  %v76_v16 = vld [vmem:[%s2696_s2 + $0x28] sm:$0xff]  ;;  %1879 = vmatprep.mubr.msk.f32.mxu1 %vm2246_vm0, %v2247_v14  ;;  %v2363_v17 = vpack.c.bf16 %v51_v13, %v50_v12  ;;  %v77_v21 = vld [vmem:[%s2696_s2 + $0x30] sm:$0xff]  ;;  %vm323_vm4 = vcmask 261120   ;;  %s2250_s18 = smov 32   ;;  %vm516_vm5 = vcmask 517120  }
  0x13   :  { %2057 = vmatpush3.bf16.msra.mxu0 %v2056_v5  ;;  %2185 = vset.pattern.permute.xlu1 %v2244_v3  ;;  %v52_v18 = vld [vmem:[%s2703_s9 + $0x20] sm:$0xff]  ;;  %v53_v19 = vld [vmem:[%s2703_s9 + $0x28] sm:$0xff]  ;;  %v2062_v20 = vpack.c.bf16 %v76_v16, %v75_v15  ;;  %v78_v22 = vld [vmem:[%s2696_s2 + $0x38] sm:$0xff]  ;;  %s586_s29 = sld [smem:[#allocation3]]  ;;  %s1726_s19 = sld [smem:[#allocation3 + $0x1]] }
  0x14   :  { %2058 = vmatprep.subr.bf16.mxu0 %v2245_v4  ;;  %2069 = vmatpush3.bf16.msra.mxu1 %v2343_v11  ;;  %v2380_v23 = vpack.c.bf16 %v53_v19, %v52_v18  ;;  %v54_v24 = vld [vmem:[%s2703_s9 + $0x30] sm:$0xff]  ;;  %v55_v25 = vld [vmem:[%s2703_s9 + $0x38] sm:$0xff]  ;;  %v2065_v26 = vpack.c.bf16 %v78_v22, %v77_v21  ;;  %v70_v28 = vld [vmem:[%s2695_s1] sm:$0x3]  ;;  %s1738_s24 = sld [smem:[#allocation3 + $0x2]] }
  0x15   :  { %2070 = vmatprep.subr.bf16.mxu1 %v2245_v4  ;;  %v2391_v27 = vpack.c.bf16 %v55_v25, %v54_v24  ;;  %v56_v31 = vld [vmem:[%s2698_s4] sm:$0xff]  ;;  %v57_v32 = vld [vmem:[%s2698_s4 + $0x8] sm:$0xff]  ;;  %s2248_s4 = smov 96   ;;  %v60_v43 = vld [vmem:[%s2699_s5 + $0x10] sm:$0xff] }
  0x16   :  { %v2412_v34 = vpack.c.bf16 %v57_v32, %v56_v31  ;;  %v1700_v36 = vld [vmem:[%s2702_s8] ss:$0 sm:$0xff]  ;;  %v59_v41 = vld [vmem:[%s2699_s5 + $0x8] sm:$0xff]  ;;  %v61_v44 = vld [vmem:[%s2699_s5 + $0x18] sm:$0xff] }
  0x17   :  { %2060 = vmatpush3.bf16.msra.mxu0 %v2059_v10  ;;  %240 = vrot.lane.b32.xlu0 %v1700_v36, %s2248_s4  ;;  %v58_v40 = vld [vmem:[%s2699_s5] sm:$0xff]  ;;  %v2441_v47 = vpack.c.bf16 %v61_v44, %v60_v43  ;;  %v63_v3 = vld [vmem:[%s2700_s6 + $0x8] sm:$0xff]  ;;  %v64_v5 = vld [vmem:[%s2700_s6 + $0x10] sm:$0xff]  ;;  %v428_v10 = vshrl.u32 %v68_v29, 7 }
  0x18   :  { %2061 = vmatprep.subr.bf16.mxu0 %v2245_v4  ;;  %2072 = vmatpush3.bf16.msra.mxu1 %v2363_v17  ;;  %v2431_v42 = vpack.c.bf16 %v59_v41, %v58_v40  ;;  %v2462_v51 = vld [vmem:[%s2702_s8 + $0x1] ss:$0 sm:$0xff]  ;;  %v65_v7 = vld [vmem:[%s2700_s6 + $0x18] sm:$0xff]  ;;  %v1713_v43 = vld [vmem:[%s2704_s10 + $0x2] sm:$0x3] }
  0x19   :  { %2073 = vmatprep.subr.bf16.mxu1 %v2245_v4  ;;  %v62_v2 = vld [vmem:[%s2700_s6] sm:$0xff]  ;;  %v2486_v8 = vpack.c.bf16 %v65_v7, %v64_v5  ;;  %v429_v13 = vsub.s32 0, %v428_v10  ;;  %v433_v22 = vsub.s32 1, %v428_v10  ;;  %p587_p5 = scmp.gt.s32.totalorder %s586_s29, 0  ;;  %p966_p6 = scmp.gt.s32.totalorder %s1726_s19, 0 }
  0x1a   :  { %v2480_v6 = vpack.c.bf16 %v63_v3, %v62_v2  ;;  %v46_v12 = vld [vmem:[%s2702_s8 + $0x1] sm:$0x3]  ;;  %p1345_p7 = scmp.gt.s32.totalorder %s1738_s24, 0 }
  0x1b   :  { %2063 = vmatpush3.bf16.msra.mxu0 %v2062_v20  ;;  %v430_v15 = vrot.slane %v46_v12, %v429_v13  ;;  %v434_v25 = vrot.slane %v46_v12, %v433_v22  ;;  %s588_s0 = scalar_select %p587_p5, 1, 0 }
  0x1c   :  { %2064 = vmatprep.subr.bf16.mxu0 %v2245_v4  ;;  %2075 = vmatpush3.bf16.msra.mxu1 %v2380_v23  ;;  %s967_s20 = scalar_select %p966_p6, 1, 0 }
  0x1d   :  { %2076 = vmatprep.subr.bf16.mxu1 %v2245_v4  ;;  %s589_s30 = scvt.s32.f32 %s588_s0 }
  0x1e   :  { %s968_s21 = scvt.s32.f32 %s967_s20 }
  0x1f   :  { %2066 = vmatpush3.bf16.msra.mxu0 %v2065_v26  ;;  %s592_s13 = ssub.f32 1.0, %s589_s30 }
  0x20   :  { %2088 = vmatprep.subr.bf16.mxu0 %v2245_v4  ;;  %2078 = vmatpush3.bf16.msra.mxu1 %v2391_v27  ;;  %s971_s2 = ssub.f32 1.0, %s968_s21 }
  0x21   :  { %2079 = vmatprep.subr.bf16.mxu1 %v2245_v4  ;;  %s1346_s25 = scalar_select %p1345_p7, 1, 0 }
  0x22   :  { %1861 = vmatmul.mubr.msk.f32.vlgmr.msra.gmra.mrb[0].mxu0 %vm85_vm1, %v70_v28 }
  0x23   :  { %1908 = vmatprep.mubr.msk.f32.mxu0 %vm2246_vm0, %v2247_v14  ;;  %2090 = vmatpush3.bf16.msra.mxu0 %v2480_v6 }
  0x24   :  { %2091 = vmatprep.subr.bf16.mxu0 %v2245_v4 }
  0x27   :  { %2093 = vmatpush3.bf16.msra.mxu0 %v2486_v8 }
  0x28   :  { %2106 = vmatprep.subr.bf16.mxu0 %v2245_v4 }
  0x90   :  { %v163_v33 = vpop.permute.xlu0 %162 }
  0x91   :  { %vm164_vm2 = vcmp.eq.s32.totalorder %v163_v33, %v2404_v30 }
  0x92   :  { %v1702_v35 = vsel %vm164_vm2, 1.0, %v2247_v14 }
  0x93   :  { %1880 = vmatmul.mubr.msk.f32.vlgmr.msra.gmra.mrb[0].mxu1 %vm85_vm1, %v1702_v35 }
  0x94   :  { %2081 = vmatpush3.bf16.msra.mxu1 %v2412_v34  ;;  %1886 = vmatprep.mubr.msk.f32.mxu1 %vm2246_vm0, %v2247_v14  ;;  %v2466_v55 = vpop.permute.xlu0 %240 }
  0x95   :  { %2082 = vmatprep.subr.bf16.mxu1 %v2245_v4 }
  0xf5   :  { %v155_v37 = vpop.f32.mrb[0].mxu0 }
  0xf6   :  { %v156_v38 = vadd.f32 %v1700_v36, %v155_v37  ;;  %v1862_v39 = vpop.f32.mrb[1].mxu0 }
  0xf8   :  { %2187 = vtanh.f32 %v156_v38 }
 0x102   :  { %v2188_v48 = vpop.eup %2187 }
 0x166   :  { %v236_v45 = vpop.f32.mrb[0].mxu1 }
 0x167   :  { %v1881_v46 = vpop.f32.mrb[1].mxu1  ;;  %1887 = vmatmul.mubr.msk.f32.vlgmr.msra.gmra.mrb[2].mxu1 %vm243_vm3, %v236_v45 }
 0x168   :  { %2084 = vmatpush3.bf16.msra.mxu1 %v2431_v42  ;;  %1897 = vmatprep.mubr.msk.f32.mxu1 %vm2246_vm0, %v2247_v14 }
 0x169   :  { %2085 = vmatprep.subr.bf16.mxu1 %v2245_v4 }
 0x16c   :  { %2087 = vmatpush3.bf16.msra.mxu1 %v2441_v47 }
 0x16d   :  { %2094 = vmatprep.subr.bf16.mxu1 %v2245_v4 }
 0x16f   :  { %1898 = vmatmul.mubr.msk.f32.vlgmr.msra.gmra.mrb[4].mxu1 %vm323_vm4, %v2188_v48 }
 0x170   :  { %2096 = vmatpush3.bf16.msra.mxu1 %v2343_v11  ;;  %1927 = vmatprep.mubr.msk.f32.mxu1 %vm2246_vm0, %v2247_v14 }
 0x171   :  { %2097 = vmatprep.subr.bf16.mxu1 %v2245_v4 }
 0x174   :  { %2099 = vmatpush3.bf16.msra.mxu1 %v2363_v17 }
 0x175   :  { %2100 = vmatprep.subr.bf16.mxu1 %v2245_v4 }
 0x178   :  { %2102 = vmatpush3.bf16.msra.mxu1 %v2380_v23 }
 0x179   :  { %2103 = vmatprep.subr.bf16.mxu1 %v2245_v4 }
 0x17c   :  { %2105 = vmatpush3.bf16.msra.mxu1 %v2391_v27 }
 0x17d   :  { %2121 = vmatprep.subr.bf16.mxu1 %v2245_v4 }
 0x23a   :  { %v313_v49 = vpop.f32.mrb[2].mxu1 }
 0x23b   :  { %v1888_v50 = vpop.f32.mrb[3].mxu1  ;;  %v314_v56 = vadd.f32 %v313_v49, %v2466_v55 }
 0x242   :  { %v393_v52 = vpop.f32.mrb[4].mxu1 }
 0x243   :  { %v394_v53 = vadd.f32 %v2462_v51, %v393_v52  ;;  %v1899_v54 = vpop.f32.mrb[5].mxu1 }
 0x245   :  { %405 = vrot.lane.b32.xlu1 %v394_v53, %s2249_s17  ;;  %v397_v57 = vadd.f32 %v394_v53, %v314_v56 }
 0x247   :  { %v1707_v58 = vmul.f32 -1.442695, %v397_v57 }
 0x249   :  { %2189 = vpow2.f32 %v1707_v58 }
 0x253   :  { %v2190_v59 = vpop.eup %2189 }
 0x254   :  { %v401_v60 = vadd.f32 1.0, %v2190_v59  ;;  %v593_v59 = vstv %s592_s13 }
 0x256   :  { %2191 = vrcp.f32 %v401_v60 }
 0x260   :  { %v2192_v61 = vpop.eup %2191 }
 0x261   :  { %v415_v18 = vsub.f32 1.0, %v2192_v61 }
 0x2b7   :  { %v406_v62 = vpop.permute.xlu1 %405 }
 0x2b8   :  { %v408_v63 = vmul.f32 %v2192_v61, %v406_v62 }
 0x2ba   :  { %410 = vrot.lane.b32.xlu1 %v408_v63, %s2249_s17 }
 0x2be   :  { %421 = vrot.lane.b32.xlu1 %v2188_v48, %s2250_s18 }
 0x2c2   :  { %438 = vrot.lane.b32.xlu1 %v430_v15, %s2250_s18 }
 0x32c   :  { %v411_v0 = vpop.permute.xlu1 %410 }
 0x32d   :  { %v413_v1 = vadd.f32 %v411_v0, %v314_v56  ;;  %v590_v56 = vstv %s589_s30 }
 0x32f   :  { %2193 = vtanh.f32 %v413_v1 }
 0x330   :  { %v422_v16 = vpop.permute.xlu1 %421 }
 0x331   :  { %v424_v20 = vmul.f32 %v2192_v61, %v422_v16 }
 0x334   :  { %v439_v29 = vpop.permute.xlu1 %438 }
 0x339   :  { %v2194_v9 = vpop.eup %2193 }
 0x33a   :  { %417 = vrot.lane.b32.xlu0 %v2194_v9, %s2248_s4 }
 0x3ac   :  { %v418_v19 = vpop.permute.xlu0 %417 }
 0x3ad   :  { %v420_v21 = vmul.f32 %v418_v19, %v415_v18 }
 0x3af   :  { %v2497_v24 = vadd.f32 %v424_v20, %v420_v21 }
 0x3b1   :  { %436 = vrot.lane.b32.xlu0 %v2497_v24, %s2248_s4 }
 0x3b5   :  { %440 = vrot.lane.b32.xlu0 %v434_v25, %s2250_s18 }
 0x423   :  { %v2502_v26 = vpop.permute.xlu0 %436 }
 0x424   :  { %1909 = vmatmul.mubr.msk.f32.vlgmr.msra.gmra.mrb[2].mxu0 %vm323_vm4, %v2502_v26 }
 0x425   :  { %2108 = vmatpush3.bf16.msra.mxu0 %v2412_v34  ;;  %1934 = vmatprep.mubr.msk.f32.mxu0 %vm2246_vm0, %v2247_v14 }
 0x426   :  { %2109 = vmatprep.subr.bf16.mxu0 %v2245_v4 }
 0x427   :  { %v441_v28 = vpop.permute.xlu0 %440 }
 0x428   :  { %v2511_v31 = vsel %vm323_vm4, %v439_v29, %v441_v28 }
 0x4f7   :  { %v512_v32 = vpop.f32.mrb[2].mxu0 }
 0x4f8   :  { %v513_v33 = vadd.f32 %v512_v32, %v2511_v31  ;;  %v1910_v35 = vpop.f32.mrb[3].mxu0 }
 0x4fa   :  { %517 = vst.msk [vmem:[%s2705_s11] sm:$0x3] %vm516_vm5, %v513_v33  ;;  %v555_v36 = vsel %vm516_vm5, %v513_v33, -inf }
 0x4fb   :  { %556 = vmax.xlane.f32.xlu1 %v555_v36 }
 0x50c   :  { %581 = vperm.xlu1 %2185, %v1713_v43  }
 0x588   :  { %v557_v37 = vpop.xlane.xlu1 %556 }
 0x589   :  { %vm558_vm6 = vcmp.eq.f32.partialorder %v513_v33, %v557_v37 }
 0x58a   :  { %v559_v38 = vsel %vm558_vm6, %v2404_v30, 64 }
 0x58b   :  { %v560_v39 = vsel %vm516_vm5, %v559_v38, 2147483647 }
 0x58c   :  { %v562_v40 = vshra.s32 %v560_v39, 16  ;;  %v561_v44 = vand.u32 65535, %v560_v39  ;;  %v582_v49 = vpop.permute.xlu1 %581 }
 0x58d   :  { %vm583_vm8 = vcmp.eq.s32.totalorder %v582_v49, %v2404_v30 }
 0x58e   :  { %v564_v41 = vcvt.s32.f32 %v562_v40  ;;  %v563_v46 = vcvt.s32.f32 %v561_v44  ;;  %v1714_v57 = vsel %vm583_vm8, 1.0, %v2247_v14  ;;  %v1724_v40 = vld [vmem:[%s2704_s10 + $0x4] sm:$0x3] }
 0x58f   :  { %v591_v60 = vmul.f32 %v1714_v57, %v590_v56 }
 0x590   :  { %565 = vmin.xlane.f32.xlu0 %v564_v41 }
 0x61d   :  { %v566_v45 = vpop.xlane.xlu0 %565 }
 0x61e   :  { %vm567_vm7 = vcmp.eq.f32.partialorder %v564_v41, %v566_v45  ;;  %v572_v50 = vcvt.f32.s32 %v566_v45 }
 0x61f   :  { %v568_v48 = vsel %vm567_vm7, %v563_v46, inf }
 0x620   :  { %569 = vmin.xlane.f32.xlu0 %v568_v48  ;;  %v573_v53 = vshll.u32 %v572_v50, 16 }
 0x6ad   :  { %v570_v52 = vpop.xlane.xlu0 %569 }
 0x6ae   :  { %v571_v54 = vcvt.f32.s32 %v570_v52 }
 0x6b0   :  { %v574_v58 = vadd.s32 %v573_v53, %v571_v54 }
 0x6b2   :  { %vm575_vm9 = vcmp.eq.s32.totalorder %v2404_v30, %v574_v58 }
 0x6b3   :  { %v1712_v61 = vsel %vm575_vm9, 1.0, %v2247_v14 }
 0x6b4   :  { %v594_v62 = vmul.f32 %v1712_v61, %v593_v59 }
 0x6b6   :  { %v595_v63 = vadd.f32 %v594_v62, %v591_v60  ;;  %v969_v60 = vstv %s968_s21  ;;  %v972_v62 = vstv %s971_s2 }
 0x6b8   :  { %1928 = vmatmul.mubr.msk.f32.vlgmr.msra.gmra.mrb[6].mxu1 %vm85_vm1, %v595_v63 }
 0x6b9   :  { %2123 = vmatpush3.bf16.msra.mxu1 %v2343_v11  ;;  %1975 = vmatprep.mubr.msk.f32.mxu1 %vm2246_vm0, %v2247_v14 }
 0x6ba   :  { %2124 = vmatprep.subr.bf16.mxu1 %v2245_v4 }
 0x6bd   :  { %2126 = vmatpush3.bf16.msra.mxu1 %v2363_v17 }
 0x6be   :  { %2127 = vmatprep.subr.bf16.mxu1 %v2245_v4 }
 0x6c1   :  { %2129 = vmatpush3.bf16.msra.mxu1 %v2380_v23 }
 0x6c2   :  { %2130 = vmatprep.subr.bf16.mxu1 %v2245_v4 }
 0x6c5   :  { %2132 = vmatpush3.bf16.msra.mxu1 %v2391_v27 }
 0x6c6   :  { %2142 = vmatprep.subr.bf16.mxu1 %v2245_v4 }
 0x78b   :  { %v665_v0 = vpop.f32.mrb[6].mxu1 }
 0x78c   :  { %v1929_v1 = vpop.f32.mrb[7].mxu1  ;;  %1935 = vmatmul.mubr.msk.f32.vlgmr.msra.gmra.mrb[4].mxu0 %vm243_vm3, %v665_v0 }
 0x78d   :  { %2111 = vmatpush3.bf16.msra.mxu0 %v2431_v42  ;;  %1945 = vmatprep.mubr.msk.f32.mxu0 %vm2246_vm0, %v2247_v14 }
 0x78e   :  { %2112 = vmatprep.subr.bf16.mxu0 %v2245_v4 }
 0x791   :  { %2114 = vmatpush3.bf16.msra.mxu0 %v2441_v47 }
 0x792   :  { %2115 = vmatprep.subr.bf16.mxu0 %v2245_v4 }
 0x794   :  { %1946 = vmatmul.mubr.msk.f32.vlgmr.msra.gmra.mrb[6].mxu0 %vm323_vm4, %v2502_v26 }
 0x795   :  { %2117 = vmatpush3.bf16.msra.mxu0 %v2480_v6  ;;  %1956 = vmatprep.mubr.msk.f32.mxu0 %vm2246_vm0, %v2247_v14 }
 0x796   :  { %2118 = vmatprep.subr.bf16.mxu0 %v2245_v4 }
 0x799   :  { %2120 = vmatpush3.bf16.msra.mxu0 %v2486_v8 }
 0x79a   :  { %2133 = vmatprep.subr.bf16.mxu0 %v2245_v4 }
 0x85f   :  { %v738_v2 = vpop.f32.mrb[4].mxu0 }
 0x860   :  { %v1936_v3 = vpop.f32.mrb[5].mxu0  ;;  %v739_v10 = vadd.f32 %v738_v2, %v2466_v55 }
 0x867   :  { %v808_v5 = vpop.f32.mrb[6].mxu0 }
 0x868   :  { %v809_v7 = vadd.f32 %v2462_v51, %v808_v5  ;;  %v1947_v9 = vpop.f32.mrb[7].mxu0 }
 0x86a   :  { %820 = vrot.lane.b32.xlu0 %v809_v7, %s2249_s17  ;;  %v812_v12 = vadd.f32 %v809_v7, %v739_v10 }
 0x86c   :  { %v1718_v13 = vmul.f32 -1.442695, %v812_v12 }
 0x86e   :  { %2195 = vpow2.f32 %v1718_v13 }
 0x878   :  { %v2196_v15 = vpop.eup %2195 }
 0x879   :  { %v816_v16 = vadd.f32 1.0, %v2196_v15 }
 0x87b   :  { %2197 = vrcp.f32 %v816_v16 }
 0x885   :  { %v2198_v18 = vpop.eup %2197 }
 0x886   :  { %v830_v26 = vsub.f32 1.0, %v2198_v18  ;;  %v836_v29 = vmul.f32 %v2198_v18, %v2497_v24 }
 0x8dc   :  { %v821_v19 = vpop.permute.xlu0 %820 }
 0x8dd   :  { %v823_v20 = vmul.f32 %v2198_v18, %v821_v19 }
 0x8df   :  { %825 = vrot.lane.b32.xlu1 %v823_v20, %s2249_s17 }
 0x951   :  { %v826_v21 = vpop.permute.xlu1 %825 }
 0x952   :  { %v828_v22 = vadd.f32 %v826_v21, %v739_v10 }
 0x954   :  { %2199 = vtanh.f32 %v828_v22 }
 0x95e   :  { %v2200_v25 = vpop.eup %2199 }
 0x95f   :  { %832 = vrot.lane.b32.xlu1 %v2200_v25, %s2248_s4 }
 0x9d1   :  { %v833_v28 = vpop.permute.xlu1 %832 }
 0x9d2   :  { %v835_v32 = vmul.f32 %v833_v28, %v830_v26 }
 0x9d4   :  { %v2560_v33 = vadd.f32 %v836_v29, %v835_v32 }
 0x9d6   :  { %839 = vrot.lane.b32.xlu0 %v2560_v33, %s2248_s4 }
 0xa48   :  { %v840_v35 = vpop.permute.xlu0 %839 }
 0xa49   :  { %1957 = vmatmul.mubr.msk.f32.vlgmr.msra.gmra.mrb[8].mxu0 %vm323_vm4, %v840_v35 }
 0xa4a   :  { %2135 = vmatpush3.bf16.msra.mxu0 %v2412_v34  ;;  %1982 = vmatprep.mubr.msk.f32.mxu0 %vm2246_vm0, %v2247_v14 }
 0xa4b   :  { %2136 = vmatprep.subr.bf16.mxu0 %v2245_v4 }
 0xb1c   :  { %v909_v36 = vpop.f32.mrb[8].mxu0 }
 0xb1d   :  { %v910_v37 = vadd.f32 %v909_v36, %v2511_v31  ;;  %v1958_v38 = vpop.f32.mrb[9].mxu0 }
 0xb1f   :  { %1720 = vst.msk [vmem:[%s2705_s11 + $0x2] sm:$0x3] %vm516_vm5, %v910_v37  ;;  %v934_v39 = vsel %vm516_vm5, %v910_v37, -inf }
 0xb20   :  { %935 = vmax.xlane.f32.xlu1 %v934_v39 }
 0xb31   :  { %960 = vperm.xlu1 %2185, %v1724_v40  }
 0xbad   :  { %v936_v41 = vpop.xlane.xlu1 %935 }
 0xbae   :  { %vm937_vm10 = vcmp.eq.f32.partialorder %v910_v37, %v936_v41 }
 0xbaf   :  { %v938_v43 = vsel %vm937_vm10, %v2404_v30, 64 }
 0xbb0   :  { %v939_v44 = vsel %vm516_vm5, %v938_v43, 2147483647 }
 0xbb1   :  { %v941_v45 = vshra.s32 %v939_v44, 16  ;;  %v940_v48 = vand.u32 65535, %v939_v44  ;;  %v961_v54 = vpop.permute.xlu1 %960 }
 0xbb2   :  { %vm962_vm12 = vcmp.eq.s32.totalorder %v961_v54, %v2404_v30 }
 0xbb3   :  { %v943_v46 = vcvt.s32.f32 %v941_v45  ;;  %v942_v50 = vcvt.s32.f32 %v940_v48  ;;  %v1725_v61 = vsel %vm962_vm12, 1.0, %v2247_v14 }
 0xbb4   :  { %v970_v0 = vmul.f32 %v1725_v61, %v969_v60 }
 0xbb5   :  { %944 = vmin.xlane.f32.xlu0 %v943_v46 }
 0xc42   :  { %v945_v49 = vpop.xlane.xlu0 %944 }
 0xc43   :  { %vm946_vm11 = vcmp.eq.f32.partialorder %v943_v46, %v945_v49  ;;  %v951_v53 = vcvt.f32.s32 %v945_v49 }
 0xc44   :  { %v947_v52 = vsel %vm946_vm11, %v942_v50, inf }
 0xc45   :  { %948 = vmin.xlane.f32.xlu0 %v947_v52  ;;  %v952_v57 = vshll.u32 %v951_v53, 16 }
 0xcd2   :  { %v949_v56 = vpop.xlane.xlu0 %948 }
 0xcd3   :  { %v950_v58 = vcvt.f32.s32 %v949_v56 }
 0xcd5   :  { %v953_v59 = vadd.s32 %v952_v57, %v950_v58 }
 0xcd7   :  { %vm954_vm13 = vcmp.eq.s32.totalorder %v2404_v30, %v953_v59 }
 0xcd8   :  { %v1723_v63 = vsel %vm954_vm13, 1.0, %v2247_v14 }
 0xcd9   :  { %v973_v1 = vmul.f32 %v1723_v63, %v972_v62 }
 0xcdb   :  { %v974_v2 = vadd.f32 %v973_v1, %v970_v0 }
 0xcdd   :  { %1976 = vmatmul.mubr.msk.f32.vlgmr.msra.gmra.mrb[8].mxu1 %vm85_vm1, %v974_v2 }
 0xcde   :  { %2144 = vmatpush3.bf16.msra.mxu1 %v2480_v6  ;;  %2004 = vmatprep.mubr.msk.f32.mxu1 %vm2246_vm0, %v2247_v14 }
 0xcdf   :  { %2145 = vmatprep.subr.bf16.mxu1 %v2245_v4 }
 0xce2   :  { %2147 = vmatpush3.bf16.msra.mxu1 %v2486_v8 }
 0xce3   :  { %2160 = vmatprep.subr.bf16.mxu1 %v2245_v4 }
 0xdb0   :  { %v1044_v3 = vpop.f32.mrb[8].mxu1 }
 0xdb1   :  { %v1977_v5 = vpop.f32.mrb[9].mxu1  ;;  %1983 = vmatmul.mubr.msk.f32.vlgmr.msra.gmra.mrb[10].mxu0 %vm243_vm3, %v1044_v3 }
 0xdb2   :  { %2138 = vmatpush3.bf16.msra.mxu0 %v2431_v42  ;;  %1993 = vmatprep.mubr.msk.f32.mxu0 %vm2246_vm0, %v2247_v14 }
 0xdb3   :  { %2139 = vmatprep.subr.bf16.mxu0 %v2245_v4 }
 0xdb6   :  { %2141 = vmatpush3.bf16.msra.mxu0 %v2441_v47 }
 0xdb7   :  { %2148 = vmatprep.subr.bf16.mxu0 %v2245_v4 }
 0xdb9   :  { %1994 = vmatmul.mubr.msk.f32.vlgmr.msra.gmra.mrb[12].mxu0 %vm323_vm4, %v840_v35 }
 0xdba   :  { %2150 = vmatpush3.bf16.msra.mxu0 %v2343_v11  ;;  %2023 = vmatprep.mubr.msk.f32.mxu0 %vm2246_vm0, %v2247_v14 }
 0xdbb   :  { %2151 = vmatprep.subr.bf16.mxu0 %v2245_v4 }
 0xdbe   :  { %2153 = vmatpush3.bf16.msra.mxu0 %v2363_v17 }
 0xdbf   :  { %2154 = vmatprep.subr.bf16.mxu0 %v2245_v4 }
 0xdc2   :  { %2156 = vmatpush3.bf16.msra.mxu0 %v2380_v23 }
 0xdc3   :  { %2157 = vmatprep.subr.bf16.mxu0 %v2245_v4 }
 0xdc6   :  { %2159 = vmatpush3.bf16.msra.mxu0 %v2391_v27 }
 0xdc7   :  { %2169 = vmatprep.subr.bf16.mxu0 %v2245_v4 }
 0xe84   :  { %v1117_v7 = vpop.f32.mrb[10].mxu0 }
 0xe85   :  { %v1984_v9 = vpop.f32.mrb[11].mxu0  ;;  %v1118_v17 = vadd.f32 %v1117_v7, %v2466_v55 }
 0xe8c   :  { %v1187_v11 = vpop.f32.mrb[12].mxu0 }
 0xe8d   :  { %v1188_v10 = vadd.f32 %v2462_v51, %v1187_v11  ;;  %v1995_v12 = vpop.f32.mrb[13].mxu0 }
 0xe8f   :  { %1199 = vrot.lane.b32.xlu0 %v1188_v10, %s2249_s17  ;;  %v1191_v13 = vadd.f32 %v1188_v10, %v1118_v17 }
 0xe91   :  { %v1730_v15 = vmul.f32 -1.442695, %v1191_v13 }
 0xe93   :  { %2201 = vpow2.f32 %v1730_v15 }
 0xe9d   :  { %v2202_v23 = vpop.eup %2201 }
 0xe9e   :  { %v1195_v16 = vadd.f32 1.0, %v2202_v23 }
 0xea0   :  { %2203 = vrcp.f32 %v1195_v16 }
 0xeaa   :  { %v2204_v18 = vpop.eup %2203 }
 0xeab   :  { %v1209_v25 = vsub.f32 1.0, %v2204_v18  ;;  %v1215_v28 = vmul.f32 %v2204_v18, %v2560_v33 }
 0xf01   :  { %v1200_v27 = vpop.permute.xlu0 %1199 }
 0xf02   :  { %v1202_v19 = vmul.f32 %v2204_v18, %v1200_v27 }
 0xf04   :  { %1204 = vrot.lane.b32.xlu1 %v1202_v19, %s2249_s17  ;;  %v915_v19 = vmax.f32 %v2560_v33, 0.0 }
 0xf76   :  { %v1205_v20 = vpop.permute.xlu1 %1204 }
 0xf77   :  { %v1207_v21 = vadd.f32 %v1205_v20, %v1118_v17 }
 0xf79   :  { %2205 = vtanh.f32 %v1207_v21 }
 0xf83   :  { %v2206_v22 = vpop.eup %2205 }
 0xf84   :  { %1211 = vrot.lane.b32.xlu1 %v2206_v22, %s2248_s4 }
 0xff6   :  { %v1212_v26 = vpop.permute.xlu1 %1211 }
 0xff7   :  { %v1214_v29 = vmul.f32 %v1212_v26, %v1209_v25  ;;  %v518_v25 = vmax.f32 %v2497_v24, 0.0 }
 0xff9   :  { %v2615_v32 = vadd.f32 %v1215_v28, %v1214_v29  ;;  %v2251_v28 = vmov 32  }
 0xffb   :  { %1218 = vrot.lane.b32.xlu0 %v2615_v32, %s2248_s4 }
0x106d   :  { %v1219_v35 = vpop.permute.xlu0 %1218 }
0x106e   :  { %2005 = vmatmul.mubr.msk.f32.vlgmr.msra.gmra.mrb[10].mxu1 %vm323_vm4, %v1219_v35 }
0x106f   :  { %2162 = vmatpush3.bf16.msra.mxu1 %v2412_v34  ;;  %2030 = vmatprep.mubr.msk.f32.mxu1 %vm2246_vm0, %v2247_v14  ;;  %v1736_v34 = vld [vmem:[%s2704_s10 + $0x6] sm:$0x3]  ;;  %s1347_s10 = scvt.s32.f32 %s1346_s25 }
0x1070   :  { %2163 = vmatprep.subr.bf16.mxu1 %v2245_v4 }
0x1071   :  { %s1350_s6 = ssub.f32 1.0, %s1347_s10  ;;  %v1348_v59 = vstv %s1347_s10 }
0x1073   :  { %v1351_v61 = vstv %s1350_s6 }
0x1141   :  { %v1288_v36 = vpop.f32.mrb[10].mxu1 }
0x1142   :  { %v1289_v37 = vadd.f32 %v1288_v36, %v2511_v31  ;;  %v2006_v38 = vpop.f32.mrb[11].mxu1 }
0x1144   :  { %1732 = vst.msk [vmem:[%s2705_s11 + $0x4] sm:$0x3] %vm516_vm5, %v1289_v37  ;;  %v1313_v39 = vsel %vm516_vm5, %v1289_v37, -inf }
0x1145   :  { %1314 = vmax.xlane.f32.xlu1 %v1313_v39 }
0x1156   :  { %1339 = vperm.xlu1 %2185, %v1736_v34  }
0x115a   :  { %2186 = vset.pattern.permute.xlu1 %v2251_v28 }
0x11d2   :  { %v1315_v40 = vpop.xlane.xlu1 %1314 }
0x11d3   :  { %vm1316_vm14 = vcmp.eq.f32.partialorder %v1289_v37, %v1315_v40 }
0x11d4   :  { %v1317_v41 = vsel %vm1316_vm14, %v2404_v30, 64 }
0x11d5   :  { %v1318_v43 = vsel %vm516_vm5, %v1317_v41, 2147483647 }
0x11d6   :  { %v1320_v44 = vshra.s32 %v1318_v43, 16  ;;  %v1319_v46 = vand.u32 65535, %v1318_v43  ;;  %v1340_v53 = vpop.permute.xlu1 %1339  ;;  %v1710_v43 = vld [vmem:[%s2702_s8 + $0x2] ss:$0 sm:$0xff] }
0x11d7   :  { %vm1341_vm2 = vcmp.eq.s32.totalorder %v1340_v53, %v2404_v30 }
0x11d8   :  { %v1322_v45 = vcvt.s32.f32 %v1320_v44  ;;  %v1321_v49 = vcvt.s32.f32 %v1319_v46  ;;  %v1737_v60 = vsel %vm1341_vm2, 1.0, %v2247_v14  ;;  %v67_v44 = vld [vmem:[%s2697_s3] sm:$0x3] }
0x11d9   :  { %v1349_v63 = vmul.f32 %v1737_v60, %v1348_v59 }
0x11da   :  { %1323 = vmin.xlane.f32.xlu0 %v1322_v45 }
0x1267   :  { %v1324_v48 = vpop.xlane.xlu0 %1323 }
0x1268   :  { %vm1325_vm15 = vcmp.eq.f32.partialorder %v1322_v45, %v1324_v48  ;;  %v1330_v52 = vcvt.f32.s32 %v1324_v48 }
0x1269   :  { %v1326_v50 = vsel %vm1325_vm15, %v1321_v49, inf }
0x126a   :  { %1327 = vmin.xlane.f32.xlu0 %v1326_v50  ;;  %v1331_v56 = vshll.u32 %v1330_v52, 16 }
0x12f7   :  { %v1328_v54 = vpop.xlane.xlu0 %1327 }
0x12f8   :  { %v1329_v57 = vcvt.f32.s32 %v1328_v54 }
0x12fa   :  { %v1332_v58 = vadd.s32 %v1331_v56, %v1329_v57 }
0x12fc   :  { %vm1333_vm6 = vcmp.eq.s32.totalorder %v2404_v30, %v1332_v58 }
0x12fd   :  { %v1735_v62 = vsel %vm1333_vm6, 1.0, %v2247_v14 }
0x12fe   :  { %v1352_v0 = vmul.f32 %v1735_v62, %v1351_v61 }
0x1300   :  { %v1353_v1 = vadd.f32 %v1352_v0, %v1349_v63 }
0x1302   :  { %2024 = vmatmul.mubr.msk.f32.vlgmr.msra.gmra.mrb[14].mxu0 %vm85_vm1, %v1353_v1  ;;  %vm553_vm1 = vcmask 123904  }
0x1303   :  { %2171 = vmatpush3.bf16.msra.mxu0 %v2480_v6  ;;  %2052 = vmatprep.mubr.msk.f32.mxu0 %vm2246_vm0, %v2247_v14 }
0x1304   :  { %2172 = vmatprep.subr.bf16.mxu0 %v2245_v4 }
0x1307   :  { %2174 = vmatpush3.bf16.msra.mxu0 %v2486_v8 }
0x13d5   :  { %v1423_v2 = vpop.f32.mrb[14].mxu0 }
0x13d6   :  { %v2025_v3 = vpop.f32.mrb[15].mxu0  ;;  %2031 = vmatmul.mubr.msk.f32.vlgmr.msra.gmra.mrb[12].mxu1 %vm243_vm3, %v1423_v2 }
0x13d7   :  { %2165 = vmatpush3.bf16.msra.mxu1 %v2431_v42  ;;  %2041 = vmatprep.mubr.msk.f32.mxu1 %vm2246_vm0, %v2247_v14  ;;  %vm532_vm0 = vcmask 254976  }
0x13d8   :  { %2166 = vmatprep.subr.bf16.mxu1 %v2245_v4 }
0x13db   :  { %2168 = vmatpush3.bf16.msra.mxu1 %v2441_v47 }
0x13de   :  { %2042 = vmatmul.mubr.msk.f32.vlgmr.msra.gmra.mrb[14].mxu1 %vm323_vm4, %v1219_v35  ;;  %v1294_v35 = vmax.f32 %v2615_v32, 0.0 }
0x14a9   :  { %v1496_v30 = vpop.f32.mrb[12].mxu1 }
0x14aa   :  { %v2032_v6 = vpop.f32.mrb[13].mxu1  ;;  %v1497_v9 = vadd.f32 %v1496_v30, %v2466_v55  ;;  %v1709_v55 = vld [vmem:[%s2701_s7] ss:$0 sm:$0xff] }
0x14b1   :  { %v1566_v5 = vpop.f32.mrb[14].mxu1 }
0x14b2   :  { %v1567_v8 = vadd.f32 %v2462_v51, %v1566_v5  ;;  %v2043_v7 = vpop.f32.mrb[15].mxu1 }
0x14b4   :  { %1578 = vrot.lane.b32.xlu0 %v1567_v8, %s2249_s17  ;;  %v1570_v42 = vadd.f32 %v1567_v8, %v1497_v9 }
0x14b6   :  { %v1742_v11 = vmul.f32 -1.442695, %v1570_v42 }
0x14b8   :  { %2207 = vpow2.f32 %v1742_v11 }
0x14c2   :  { %v2208_v14 = vpop.eup %2207 }
0x14c3   :  { %v1574_v10 = vadd.f32 1.0, %v2208_v14 }
0x14c5   :  { %2209 = vrcp.f32 %v1574_v10 }
0x14cf   :  { %v2210_v4 = vpop.eup %2209 }
0x14d0   :  { %v1588_v15 = vsub.f32 1.0, %v2210_v4  ;;  %v1594_v16 = vmul.f32 %v2210_v4, %v2615_v32 }
0x1526   :  { %v1579_v47 = vpop.permute.xlu0 %1578 }
0x1527   :  { %v1581_v12 = vmul.f32 %v2210_v4, %v1579_v47 }
0x1529   :  { %1583 = vrot.lane.b32.xlu1 %v1581_v12, %s2249_s17 }
0x159b   :  { %v1584_v17 = vpop.permute.xlu1 %1583 }
0x159c   :  { %v1586_v13 = vadd.f32 %v1584_v17, %v1497_v9 }
0x159e   :  { %2211 = vtanh.f32 %v1586_v13 }
0x15a8   :  { %v2212_v51 = vpop.eup %2211 }
0x15a9   :  { %1590 = vrot.lane.b32.xlu1 %v2212_v51, %s2248_s4 }
0x15ad   :  { %524 = vrot.lane.b32.xlu1 %v1709_v55, %s2250_s18 }
0x161b   :  { %v1591_v23 = vpop.permute.xlu1 %1590 }
0x161c   :  { %v1593_v18 = vmul.f32 %v1591_v23, %v1588_v15 }
0x161e   :  { %v1595_v27 = vadd.f32 %v1594_v16, %v1593_v18 }
0x161f   :  { %v525_v20 = vpop.permute.xlu1 %524 }
0x1620   :  { %v1673_v21 = vmax.f32 %v1595_v27, 0.0  ;;  %1597 = vrot.lane.b32.xlu0 %v1595_v27, %s2248_s4  ;;  %v916_v22 = vmul.f32 %v915_v19, %v525_v20  ;;  %v527_v26 = vmul.f32 %v525_v20, %v518_v25  ;;  %v1295_v33 = vmul.f32 %v1294_v35, %v525_v20 }
0x1622   :  { %918 = vrot.lane.b32.xlu1 %v916_v22, %s2248_s4  ;;  %v1674_v29 = vmul.f32 %v1673_v21, %v525_v20 }
0x1624   :  { %529 = vrot.lane.b32.xlu0 %v527_v26, %s2248_s4 }
0x1626   :  { %1676 = vrot.lane.b32.xlu1 %v1674_v29, %s2248_s4 }
0x1628   :  { %1297 = vrot.lane.b32.xlu0 %v1295_v33, %s2248_s4 }
0x1692   :  { %v1598_v36 = vpop.permute.xlu0 %1597 }
0x1693   :  { %2053 = vmatmul.mubr.msk.f32.vlgmr.msra.gmra.mrb[16].mxu0 %vm323_vm4, %v1598_v36 }
0x1694   :  { %v919_v24 = vpop.permute.xlu1 %918 }
0x1695   :  { %v921_v37 = vsel %vm532_vm0, %v919_v24, 0.0 }
0x1696   :  { %v530_v38 = vpop.permute.xlu0 %529  ;;  %922 = vadd.xlane.f32.xlu1 %v921_v37 }
0x1697   :  { %v533_v39 = vsel %vm532_vm0, %v530_v38, 0.0 }
0x1698   :  { %534 = vadd.xlane.f32.xlu0 %v533_v39  ;;  %v1677_v41 = vpop.permute.xlu1 %1676 }
0x1699   :  { %v1679_v32 = vsel %vm532_vm0, %v1677_v41, 0.0 }
0x169a   :  { %v1298_v34 = vpop.permute.xlu0 %1297 }
0x169b   :  { %v1300_v40 = vsel %vm532_vm0, %v1298_v34, 0.0 }
0x169c   :  { %1301 = vadd.xlane.f32.xlu0 %v1300_v40 }
0x16a0   :  { %1680 = vadd.xlane.f32.xlu0 %v1679_v32 }
0x16a7   :  { %543 = vperm.xlu1 %2186, %v1710_v43  }
0x1723   :  { %v923_v45 = vpop.xlane.xlu1 %922 }
0x1724   :  { %v924_v48 = vadd.f32 %v923_v45, %v67_v44 }
0x1725   :  { %v535_v46 = vpop.xlane.xlu0 %534 }
0x1726   :  { %v536_v49 = vadd.f32 %v535_v46, %v67_v44 }
0x1727   :  { %v544_v50 = vpop.permute.xlu1 %543 }
0x1728   :  { %v546_v52 = vadd.f32 %v544_v50, %v536_v49  ;;  %v925_v53 = vadd.f32 %v924_v48, %v544_v50 }
0x1729   :  { %v1302_v54 = vpop.xlane.xlu0 %1301 }
0x172a   :  { %v1711_v56 = vmul.f32 -1.442695, %v546_v52  ;;  %v1721_v57 = vmul.f32 -1.442695, %v925_v53  ;;  %v1303_v58 = vadd.f32 %v1302_v54, %v67_v44 }
0x172c   :  { %2213 = vpow2.f32 %v1711_v56  ;;  %v1304_v59 = vadd.f32 %v1303_v58, %v544_v50 }
0x172d   :  { %2215 = vpow2.f32 %v1721_v57  ;;  %v1681_v60 = vpop.xlane.xlu0 %1680 }
0x172e   :  { %v1733_v61 = vmul.f32 -1.442695, %v1304_v59  ;;  %v1682_v62 = vadd.f32 %v1681_v60, %v67_v44 }
0x1730   :  { %2217 = vpow2.f32 %v1733_v61  ;;  %v1683_v63 = vadd.f32 %v1682_v62, %v544_v50 }
0x1732   :  { %v1745_v0 = vmul.f32 -1.442695, %v1683_v63 }
0x1734   :  { %2219 = vpow2.f32 %v1745_v0 }
0x1736   :  { %v2214_v1 = vpop.eup %2213 }
0x1737   :  { %v2216_v2 = vpop.eup %2215  ;;  %v550_v3 = vadd.f32 1.0, %v2214_v1 }
0x1738   :  { %v929_v30 = vadd.f32 1.0, %v2216_v2 }
0x1739   :  { %2221 = vrcp.f32 %v550_v3 }
0x173a   :  { %v2218_v6 = vpop.eup %2217  ;;  %2223 = vrcp.f32 %v929_v30 }
0x173b   :  { %v1308_v5 = vadd.f32 1.0, %v2218_v6 }
0x173d   :  { %2225 = vrcp.f32 %v1308_v5 }
0x173e   :  { %v2220_v8 = vpop.eup %2219 }
0x173f   :  { %v1687_v7 = vadd.f32 1.0, %v2220_v8 }
0x1741   :  { %2227 = vrcp.f32 %v1687_v7 }
0x1743   :  { %v2222_v9 = vpop.eup %2221 }
0x1744   :  { %v2224_v42 = vpop.eup %2223  ;;  %554 = vst.msk [vmem:[%s2706_s12] sm:$0x3] %vm553_vm1, %v2222_v9 }
0x1745   :  { %1722 = vst.msk [vmem:[%s2706_s12 + $0x2] sm:$0x3] %vm553_vm1, %v2224_v42 }
0x1747   :  { %v2226_v11 = vpop.eup %2225 }
0x1748   :  { %1734 = vst.msk [vmem:[%s2706_s12 + $0x4] sm:$0x3] %vm553_vm1, %v2226_v11 }
0x174b   :  { %v2228_v14 = vpop.eup %2227 }
0x174c   :  { %1746 = vst.msk [vmem:[%s2706_s12 + $0x6] sm:$0x3] %vm553_vm1, %v2228_v14 }
0x1766   :  { %v1667_v10 = vpop.f32.mrb[16].mxu0 }
0x1767   :  { %v1668_v4 = vadd.f32 %v1667_v10, %v2511_v31  ;;  %v2054_v47 = vpop.f32.mrb[17].mxu0 }
0x1769   :  { %1744 = vst.msk [vmem:[%s2705_s11 + $0x6] sm:$0x3] %vm516_vm5, %v1668_v4 }

// kernel: seq2seq_all_forward.2
= control target key start
LH: loop header
LB: loop body
LE: loop exit
PB: predicated region body
PF: predicated region fallthrough
CT: control target
= control target key end

     0   :  { %s3339_s21 = smov 0   ;;  %s3708_s0 = inlined_call_operand.vmem [shape: s32[2,8,2,1], index: 0, kind: input, shape index: {}]   ;;  %s3709_s1 = inlined_call_operand.vmem [shape: f32[64,16], index: 1, kind: input, shape index: {}]   ;;  %s3710_s2 = inlined_call_operand.vmem [shape: f32[2,16,96], index: 2, kind: input, shape index: {}]   ;;  %s3711_s3 = inlined_call_operand.vmem [shape: f32[2,32,96], index: 3, kind: input, shape index: {}]   ;;  %s3712_s4 = inlined_call_operand.vmem [shape: f32[2,1,192], index: 4, kind: input, shape index: {}]   ;;  %s3713_s5 = inlined_call_operand.vmem [shape: f32[2,8,2,32], index: 5, kind: output, shape index: {0}]   ;;  %s3714_s6 = inlined_call_operand.vmem [shape: f32[2,2,32], index: 6, kind: output, shape index: {1}]  }
   0x1 LB: > { %s2549_s22 = sadd.s32 4294967295, %s3295_s21   ;;  %p2553_p0 = scmp.ge.s32.totalorder %s3295_s21, 1  ;;  %s3295_s21 = sphi %s3339_s21, %s17_s21  }
   0x2   : > { %p244_p1 = scmp.lt.s32.totalorder %s3295_s21, 3 }
   0x4   : > { %p245_p2 = pnand %p2553_p0, %p244_p1 }
   0x5   : > { %p292_p3 = scmp.lt.s32.totalorder (!%p245_p2), %s2549_s22, 1  ;;  %v320_v0 = vld [vmem:[%s3709_s1] sm:$0xff] (!%p245_p2)  ;;  %v321_v1 = vld [vmem:[%s3709_s1 + $0x8] sm:$0xff] (!%p245_p2)  ;;  %v322_v2 = vld [vmem:[%s3709_s1 + $0x10] sm:$0xff] (!%p245_p2)  ;;  %v3297_v3 = vmov (!%p245_p2), 0   ;;  %v3298_v4 = vmov (!%p245_p2), 0.0|0.0   ;;  %v336_v19 = vlaneseq (!%p245_p2) }
   0x6   : > { %248 = sbr.rel (%p245_p2) target bundleno = 5913 (0x1719), region = 40  ;;  %3239 = vset.pattern.permute.xlu0 (!%p245_p2), %v3297_v3  ;;  %3056 = vmatprep.subr.bf16.mxu0 (!%p245_p2), %v3298_v4  ;;  %v3357_v5 = vpack.c.bf16 (!%p245_p2), %v321_v1, %v320_v0  ;;  %v323_v6 = vld [vmem:[%s3709_s1 + $0x18] sm:$0xff] (!%p245_p2)  ;;  %v324_v8 = vld [vmem:[%s3709_s1 + $0x20] sm:$0xff] (!%p245_p2)  ;;  %v325_v9 = vld [vmem:[%s3709_s1 + $0x28] sm:$0xff] (!%p245_p2)  ;;  %vm3299_vm0 = vmmov (!%p245_p2), 0   ;;  %v3300_v17 = vmov (!%p245_p2), 0.0  }
   0x7   : > { %3068 = vmatprep.subr.bf16.mxu1 (!%p245_p2), %v3298_v4  ;;  %3240 = vset.pattern.permute.xlu1 (!%p245_p2), %v3297_v3  ;;  %v3366_v7 = vpack.c.bf16 (!%p245_p2), %v323_v6, %v322_v2  ;;  %v3392_v14 = vpack.c.bf16 (!%p245_p2), %v325_v9, %v324_v8  ;;  %v326_v15 = vld [vmem:[%s3709_s1 + $0x30] sm:$0xff] (!%p245_p2)  ;;  %v327_v16 = vld [vmem:[%s3709_s1 + $0x38] sm:$0xff] (!%p245_p2)  ;;  %v3413_v20 = vand.u32 (!%p245_p2), 127, %v336_v19  ;;  %vm345_vm1 = vcmask (!%p245_p2), 523264   ;;  %s3301_s28 = smov (!%p245_p2), 32   ;;  %s3302_s10 = smov (!%p245_p2), 64  }
   0x8   : > { %3058 = vmatpush3.bf16.msra.mxu0 (!%p245_p2), %v3357_v5  ;;  %2776 = vmatprep.mubr.msk.f32.mxu0 (!%p245_p2), %vm3299_vm0, %v3300_v17  ;;  %v3408_v18 = vpack.c.bf16 (!%p245_p2), %v327_v16, %v326_v15  ;;  %v501_v23 = vshrl.u32 (!%p245_p2), %v336_v19, 7  ;;  %vm425_vm3 = vcmask (!%p245_p2), 130048   ;;  %vm512_vm4 = vcmask (!%p245_p2), 261120   ;;  %s3303_s11 = smov (!%p245_p2), 96  }
   0x9   : > { %3059 = vmatprep.subr.bf16.mxu0 (!%p245_p2), %v3298_v4  ;;  %2783 = vmatprep.mubr.msk.f32.mxu1 (!%p245_p2), %vm3299_vm0, %v3300_v17  ;;  %vm618_vm6 = vcmask (!%p245_p2), 254976  }
   0xa   : > { %v502_v25 = vsub.s32 (!%p245_p2), 0, %v501_v23  ;;  %v506_v26 = vsub.s32 (!%p245_p2), 1, %v501_v23 }
   0xc   : > { %3061 = vmatpush3.bf16.msra.mxu0 (!%p245_p2), %v3366_v7 }
   0xd   : > { %s3716_s22 = smov (!%p292_p3, %s2549_s22), 1  ;;  %3062 = vmatprep.subr.bf16.mxu0 %v3298_v4 }
   0xe   : > { %s3369_s7 = sshll.u32 %s3716_s22, 4  ;;  %s2560_s24 = sshll.u32 %s3716_s22, 1 }
   0xf   : > { %s3382_s14 = scalar_lea.vmem %s3708_s0, %s3369_s7  ;;  %s301_s17 = scalar_lea.vmem %s3710_s2, %s3369_s7 }
  0x10   : > { %v328_v10 = vld [vmem:[%s301_s17] sm:$0xff]  ;;  %v329_v11 = vld [vmem:[%s301_s17 + $0x8] sm:$0xff]  ;;  %3064 = vmatpush3.bf16.msra.mxu0 %v3392_v14  ;;  %s3428_s27 = scalar_lea.vmem %s3712_s4, %s2560_s24  ;;  %s2622_s29 = sshll.u32 %s3716_s22, 5 }
  0x11   : > { %v338_v12 = vld [vmem:[%s3382_s14] sm:$0x3]  ;;  %v3389_v13 = vpack.c.bf16 %v329_v11, %v328_v10  ;;  %3065 = vmatprep.subr.bf16.mxu0 %v3298_v4  ;;  %s306_s9 = scalar_lea.vmem %s3711_s3, %s2622_s29  ;;  %v2569_v37 = vld [vmem:[%s3382_s14 + $0x2] sm:$0x3]  ;;  %v2576_v60 = vld [vmem:[%s3382_s14 + $0x4] sm:$0x3]  ;;  %s3489_s15 = scalar_lea.vmem %s3713_s5, %s3369_s7 }
  0x12   : > { %340 = vperm.xlu0 %3239, %v338_v12   ;;  %v335_v24 = vld [vmem:[%s3428_s27] sm:$0x3]  ;;  %v331_v30 = vld [vmem:[%s306_s9 + $0x8] sm:$0xff]  ;;  %v332_v32 = vld [vmem:[%s306_s9 + $0x10] sm:$0xff]  ;;  %s319_s16 = scalar_lea.vmem %s3714_s6, %s2560_s24 }
  0x13   : > { %3070 = vmatpush3.bf16.msra.mxu1 %v3389_v13  ;;  %v507_v27 = vrot.slane %v335_v24, %v506_v26  ;;  %v503_v28 = vrot.slane %v335_v24, %v502_v25  ;;  %v330_v29 = vld [vmem:[%s306_s9] sm:$0xff]  ;;  %v333_v33 = vld [vmem:[%s306_s9 + $0x18] sm:$0xff] }
  0x14   : > { %3071 = vmatprep.subr.bf16.mxu1 %v3298_v4  ;;  %3067 = vmatpush3.bf16.msra.mxu0 %v3408_v18  ;;  %v3435_v31 = vpack.c.bf16 %v331_v30, %v330_v29  ;;  %v3439_v36 = vpack.c.bf16 %v333_v33, %v332_v32  ;;  %v3471_v48 = vld [vmem:[%s3428_s27] ss:$0 sm:$0xff] }
  0x15   : > { %3089 = vmatprep.subr.bf16.mxu0 %v3298_v4  ;;  %510 = vrot.lane.b32.xlu1 %v507_v27, %s3301_s28 }
  0x16   : > { %508 = vrot.lane.b32.xlu0 %v503_v28, %s3301_s28 }
  0x19   : > { %623 = vperm.xlu1 %3240, %v2569_v37   ;;  %v2583_v37 = vld [vmem:[%s3382_s14 + $0x6] sm:$0x3] }
  0x87   : > { %v511_v40 = vpop.permute.xlu1 %510 }
  0x91   : > { %v341_v21 = vpop.permute.xlu0 %340 }
  0x92   : > { %vm342_vm2 = vcmp.eq.s32.totalorder %v341_v21, %v3413_v20 }
  0x93   : > { %v2564_v22 = vsel %vm342_vm2, 1.0, %v3300_v17 }
  0x94   : > { %2777 = vmatmul.mubr.msk.f32.vlgmr.msra.gmra.mrb[0].mxu0 %vm345_vm1, %v2564_v22 }
  0x95   : > { %3091 = vmatpush3.bf16.msra.mxu0 %v3389_v13  ;;  %2820 = vmatprep.mubr.msk.f32.mxu0 %vm3299_vm0, %v3300_v17  ;;  %v509_v41 = vpop.permute.xlu0 %508 }
  0x96   : > { %3092 = vmatprep.subr.bf16.mxu0 %v3298_v4  ;;  %v3459_v42 = vsel %vm512_vm4, %v509_v41, %v511_v40 }
  0x98   : > { %v624_v46 = vpop.permute.xlu1 %623 }
  0x99   : > { %vm625_vm5 = vcmp.eq.s32.totalorder %v624_v46, %v3413_v20 }
  0x9a   : > { %v2570_v47 = vsel %vm625_vm5, 1.0, %v3300_v17 }
 0x167   : > { %v415_v34 = vpop.f32.mrb[0].mxu0 }
 0x168   : > { %v2778_v35 = vpop.f32.mrb[1].mxu0  ;;  %2784 = vmatmul.mubr.msk.f32.vlgmr.msra.gmra.mrb[0].mxu1 %vm425_vm3, %v415_v34 }
 0x169   : > { %3073 = vmatpush3.bf16.msra.mxu1 %v3435_v31  ;;  %2794 = vmatprep.mubr.msk.f32.mxu1 %vm3299_vm0, %v3300_v17 }
 0x16a   : > { %3074 = vmatprep.subr.bf16.mxu1 %v3298_v4 }
 0x16d   : > { %3076 = vmatpush3.bf16.msra.mxu1 %v3439_v36 }
 0x16e   : > { %3077 = vmatprep.subr.bf16.mxu1 %v3298_v4 }
 0x170   : > { %2795 = vmatmul.mubr.f32.vlgmr.msra.gmra.mrb[2].mxu1 %v3300_v17 }
 0x171   : > { %3079 = vmatpush3.bf16.msra.mxu1 %v3357_v5  ;;  %2813 = vmatprep.mubr.msk.f32.mxu1 %vm3299_vm0, %v3300_v17 }
 0x172   : > { %3080 = vmatprep.subr.bf16.mxu1 %v3298_v4 }
 0x175   : > { %3082 = vmatpush3.bf16.msra.mxu1 %v3366_v7 }
 0x176   : > { %3083 = vmatprep.subr.bf16.mxu1 %v3298_v4 }
 0x179   : > { %3085 = vmatpush3.bf16.msra.mxu1 %v3392_v14 }
 0x17a   : > { %3086 = vmatprep.subr.bf16.mxu1 %v3298_v4 }
 0x17d   : > { %3088 = vmatpush3.bf16.msra.mxu1 %v3408_v18 }
 0x17e   : > { %3110 = vmatprep.subr.bf16.mxu1 %v3298_v4 }
 0x180   : > { %2814 = vmatmul.mubr.msk.f32.vlgmr.msra.gmra.mrb[4].mxu1 %vm345_vm1, %v2570_v47 }
 0x181   : > { %3112 = vmatpush3.bf16.msra.mxu1 %v3389_v13  ;;  %2857 = vmatprep.mubr.msk.f32.mxu1 %vm3299_vm0, %v3300_v17 }
 0x182   : > { %3113 = vmatprep.subr.bf16.mxu1 %v3298_v4 }
 0x23b   : > { %v495_v38 = vpop.f32.mrb[0].mxu1 }
 0x23c   : > { %v2785_v39 = vpop.f32.mrb[1].mxu1  ;;  %v496_v49 = vadd.f32 %v3471_v48, %v495_v38 }
 0x243   : > { %v584_v43 = vpop.f32.mrb[2].mxu1 }
 0x244   : > { %v585_v44 = vadd.f32 %v584_v43, %v3459_v42  ;;  %v2796_v45 = vpop.f32.mrb[3].mxu1 }
 0x246   : > { %596 = vrot.lane.b32.xlu0 %v585_v44, %s3302_s10  ;;  %v588_v50 = vadd.f32 %v585_v44, %v496_v49 }
 0x248   : > { %v2568_v51 = vmul.f32 -1.442695, %v588_v50 }
 0x24a   : > { %3241 = vpow2.f32 %v2568_v51 }
 0x253   : > { %v697_v61 = vpop.f32.mrb[4].mxu1 }
 0x254   : > { %v3242_v52 = vpop.eup %3241  ;;  %v2815_v62 = vpop.f32.mrb[5].mxu1  ;;  %2821 = vmatmul.mubr.msk.f32.vlgmr.msra.gmra.mrb[2].mxu0 %vm425_vm3, %v697_v61 }
 0x255   : > { %v592_v53 = vadd.f32 1.0, %v3242_v52  ;;  %3094 = vmatpush3.bf16.msra.mxu0 %v3435_v31  ;;  %2831 = vmatprep.mubr.msk.f32.mxu0 %vm3299_vm0, %v3300_v17 }
 0x256   : > { %3095 = vmatprep.subr.bf16.mxu0 %v3298_v4 }
 0x257   : > { %3243 = vrcp.f32 %v592_v53 }
 0x259   : > { %3097 = vmatpush3.bf16.msra.mxu0 %v3439_v36 }
 0x25a   : > { %3098 = vmatprep.subr.bf16.mxu0 %v3298_v4 }
 0x261   : > { %v3244_v54 = vpop.eup %3243 }
 0x262   : > { %v606_v63 = vsub.f32 1.0, %v3244_v54  ;;  %v612_v1 = vmul.f32 0.0, %v3244_v54 }
 0x2b8   : > { %v597_v55 = vpop.permute.xlu0 %596 }
 0x2b9   : > { %v599_v56 = vmul.f32 %v3244_v54, %v597_v55 }
 0x2bb   : > { %601 = vrot.lane.b32.xlu1 %v599_v56, %s3302_s10 }
 0x327   : > { %v770_v6 = vpop.f32.mrb[2].mxu0 }
 0x328   : > { %v2822_v8 = vpop.f32.mrb[3].mxu0  ;;  %v771_v22 = vadd.f32 %v3471_v48, %v770_v6 }
 0x32d   : > { %v602_v57 = vpop.permute.xlu1 %601 }
 0x32e   : > { %v604_v58 = vadd.f32 %v602_v57, %v496_v49 }
 0x330   : > { %3245 = vtanh.f32 %v604_v58 }
 0x33a   : > { %v3246_v59 = vpop.eup %3245 }
 0x33b   : > { %608 = vrot.lane.b32.xlu0 %v3246_v59, %s3303_s11 }
 0x33f   : > { %881 = vperm.xlu0 %3239, %v2576_v60  }
 0x3ad   : > { %v609_v0 = vpop.permute.xlu0 %608 }
 0x3ae   : > { %v611_v2 = vmul.f32 %v609_v0, %v606_v63 }
 0x3b0   : > { %v613_v3 = vadd.f32 %v612_v1, %v611_v2  ;;  %v2590_v2 = vld [vmem:[%s3382_s14 + $0x8] sm:$0x3] }
 0x3b2   : > { %615 = vrot.lane.b32.xlu1 %v613_v3, %s3303_s11 }
 0x3be   : > { %v882_v10 = vpop.permute.xlu0 %881 }
 0x3bf   : > { %vm883_vm7 = vcmp.eq.s32.totalorder %v882_v10, %v3413_v20 }
 0x3c0   : > { %v2577_v11 = vsel %vm883_vm7, 1.0, %v3300_v17 }
 0x424   : > { %v616_v9 = vpop.permute.xlu1 %615 }
 0x425   : > { %619 = vst.msk [vmem:[%s3489_s15] sm:$0x3] %vm618_vm6, %v616_v9  ;;  %2832 = vmatmul.mubr.msk.f32.vlgmr.msra.gmra.mrb[4].mxu0 %vm512_vm4, %v616_v9 }
 0x426   : > { %3100 = vmatpush3.bf16.msra.mxu0 %v3357_v5  ;;  %2850 = vmatprep.mubr.msk.f32.mxu0 %vm3299_vm0, %v3300_v17 }
 0x427   : > { %3101 = vmatprep.subr.bf16.mxu0 %v3298_v4 }
 0x42a   : > { %3103 = vmatpush3.bf16.msra.mxu0 %v3366_v7 }
 0x42b   : > { %3104 = vmatprep.subr.bf16.mxu0 %v3298_v4 }
 0x42e   : > { %3106 = vmatpush3.bf16.msra.mxu0 %v3392_v14 }
 0x42f   : > { %3107 = vmatprep.subr.bf16.mxu0 %v3298_v4 }
 0x432   : > { %3109 = vmatpush3.bf16.msra.mxu0 %v3408_v18 }
 0x433   : > { %3131 = vmatprep.subr.bf16.mxu0 %v3298_v4 }
 0x435   : > { %2851 = vmatmul.mubr.msk.f32.vlgmr.msra.gmra.mrb[6].mxu0 %vm345_vm1, %v2577_v11 }
 0x436   : > { %3133 = vmatpush3.bf16.msra.mxu0 %v3389_v13  ;;  %2894 = vmatprep.mubr.msk.f32.mxu0 %vm3299_vm0, %v3300_v17 }
 0x437   : > { %3134 = vmatprep.subr.bf16.mxu0 %v3298_v4 }
 0x4f8   : > { %v842_v12 = vpop.f32.mrb[4].mxu0 }
 0x4f9   : > { %v843_v15 = vadd.f32 %v842_v12, %v3459_v42  ;;  %v2833_v16 = vpop.f32.mrb[5].mxu0 }
 0x4fb   : > { %854 = vrot.lane.b32.xlu1 %v843_v15, %s3302_s10  ;;  %v846_v23 = vadd.f32 %v843_v15, %v771_v22 }
 0x4fd   : > { %v2574_v24 = vmul.f32 -1.442695, %v846_v23 }
 0x4ff   : > { %3247 = vpow2.f32 %v2574_v24 }
 0x508   : > { %v955_v19 = vpop.f32.mrb[6].mxu0 }
 0x509   : > { %v2852_v21 = vpop.f32.mrb[7].mxu0  ;;  %2858 = vmatmul.mubr.msk.f32.vlgmr.msra.gmra.mrb[6].mxu1 %vm425_vm3, %v955_v19  ;;  %v3248_v25 = vpop.eup %3247 }
 0x50a   : > { %3115 = vmatpush3.bf16.msra.mxu1 %v3435_v31  ;;  %2868 = vmatprep.mubr.msk.f32.mxu1 %vm3299_vm0, %v3300_v17  ;;  %v850_v26 = vadd.f32 1.0, %v3248_v25 }
 0x50b   : > { %3116 = vmatprep.subr.bf16.mxu1 %v3298_v4 }
 0x50c   : > { %3249 = vrcp.f32 %v850_v26 }
 0x50e   : > { %3118 = vmatpush3.bf16.msra.mxu1 %v3439_v36 }
 0x50f   : > { %3119 = vmatprep.subr.bf16.mxu1 %v3298_v4 }
 0x516   : > { %v3250_v27 = vpop.eup %3249 }
 0x517   : > { %v864_v38 = vsub.f32 1.0, %v3250_v27  ;;  %v870_v40 = vmul.f32 %v3250_v27, %v613_v3 }
 0x56d   : > { %v855_v28 = vpop.permute.xlu1 %854 }
 0x56e   : > { %v857_v29 = vmul.f32 %v3250_v27, %v855_v28 }
 0x570   : > { %859 = vrot.lane.b32.xlu0 %v857_v29, %s3302_s10 }
 0x5dc   : > { %v1028_v30 = vpop.f32.mrb[6].mxu1 }
 0x5dd   : > { %v2859_v32 = vpop.f32.mrb[7].mxu1  ;;  %v1029_v53 = vadd.f32 %v3471_v48, %v1028_v30 }
 0x5e2   : > { %v860_v33 = vpop.permute.xlu0 %859 }
 0x5e3   : > { %v862_v34 = vadd.f32 %v860_v33, %v771_v22 }
 0x5e5   : > { %3251 = vtanh.f32 %v862_v34 }
 0x5ef   : > { %v3252_v35 = vpop.eup %3251 }
 0x5f0   : > { %866 = vrot.lane.b32.xlu1 %v3252_v35, %s3303_s11 }
 0x5f4   : > { %1139 = vperm.xlu1 %3240, %v2583_v37  }
 0x662   : > { %v867_v39 = vpop.permute.xlu1 %866 }
 0x663   : > { %v869_v41 = vmul.f32 %v867_v39, %v864_v38  ;;  %v2597_v39 = vld [vmem:[%s3382_s14 + $0xa] sm:$0x3] }
 0x665   : > { %v871_v43 = vadd.f32 %v870_v40, %v869_v41 }
 0x667   : > { %873 = vrot.lane.b32.xlu0 %v871_v43, %s3303_s11 }
 0x673   : > { %v1140_v45 = vpop.permute.xlu1 %1139 }
 0x674   : > { %vm1141_vm8 = vcmp.eq.s32.totalorder %v1140_v45, %v3413_v20 }
 0x675   : > { %v2584_v46 = vsel %vm1141_vm8, 1.0, %v3300_v17 }
 0x6d9   : > { %v874_v44 = vpop.permute.xlu0 %873 }
 0x6da   : > { %2575 = vst.msk [vmem:[%s3489_s15 + $0x2] sm:$0x3] %vm618_vm6, %v874_v44  ;;  %2869 = vmatmul.mubr.msk.f32.vlgmr.msra.gmra.mrb[8].mxu1 %vm512_vm4, %v874_v44 }
 0x6db   : > { %3121 = vmatpush3.bf16.msra.mxu1 %v3357_v5  ;;  %2887 = vmatprep.mubr.msk.f32.mxu1 %vm3299_vm0, %v3300_v17 }
 0x6dc   : > { %3122 = vmatprep.subr.bf16.mxu1 %v3298_v4 }
 0x6df   : > { %3124 = vmatpush3.bf16.msra.mxu1 %v3366_v7 }
 0x6e0   : > { %3125 = vmatprep.subr.bf16.mxu1 %v3298_v4 }
 0x6e3   : > { %3127 = vmatpush3.bf16.msra.mxu1 %v3392_v14 }
 0x6e4   : > { %3128 = vmatprep.subr.bf16.mxu1 %v3298_v4 }
 0x6e7   : > { %3130 = vmatpush3.bf16.msra.mxu1 %v3408_v18 }
 0x6e8   : > { %3152 = vmatprep.subr.bf16.mxu1 %v3298_v4 }
 0x6ea   : > { %2888 = vmatmul.mubr.msk.f32.vlgmr.msra.gmra.mrb[10].mxu1 %vm345_vm1, %v2584_v46 }
 0x6eb   : > { %3154 = vmatpush3.bf16.msra.mxu1 %v3389_v13  ;;  %2931 = vmatprep.mubr.msk.f32.mxu1 %vm3299_vm0, %v3300_v17 }
 0x6ec   : > { %3155 = vmatprep.subr.bf16.mxu1 %v3298_v4 }
 0x7ad   : > { %v1100_v47 = vpop.f32.mrb[8].mxu1 }
 0x7ae   : > { %v1101_v49 = vadd.f32 %v1100_v47, %v3459_v42  ;;  %v2870_v50 = vpop.f32.mrb[9].mxu1 }
 0x7b0   : > { %1112 = vrot.lane.b32.xlu0 %v1101_v49, %s3302_s10  ;;  %v1104_v54 = vadd.f32 %v1101_v49, %v1029_v53 }
 0x7b2   : > { %v2581_v55 = vmul.f32 -1.442695, %v1104_v54 }
 0x7b4   : > { %3253 = vpow2.f32 %v2581_v55 }
 0x7bd   : > { %v1213_v51 = vpop.f32.mrb[10].mxu1 }
 0x7be   : > { %v2889_v52 = vpop.f32.mrb[11].mxu1  ;;  %2895 = vmatmul.mubr.msk.f32.vlgmr.msra.gmra.mrb[8].mxu0 %vm425_vm3, %v1213_v51  ;;  %v3254_v56 = vpop.eup %3253 }
 0x7bf   : > { %3136 = vmatpush3.bf16.msra.mxu0 %v3435_v31  ;;  %2905 = vmatprep.mubr.msk.f32.mxu0 %vm3299_vm0, %v3300_v17  ;;  %v1108_v57 = vadd.f32 1.0, %v3254_v56 }
 0x7c0   : > { %3137 = vmatprep.subr.bf16.mxu0 %v3298_v4 }
 0x7c1   : > { %3255 = vrcp.f32 %v1108_v57 }
 0x7c3   : > { %3139 = vmatpush3.bf16.msra.mxu0 %v3439_v36 }
 0x7c4   : > { %3140 = vmatprep.subr.bf16.mxu0 %v3298_v4 }
 0x7cb   : > { %v3256_v58 = vpop.eup %3255 }
 0x7cc   : > { %v1122_v3 = vsub.f32 1.0, %v3256_v58  ;;  %v1128_v8 = vmul.f32 %v3256_v58, %v871_v43 }
 0x822   : > { %v1113_v59 = vpop.permute.xlu0 %1112 }
 0x823   : > { %v1115_v60 = vmul.f32 %v3256_v58, %v1113_v59 }
 0x825   : > { %1117 = vrot.lane.b32.xlu1 %v1115_v60, %s3302_s10 }
 0x891   : > { %v1286_v61 = vpop.f32.mrb[8].mxu0 }
 0x892   : > { %v2896_v62 = vpop.f32.mrb[9].mxu0  ;;  %v1287_v24 = vadd.f32 %v3471_v48, %v1286_v61 }
 0x897   : > { %v1118_v63 = vpop.permute.xlu1 %1117 }
 0x898   : > { %v1120_v0 = vadd.f32 %v1118_v63, %v1029_v53 }
 0x89a   : > { %3257 = vtanh.f32 %v1120_v0 }
 0x8a4   : > { %v3258_v1 = vpop.eup %3257 }
 0x8a5   : > { %1124 = vrot.lane.b32.xlu0 %v3258_v1, %s3303_s11 }
 0x8a9   : > { %1397 = vperm.xlu0 %3239, %v2590_v2  }
 0x917   : > { %v1125_v6 = vpop.permute.xlu0 %1124 }
 0x918   : > { %v1127_v9 = vmul.f32 %v1125_v6, %v1122_v3  ;;  %v2604_v6 = vld [vmem:[%s3382_s14 + $0xc] sm:$0x3] }
 0x91a   : > { %v1129_v10 = vadd.f32 %v1128_v8, %v1127_v9 }
 0x91c   : > { %1131 = vrot.lane.b32.xlu1 %v1129_v10, %s3303_s11 }
 0x928   : > { %v1398_v12 = vpop.permute.xlu0 %1397 }
 0x929   : > { %vm1399_vm9 = vcmp.eq.s32.totalorder %v1398_v12, %v3413_v20 }
 0x92a   : > { %v2591_v15 = vsel %vm1399_vm9, 1.0, %v3300_v17 }
 0x98e   : > { %v1132_v11 = vpop.permute.xlu1 %1131 }
 0x98f   : > { %2582 = vst.msk [vmem:[%s3489_s15 + $0x4] sm:$0x3] %vm618_vm6, %v1132_v11  ;;  %2906 = vmatmul.mubr.msk.f32.vlgmr.msra.gmra.mrb[10].mxu0 %vm512_vm4, %v1132_v11 }
 0x990   : > { %3142 = vmatpush3.bf16.msra.mxu0 %v3357_v5  ;;  %2924 = vmatprep.mubr.msk.f32.mxu0 %vm3299_vm0, %v3300_v17 }
 0x991   : > { %3143 = vmatprep.subr.bf16.mxu0 %v3298_v4 }
 0x994   : > { %3145 = vmatpush3.bf16.msra.mxu0 %v3366_v7 }
 0x995   : > { %3146 = vmatprep.subr.bf16.mxu0 %v3298_v4 }
 0x998   : > { %3148 = vmatpush3.bf16.msra.mxu0 %v3392_v14 }
 0x999   : > { %3149 = vmatprep.subr.bf16.mxu0 %v3298_v4 }
 0x99c   : > { %3151 = vmatpush3.bf16.msra.mxu0 %v3408_v18 }
 0x99d   : > { %3173 = vmatprep.subr.bf16.mxu0 %v3298_v4 }
 0x99f   : > { %2925 = vmatmul.mubr.msk.f32.vlgmr.msra.gmra.mrb[12].mxu0 %vm345_vm1, %v2591_v15 }
 0x9a0   : > { %3175 = vmatpush3.bf16.msra.mxu0 %v3389_v13  ;;  %2968 = vmatprep.mubr.msk.f32.mxu0 %vm3299_vm0, %v3300_v17 }
 0x9a1   : > { %3176 = vmatprep.subr.bf16.mxu0 %v3298_v4 }
 0xa62   : > { %v1358_v16 = vpop.f32.mrb[10].mxu0 }
 0xa63   : > { %v1359_v19 = vadd.f32 %v1358_v16, %v3459_v42  ;;  %v2907_v21 = vpop.f32.mrb[11].mxu0 }
 0xa65   : > { %1370 = vrot.lane.b32.xlu1 %v1359_v19, %s3302_s10  ;;  %v1362_v25 = vadd.f32 %v1359_v19, %v1287_v24 }
 0xa67   : > { %v2588_v26 = vmul.f32 -1.442695, %v1362_v25 }
 0xa69   : > { %3259 = vpow2.f32 %v2588_v26 }
 0xa72   : > { %v1471_v22 = vpop.f32.mrb[12].mxu0 }
 0xa73   : > { %v2926_v23 = vpop.f32.mrb[13].mxu0  ;;  %2932 = vmatmul.mubr.msk.f32.vlgmr.msra.gmra.mrb[12].mxu1 %vm425_vm3, %v1471_v22  ;;  %v3260_v27 = vpop.eup %3259 }
 0xa74   : > { %3157 = vmatpush3.bf16.msra.mxu1 %v3435_v31  ;;  %2942 = vmatprep.mubr.msk.f32.mxu1 %vm3299_vm0, %v3300_v17  ;;  %v1366_v28 = vadd.f32 1.0, %v3260_v27 }
 0xa75   : > { %3158 = vmatprep.subr.bf16.mxu1 %v3298_v4 }
 0xa76   : > { %3261 = vrcp.f32 %v1366_v28 }
 0xa78   : > { %3160 = vmatpush3.bf16.msra.mxu1 %v3439_v36 }
 0xa79   : > { %3161 = vmatprep.subr.bf16.mxu1 %v3298_v4 }
 0xa80   : > { %v3262_v29 = vpop.eup %3261 }
 0xa81   : > { %v1380_v40 = vsub.f32 1.0, %v3262_v29  ;;  %v1386_v43 = vmul.f32 %v3262_v29, %v1129_v10 }
 0xad7   : > { %v1371_v30 = vpop.permute.xlu1 %1370 }
 0xad8   : > { %v1373_v32 = vmul.f32 %v3262_v29, %v1371_v30 }
 0xada   : > { %1375 = vrot.lane.b32.xlu0 %v1373_v32, %s3302_s10 }
 0xb46   : > { %v1544_v33 = vpop.f32.mrb[12].mxu1 }
 0xb47   : > { %v2933_v34 = vpop.f32.mrb[13].mxu1  ;;  %v1545_v55 = vadd.f32 %v3471_v48, %v1544_v33 }
 0xb4c   : > { %v1376_v35 = vpop.permute.xlu0 %1375 }
 0xb4d   : > { %v1378_v37 = vadd.f32 %v1376_v35, %v1287_v24 }
 0xb4f   : > { %3263 = vtanh.f32 %v1378_v37 }
 0xb59   : > { %v3264_v38 = vpop.eup %3263 }
 0xb5a   : > { %1382 = vrot.lane.b32.xlu1 %v3264_v38, %s3303_s11 }
 0xb5e   : > { %1655 = vperm.xlu1 %3240, %v2597_v39  }
 0xbcc   : > { %v1383_v41 = vpop.permute.xlu1 %1382 }
 0xbcd   : > { %v1385_v44 = vmul.f32 %v1383_v41, %v1380_v40  ;;  %v2611_v40 = vld [vmem:[%s3382_s14 + $0xe] sm:$0x3] }
 0xbcf   : > { %v1387_v45 = vadd.f32 %v1386_v43, %v1385_v44 }
 0xbd1   : > { %1389 = vrot.lane.b32.xlu0 %v1387_v45, %s3303_s11 }
 0xbdd   : > { %v1656_v47 = vpop.permute.xlu1 %1655 }
 0xbde   : > { %vm1657_vm10 = vcmp.eq.s32.totalorder %v1656_v47, %v3413_v20 }
 0xbdf   : > { %v2598_v49 = vsel %vm1657_vm10, 1.0, %v3300_v17 }
 0xc43   : > { %v1390_v46 = vpop.permute.xlu0 %1389 }
 0xc44   : > { %2589 = vst.msk [vmem:[%s3489_s15 + $0x6] sm:$0x3] %vm618_vm6, %v1390_v46  ;;  %2943 = vmatmul.mubr.msk.f32.vlgmr.msra.gmra.mrb[14].mxu1 %vm512_vm4, %v1390_v46 }
 0xc45   : > { %3163 = vmatpush3.bf16.msra.mxu1 %v3357_v5  ;;  %2961 = vmatprep.mubr.msk.f32.mxu1 %vm3299_vm0, %v3300_v17 }
 0xc46   : > { %3164 = vmatprep.subr.bf16.mxu1 %v3298_v4 }
 0xc49   : > { %3166 = vmatpush3.bf16.msra.mxu1 %v3366_v7 }
 0xc4a   : > { %3167 = vmatprep.subr.bf16.mxu1 %v3298_v4 }
 0xc4d   : > { %3169 = vmatpush3.bf16.msra.mxu1 %v3392_v14 }
 0xc4e   : > { %3170 = vmatprep.subr.bf16.mxu1 %v3298_v4 }
 0xc51   : > { %3172 = vmatpush3.bf16.msra.mxu1 %v3408_v18 }
 0xc52   : > { %3194 = vmatprep.subr.bf16.mxu1 %v3298_v4 }
 0xc54   : > { %2962 = vmatmul.mubr.msk.f32.vlgmr.msra.gmra.mrb[16].mxu1 %vm345_vm1, %v2598_v49 }
 0xc55   : > { %3196 = vmatpush3.bf16.msra.mxu1 %v3389_v13  ;;  %3005 = vmatprep.mubr.msk.f32.mxu1 %vm3299_vm0, %v3300_v17 }
 0xc56   : > { %3197 = vmatprep.subr.bf16.mxu1 %v3298_v4 }
 0xd17   : > { %v1616_v50 = vpop.f32.mrb[14].mxu1 }
 0xd18   : > { %v1617_v51 = vadd.f32 %v1616_v50, %v3459_v42  ;;  %v2944_v52 = vpop.f32.mrb[15].mxu1 }
 0xd1a   : > { %1628 = vrot.lane.b32.xlu0 %v1617_v51, %s3302_s10  ;;  %v1620_v56 = vadd.f32 %v1617_v51, %v1545_v55 }
 0xd1c   : > { %v2595_v57 = vmul.f32 -1.442695, %v1620_v56 }
 0xd1e   : > { %3265 = vpow2.f32 %v2595_v57 }
 0xd27   : > { %v1729_v53 = vpop.f32.mrb[16].mxu1 }
 0xd28   : > { %v2963_v54 = vpop.f32.mrb[17].mxu1  ;;  %2969 = vmatmul.mubr.msk.f32.vlgmr.msra.gmra.mrb[14].mxu0 %vm425_vm3, %v1729_v53  ;;  %v3266_v58 = vpop.eup %3265 }
 0xd29   : > { %3178 = vmatpush3.bf16.msra.mxu0 %v3435_v31  ;;  %2979 = vmatprep.mubr.msk.f32.mxu0 %vm3299_vm0, %v3300_v17  ;;  %v1624_v59 = vadd.f32 1.0, %v3266_v58 }
 0xd2a   : > { %3179 = vmatprep.subr.bf16.mxu0 %v3298_v4 }
 0xd2b   : > { %3267 = vrcp.f32 %v1624_v59 }
 0xd2d   : > { %3181 = vmatpush3.bf16.msra.mxu0 %v3439_v36 }
 0xd2e   : > { %3182 = vmatprep.subr.bf16.mxu0 %v3298_v4 }
 0xd35   : > { %v3268_v60 = vpop.eup %3267 }
 0xd36   : > { %v1638_v8 = vsub.f32 1.0, %v3268_v60  ;;  %v1644_v10 = vmul.f32 %v3268_v60, %v1387_v45 }
 0xd8c   : > { %v1629_v61 = vpop.permute.xlu0 %1628 }
 0xd8d   : > { %v1631_v62 = vmul.f32 %v3268_v60, %v1629_v61 }
 0xd8f   : > { %1633 = vrot.lane.b32.xlu1 %v1631_v62, %s3302_s10 }
 0xdfb   : > { %v1802_v63 = vpop.f32.mrb[14].mxu0 }
 0xdfc   : > { %v2970_v0 = vpop.f32.mrb[15].mxu0 }
 0xe01   : > { %v1634_v1 = vpop.permute.xlu1 %1633 }
 0xe02   : > { %v1636_v2 = vadd.f32 %v1634_v1, %v1545_v55 }
 0xe04   : > { %3269 = vtanh.f32 %v1636_v2 }
 0xe0e   : > { %v3270_v3 = vpop.eup %3269 }
 0xe0f   : > { %1640 = vrot.lane.b32.xlu0 %v3270_v3, %s3303_s11 }
 0xe13   : > { %1913 = vperm.xlu0 %3239, %v2604_v6  }
 0xe81   : > { %v1641_v9 = vpop.permute.xlu0 %1640 }
 0xe82   : > { %v1643_v11 = vmul.f32 %v1641_v9, %v1638_v8 }
 0xe84   : > { %v1645_v12 = vadd.f32 %v1644_v10, %v1643_v11 }
 0xe86   : > { %1647 = vrot.lane.b32.xlu1 %v1645_v12, %s3303_s11 }
 0xe92   : > { %v1914_v16 = vpop.permute.xlu0 %1913 }
 0xe93   : > { %vm1915_vm11 = vcmp.eq.s32.totalorder %v1914_v16, %v3413_v20 }
 0xe94   : > { %v2605_v19 = vsel %vm1915_vm11, 1.0, %v3300_v17 }
 0xef8   : > { %v1648_v15 = vpop.permute.xlu1 %1647 }
 0xef9   : > { %2596 = vst.msk [vmem:[%s3489_s15 + $0x8] sm:$0x3] %vm618_vm6, %v1648_v15  ;;  %2980 = vmatmul.mubr.msk.f32.vlgmr.msra.gmra.mrb[16].mxu0 %vm512_vm4, %v1648_v15 }
 0xefa   : > { %3184 = vmatpush3.bf16.msra.mxu0 %v3357_v5  ;;  %2998 = vmatprep.mubr.msk.f32.mxu0 %vm3299_vm0, %v3300_v17 }
 0xefb   : > { %3185 = vmatprep.subr.bf16.mxu0 %v3298_v4 }
 0xefe   : > { %3187 = vmatpush3.bf16.msra.mxu0 %v3366_v7 }
 0xeff   : > { %3188 = vmatprep.subr.bf16.mxu0 %v3298_v4 }
 0xf02   : > { %3190 = vmatpush3.bf16.msra.mxu0 %v3392_v14 }
 0xf03   : > { %3191 = vmatprep.subr.bf16.mxu0 %v3298_v4 }
 0xf06   : > { %3193 = vmatpush3.bf16.msra.mxu0 %v3408_v18 }
 0xf07   : > { %3215 = vmatprep.subr.bf16.mxu0 %v3298_v4 }
 0xf09   : > { %2999 = vmatmul.mubr.msk.f32.vlgmr.msra.gmra.mrb[18].mxu0 %vm345_vm1, %v2605_v19 }
 0xf0a   : > { %3217 = vmatpush3.bf16.msra.mxu0 %v3389_v13  ;;  %3042 = vmatprep.mubr.msk.f32.mxu0 %vm3299_vm0, %v3300_v17  ;;  %v1803_v13 = vadd.f32 %v3471_v48, %v1802_v63 }
 0xf0b   : > { %3218 = vmatprep.subr.bf16.mxu0 %v3298_v4 }
 0xfcc   : > { %v1874_v21 = vpop.f32.mrb[16].mxu0 }
 0xfcd   : > { %v1875_v22 = vadd.f32 %v1874_v21, %v3459_v42  ;;  %v2981_v23 = vpop.f32.mrb[17].mxu0 }
 0xfcf   : > { %1886 = vrot.lane.b32.xlu1 %v1875_v22, %s3302_s10  ;;  %v1878_v26 = vadd.f32 %v1875_v22, %v1803_v13 }
 0xfd1   : > { %v2602_v27 = vmul.f32 -1.442695, %v1878_v26 }
 0xfd3   : > { %3271 = vpow2.f32 %v2602_v27 }
 0xfdc   : > { %v1987_v24 = vpop.f32.mrb[18].mxu0 }
 0xfdd   : > { %v3000_v25 = vpop.f32.mrb[19].mxu0  ;;  %3006 = vmatmul.mubr.msk.f32.vlgmr.msra.gmra.mrb[18].mxu1 %vm425_vm3, %v1987_v24  ;;  %v3272_v28 = vpop.eup %3271 }
 0xfde   : > { %3199 = vmatpush3.bf16.msra.mxu1 %v3435_v31  ;;  %3016 = vmatprep.mubr.msk.f32.mxu1 %vm3299_vm0, %v3300_v17  ;;  %v1882_v29 = vadd.f32 1.0, %v3272_v28 }
 0xfdf   : > { %3200 = vmatprep.subr.bf16.mxu1 %v3298_v4 }
 0xfe0   : > { %3273 = vrcp.f32 %v1882_v29 }
 0xfe2   : > { %3202 = vmatpush3.bf16.msra.mxu1 %v3439_v36 }
 0xfe3   : > { %3203 = vmatprep.subr.bf16.mxu1 %v3298_v4 }
 0xfea   : > { %v3274_v30 = vpop.eup %3273 }
 0xfeb   : > { %v1896_v41 = vsub.f32 1.0, %v3274_v30  ;;  %v1902_v44 = vmul.f32 %v3274_v30, %v1645_v12 }
0x1041   : > { %v1887_v32 = vpop.permute.xlu1 %1886 }
0x1042   : > { %v1889_v33 = vmul.f32 %v3274_v30, %v1887_v32 }
0x1044   : > { %1891 = vrot.lane.b32.xlu0 %v1889_v33, %s3302_s10 }
0x10b0   : > { %v2060_v34 = vpop.f32.mrb[18].mxu1 }
0x10b1   : > { %v3007_v35 = vpop.f32.mrb[19].mxu1 }
0x10b6   : > { %v1892_v37 = vpop.permute.xlu0 %1891 }
0x10b7   : > { %v1894_v38 = vadd.f32 %v1892_v37, %v1803_v13 }
0x10b9   : > { %3275 = vtanh.f32 %v1894_v38 }
0x10c3   : > { %v3276_v39 = vpop.eup %3275 }
0x10c4   : > { %1898 = vrot.lane.b32.xlu1 %v3276_v39, %s3303_s11 }
0x10c8   : > { %2171 = vperm.xlu1 %3240, %v2611_v40  }
0x1136   : > { %v1899_v43 = vpop.permute.xlu1 %1898 }
0x1137   : > { %v1901_v45 = vmul.f32 %v1899_v43, %v1896_v41 }
0x1139   : > { %v1903_v46 = vadd.f32 %v1902_v44, %v1901_v45 }
0x113b   : > { %1905 = vrot.lane.b32.xlu0 %v1903_v46, %s3303_s11 }
0x1147   : > { %v2172_v49 = vpop.permute.xlu1 %2171 }
0x1148   : > { %vm2173_vm12 = vcmp.eq.s32.totalorder %v2172_v49, %v3413_v20 }
0x11ad   : > { %v1906_v47 = vpop.permute.xlu0 %1905 }
0x11ae   : > { %2603 = vst.msk [vmem:[%s3489_s15 + $0xa] sm:$0x3] %vm618_vm6, %v1906_v47  ;;  %3017 = vmatmul.mubr.msk.f32.vlgmr.msra.gmra.mrb[20].mxu1 %vm512_vm4, %v1906_v47 }
0x11af   : > { %3205 = vmatpush3.bf16.msra.mxu1 %v3357_v5  ;;  %3035 = vmatprep.mubr.msk.f32.mxu1 %vm3299_vm0, %v3300_v17  ;;  %v2612_v5 = vsel %vm2173_vm12, 1.0, %v3300_v17 }
0x11b0   : > { %3206 = vmatprep.subr.bf16.mxu1 %v3298_v4 }
0x11b3   : > { %3208 = vmatpush3.bf16.msra.mxu1 %v3366_v7 }
0x11b4   : > { %3209 = vmatprep.subr.bf16.mxu1 %v3298_v4 }
0x11b7   : > { %3211 = vmatpush3.bf16.msra.mxu1 %v3392_v14  ;;  %v2061_v14 = vadd.f32 %v3471_v48, %v2060_v34 }
0x11b8   : > { %3212 = vmatprep.subr.bf16.mxu1 %v3298_v4 }
0x11bb   : > { %3214 = vmatpush3.bf16.msra.mxu1 %v3408_v18 }
0x11be   : > { %3036 = vmatmul.mubr.msk.f32.vlgmr.msra.gmra.mrb[22].mxu1 %vm345_vm1, %v2612_v5 }
0x1281   : > { %v2132_v50 = vpop.f32.mrb[20].mxu1 }
0x1282   : > { %v2133_v51 = vadd.f32 %v2132_v50, %v3459_v42  ;;  %v3018_v52 = vpop.f32.mrb[21].mxu1 }
0x1284   : > { %2144 = vrot.lane.b32.xlu0 %v2133_v51, %s3302_s10  ;;  %v2136_v18 = vadd.f32 %v2133_v51, %v2061_v14 }
0x1286   : > { %v2609_v20 = vmul.f32 -1.442695, %v2136_v18 }
0x1288   : > { %3277 = vpow2.f32 %v2609_v20 }
0x1291   : > { %v2245_v7 = vpop.f32.mrb[22].mxu1 }
0x1292   : > { %v3037_v53 = vpop.f32.mrb[23].mxu1  ;;  %3043 = vmatmul.mubr.msk.f32.vlgmr.msra.gmra.mrb[20].mxu0 %vm425_vm3, %v2245_v7  ;;  %v3278_v54 = vpop.eup %3277 }
0x1293   : > { %3220 = vmatpush3.bf16.msra.mxu0 %v3435_v31  ;;  %3053 = vmatprep.mubr.msk.f32.mxu0 %vm3299_vm0, %v3300_v17  ;;  %v2140_v55 = vadd.f32 1.0, %v3278_v54 }
0x1294   : > { %3221 = vmatprep.subr.bf16.mxu0 %v3298_v4 }
0x1295   : > { %3279 = vrcp.f32 %v2140_v55 }
0x1297   : > { %3223 = vmatpush3.bf16.msra.mxu0 %v3439_v36 }
0x129f   : > { %v3280_v56 = vpop.eup %3279 }
0x12a0   : > { %v2154_v60 = vsub.f32 1.0, %v3280_v56  ;;  %v2160_v62 = vmul.f32 %v3280_v56, %v1903_v46 }
0x12f6   : > { %v2145_v57 = vpop.permute.xlu0 %2144 }
0x12f7   : > { %v2147_v58 = vmul.f32 %v3280_v56, %v2145_v57 }
0x12f9   : > { %2149 = vrot.lane.b32.xlu1 %v2147_v58, %s3302_s10 }
0x1365   : > { %v2318_v31 = vpop.f32.mrb[20].mxu0 }
0x1366   : > { %v3044_v17 = vpop.f32.mrb[21].mxu0  ;;  %v2319_v8 = vadd.f32 %v3471_v48, %v2318_v31 }
0x136b   : > { %v2150_v59 = vpop.permute.xlu1 %2149 }
0x136c   : > { %v2152_v4 = vadd.f32 %v2150_v59, %v2061_v14 }
0x136e   : > { %3281 = vtanh.f32 %v2152_v4 }
0x1378   : > { %v3282_v36 = vpop.eup %3281 }
0x1379   : > { %2156 = vrot.lane.b32.xlu0 %v3282_v36, %s3303_s11 }
0x13eb   : > { %v2157_v61 = vpop.permute.xlu0 %2156 }
0x13ec   : > { %v2159_v63 = vmul.f32 %v2157_v61, %v2154_v60 }
0x13ee   : > { %v2161_v0 = vadd.f32 %v2160_v62, %v2159_v63 }
0x13f0   : > { %2163 = vrot.lane.b32.xlu1 %v2161_v0, %s3303_s11 }
0x1462   : > { %v2164_v1 = vpop.permute.xlu1 %2163 }
0x1463   : > { %2610 = vst.msk [vmem:[%s3489_s15 + $0xc] sm:$0x3] %vm618_vm6, %v2164_v1  ;;  %3054 = vmatmul.mubr.msk.f32.vlgmr.msra.gmra.mrb[22].mxu0 %vm512_vm4, %v2164_v1 }
0x1536   : > { %v2390_v2 = vpop.f32.mrb[22].mxu0 }
0x1537   : > { %v2391_v3 = vadd.f32 %v2390_v2, %v3459_v42  ;;  %v3055_v6 = vpop.f32.mrb[23].mxu0 }
0x1539   : > { %2402 = vrot.lane.b32.xlu0 %v2391_v3, %s3302_s10  ;;  %v2394_v9 = vadd.f32 %v2391_v3, %v2319_v8 }
0x153b   : > { %v2616_v10 = vmul.f32 -1.442695, %v2394_v9 }
0x153d   : > { %3283 = vpow2.f32 %v2616_v10 }
0x1547   : > { %v3284_v11 = vpop.eup %3283 }
0x1548   : > { %v2398_v12 = vadd.f32 1.0, %v3284_v11 }
0x154a   : > { %3285 = vrcp.f32 %v2398_v12 }
0x1554   : > { %v3286_v15 = vpop.eup %3285 }
0x1555   : > { %v2412_v48 = vsub.f32 1.0, %v3286_v15  ;;  %v2418_v24 = vmul.f32 %v3286_v15, %v2161_v0 }
0x15ab   : > { %v2403_v16 = vpop.permute.xlu0 %2402 }
0x15ac   : > { %v2405_v19 = vmul.f32 %v3286_v15, %v2403_v16 }
0x15ae   : > { %2407 = vrot.lane.b32.xlu1 %v2405_v19, %s3302_s10 }
0x1620   : > { %v2408_v21 = vpop.permute.xlu1 %2407 }
0x1621   : > { %v2410_v42 = vadd.f32 %v2408_v21, %v2319_v8 }
0x1623   : > { %3287 = vtanh.f32 %v2410_v42 }
0x162d   : > { %v3288_v22 = vpop.eup %3287 }
0x162e   : > { %2414 = vrot.lane.b32.xlu0 %v3288_v22, %s3303_s11 }
0x16a0   : > { %v2415_v23 = vpop.permute.xlu0 %2414 }
0x16a1   : > { %v2417_v25 = vmul.f32 %v2415_v23, %v2412_v48 }
0x16a3   : > { %v2419_v13 = vadd.f32 %v2418_v24, %v2417_v25 }
0x16a5   : > { %2421 = vrot.lane.b32.xlu1 %v2419_v13, %s3303_s11 }
0x1717   : > { %v2422_v26 = vpop.permute.xlu1 %2421 }
0x1718   : > { %2617 = vst.msk [vmem:[%s3489_s15 + $0xe] sm:$0x3] %vm618_vm6, %v2422_v26  ;;  %2426 = vst.msk [vmem:[%s319_s16] sm:$0x3] %vm618_vm6, %v2422_v26 }
0x1719 PF: > { %s17_s21 = sadd.s32 1, %s3295_s21  }
0x171a   : > { %p14_p4 = scmp.ge.s32.totalorder %s17_s21, 4  }
0x171c   :  { %16 = sbr.rel (!%p14_p4) target bundleno = 1 (0x1), region = 105 }

</bundles_post_ra>
